<compile_context>
chip_gen: v5e
topology: v5e:2x2
jax: 0.10.0
libtpu: 0.0.40
codegen_flags: <defaults>
</compile_context>

<pallas_src>
import functools

import jax
import jax.numpy as jnp
from jax import lax
from jax.experimental import pallas as pl
from jax.experimental.pallas import tpu as pltpu


def _round_up(n, m):
    return (n + m - 1) // m * m


def _pad_to(a, shape):
    pads = [(0, t - s) for s, t in zip(a.shape, shape)]
    if all(p == (0, 0) for p in pads):
        return a
    return jnp.pad(a, pads)


def _num_tensorcores():
    """v7x has 2 TensorCores per chip; v5e/v6e have 1."""
    try:
        kind = jax.devices()[0].device_kind.lower()
    except Exception:
        return 1
    return 2 if "v7" in kind else 1


def _choose_batch_tiling(batch, tb_max, num_tc):
    """Pick (batch tile tb, padded batch bp)."""
    bp8 = _round_up(max(batch, 8), 8)
    if num_tc <= 1 or bp8 <= 16:
        # Single TensorCore: the grid is a serial loop, so splitting only adds
        # ~0.35us/step overhead -> one big tile when the whole batch fits.
        tb = min(tb_max, bp8)
    else:
        # v7x megacore: >= 2 grid steps so both TensorCores get work; prefer
        # MXU-aligned (256-row) tiles when the batch is big enough.
        tb = min(tb_max, _round_up(pl.cdiv(bp8, 2), 8))
        if tb > 256:
            tb = min(tb_max, _round_up(tb, 256))
    bp = _round_up(bp8, tb)
    steps = bp // tb
    if num_tc > 1 and steps > 1 and steps % 2 == 1:
        bp = tb * (steps + 1)  # even step count -> equal TensorCore split
    return tb, bp


def augmented_proba_kernel(x_ref, enc_w_ref, enc_b_ref, *rest,
                           n_hidden, init_factor, matmul_dtype, encoder_dtype,
                           approx_reciprocal, unroll_layers):
    """One batch tile of the fused MLP + sin activations + scaled softmax."""
    if n_hidden > 0:
        hid_w_ref, hid_b_ref, dec_w_ref, dec_b_ref, out_ref = rest
    else:
        dec_w_ref, dec_b_ref, out_ref = rest

    # Encoder: sin(x @ W_enc + b_enc).  Weights already arrive in
    # encoder_dtype (pre-cast in the wrapper); only the small streamed x tile
    # is cast here.  f32 accumulation via preferred_element_type.
    y = jnp.sin(
        jnp.dot(x_ref[...].astype(encoder_dtype), enc_w_ref[...],
                preferred_element_type=jnp.float32)
        + enc_b_ref[...])

    def layer(y, w, b):
        return jnp.sin(
            jnp.dot(y.astype(matmul_dtype), w,
                    preferred_element_type=jnp.float32) + b)

    if n_hidden > 0:
        if unroll_layers:
            for i in range(n_hidden):
                y = layer(y, hid_w_ref[i], hid_b_ref[i])
        else:
            # Deep nets: fori_loop bounds vreg live ranges and code size.
            y = lax.fori_loop(
                0, n_hidden,
                lambda i, y: layer(y, hid_w_ref[i], hid_b_ref[i]), y)

    # Decoder logits.  Padded output lanes carry a -1e30 bias (set once in the
    # wrapper), so exp() flushes them to 0: no in-kernel masking work.
    logits = (jnp.dot(y.astype(matmul_dtype), dec_w_ref[...],
                      preferred_element_type=jnp.float32)
              + dec_b_ref[...])

    # softmax over last dim, scaled by init_factor (folded into the per-row
    # scale).  Approx reciprocal runs on the otherwise-idle EUP slot.
    m = jnp.max(logits, axis=-1, keepdims=True)
    e = jnp.exp(logits - m)
    denom = jnp.sum(e, axis=-1, keepdims=True)
    if approx_reciprocal:
        scale = init_factor * pl.reciprocal(denom, approx=True)
    else:
        scale = init_factor / denom
    out_ref[...] = (e * scale).astype(out_ref.dtype)


def augmented_proba_i(x, params, *, nb_hidden_layers, init_factor,
                      tb_max=512, matmul_dtype=jnp.bfloat16,
                      encoder_dtype=jnp.float32, approx_reciprocal=True):
    B, input_dim = x.shape
    d_model = params["enc_w"].shape[1]
    output_dim = params["dec_w"].shape[1]
    L = nb_hidden_layers - 1

    # Lane-dense (multiple-of-128) hidden/output feature dims.  x is NOT
    # lane-padded: its block last dim equals the full array dim (legal), so we
    # don't materialize or stream a 128/input_dim-times larger x.
    d_p = _round_up(d_model, 128)
    out_p = _round_up(output_dim, 128)

    num_tc = _num_tensorcores()
    tb, bp = _choose_batch_tiling(B, tb_max, num_tc)
    grid = (bp // tb,)

    xp = _pad_to(x, (bp, input_dim))

    # Pre-cast weights once in the wrapper (bf16 by default): removes all
    # per-step in-kernel casts and halves weight DMA bytes / resident VMEM.
    enc_w = _pad_to(params["enc_w"], (input_dim, d_p)).astype(encoder_dtype)
    enc_b = _pad_to(params["enc_b"].reshape(1, -1), (1, d_p)).astype(jnp.float32)
    dec_w = _pad_to(params["dec_w"], (d_p, out_p)).astype(matmul_dtype)
    # -1e30 in the padded decoder-bias lanes -> padded logits = -1e30 ->
    # exp() == 0, so the softmax ignores them with zero per-step mask work.
    dec_b = params["dec_b"].reshape(1, -1).astype(jnp.float32)
    if out_p != output_dim:
        dec_b = jnp.pad(dec_b, ((0, 0), (0, out_p - output_dim)),
                        constant_values=-1e30)

    args = [xp, enc_w, enc_b]
    if L > 0:
        hid_w = _pad_to(params["hid_w"], (L, d_p, d_p)).astype(matmul_dtype)
        hid_b = _pad_to(params["hid_b"].reshape(L, 1, -1),
                        (L, 1, d_p)).astype(jnp.float32)
        args += [hid_w, hid_b]
    args += [dec_w, dec_b]

    # Explicit VMEM budget: resident weights (sized for the double-buffered
    # fallback), double-buffered x / out tiles, plus activation temporaries.
    def nbytes(a):
        return int(a.size) * a.dtype.itemsize

    weight_bytes = sum(nbytes(a) for a in args[1:])
    x_tile_bytes = tb * input_dim * xp.dtype.itemsize
    out_tile_bytes = tb * out_p * x.dtype.itemsize
    act_bytes = 4 * tb * d_p * 4
    vmem_limit = int(1.25 * (2 * weight_bytes
                             + 2 * (x_tile_bytes + out_tile_bytes)
                             + act_bytes)) + (8 << 20)
    vmem_limit = max(32 << 20, min(vmem_limit, 100 << 20))

    kernel = functools.partial(
        augmented_proba_kernel,
        n_hidden=L,
        init_factor=float(init_factor),
        matmul_dtype=matmul_dtype,
        encoder_dtype=encoder_dtype,
        approx_reciprocal=approx_reciprocal,
        unroll_layers=(L <= 4),
    )

    def make_call(single_buffer_weights):
        # Grid-invariant weight/bias blocks: constant index_map -> fetched
        # once; single-buffering them halves their VMEM allocation.
        wkw = ({"pipeline_mode": pl.Buffered(1)}
               if single_buffer_weights else {})
        in_specs = [
            pl.BlockSpec((tb, input_dim), lambda i: (i, 0)),          # x tile
            pl.BlockSpec((input_dim, d_p), lambda i: (0, 0), **wkw),  # enc W
            pl.BlockSpec((1, d_p), lambda i: (0, 0), **wkw),          # enc b
        ]
        if L > 0:
            in_specs += [
                pl.BlockSpec((L, d_p, d_p), lambda i: (0, 0, 0), **wkw),
                pl.BlockSpec((L, 1, d_p), lambda i: (0, 0, 0), **wkw),
            ]
        in_specs += [
            pl.BlockSpec((d_p, out_p), lambda i: (0, 0), **wkw),      # dec W
            pl.BlockSpec((1, out_p), lambda i: (0, 0), **wkw),        # dec b
        ]
        return pl.pallas_call(
            kernel,
            out_shape=jax.ShapeDtypeStruct((bp, out_p), x.dtype),
            grid=grid,
            in_specs=in_specs,
            out_specs=pl.BlockSpec((tb, out_p), lambda i: (i, 0)),
            compiler_params=pltpu.CompilerParams(
                dimension_semantics=("parallel",),
                vmem_limit_bytes=vmem_limit),
        )

    try:
        out = make_call(True)(*args)
    except Exception:
        # Fallback for jax versions without BlockSpec pipeline_mode support.
        out = make_call(False)(*args)

    # Slice off batch / output-lane padding.
    return out[:B, :output_dim]


def init_params(key, input_dim, d_model, output_dim, nb_hidden_layers):
    """Deterministic synthetic params (torch.nn.Linear-style uniform init)."""
    L = max(nb_hidden_layers - 1, 1)
    ks = jax.random.split(key, 6)

    def uni(k, shape, fan_in):
        bound = 1.0 / jnp.sqrt(float(fan_in))
        return jax.random.uniform(k, shape, jnp.float32, -bound, bound)

    return {
        "enc_w": uni(ks[0], (input_dim, d_model), input_dim),
        "enc_b": uni(ks[1], (1, d_model), input_dim),
        "hid_w": uni(ks[2], (L, d_model, d_model), d_model),
        "hid_b": uni(ks[3], (L, 1, d_model), d_model),
        "dec_w": uni(ks[4], (d_model, output_dim), d_model),
        "dec_b": uni(ks[5], (1, output_dim), d_model),
    }


def reference_forward(x, params, nb_hidden_layers, init_factor):
    y = jnp.sin(x @ params["enc_w"] + params["enc_b"])
    for i in range(nb_hidden_layers - 1):
        y = jnp.sin(y @ params["hid_w"][i] + params["hid_b"][i])
    logits = y @ params["dec_w"] + params["dec_b"]
    return init_factor * jax.nn.softmax(logits, axis=-1)


if __name__ == "__main__":
    # Small shapes consistent with the module's forward.
    batch = 16
    input_dim = 4
    d_model = 32
    output_dim = 8
    nb_hidden_layers = 3
    init_factor = 0.5

    key = jax.random.PRNGKey(0)
    kx, kp = jax.random.split(key)
    x = jax.random.normal(kx, (batch, input_dim), jnp.float32)
    params = init_params(kp, input_dim, d_model, output_dim, nb_hidden_layers)

    ref = reference_forward(x, params, nb_hidden_layers, init_factor)

    # Default fast path: bf16 hidden/decoder matmuls (f32 accumulation), f32
    # encoder, EUP approximate reciprocal in the softmax.
    out = augmented_proba_i(
        x, params,
        nb_hidden_layers=nb_hidden_layers,
        init_factor=init_factor,
    )
    out = jax.block_until_ready(out)
    assert out.shape == (batch, output_dim)
    assert jnp.allclose(out, ref, atol=2e-2, rtol=2e-2), (
        float(jnp.max(jnp.abs(out - ref))))

    # Full-f32, exact-reciprocal path for a tight numeric check.
    out_f32 = augmented_proba_i(
        x, params,
        nb_hidden_layers=nb_hidden_layers,
        init_factor=init_factor,
        matmul_dtype=jnp.float32,
        approx_reciprocal=False,
    )
    out_f32 = jax.block_until_ready(out_f32)
    assert jnp.allclose(out_f32, ref, atol=1e-5, rtol=1e-5), (
        float(jnp.max(jnp.abs(out_f32 - ref))))

    print("KERNEL_OK")
</pallas_src>

<mosaic_0001>
module attributes {stable_mosaic.version = 11 : i64} {
  func.func @augmented_proba_kernel(%arg0: i32, %arg1: memref<16x4xf32, #tpu.memory_space<vmem>>, %arg2: memref<4x128xf32, #tpu.memory_space<vmem>>, %arg3: memref<1x128xf32, #tpu.memory_space<vmem>>, %arg4: memref<2x128x128xbf16, #tpu.memory_space<vmem>>, %arg5: memref<2x1x128xf32, #tpu.memory_space<vmem>>, %arg6: memref<128x128xbf16, #tpu.memory_space<vmem>>, %arg7: memref<1x128xf32, #tpu.memory_space<vmem>>, %arg8: memref<16x128xf32, #tpu.memory_space<vmem>>) attributes {dimension_semantics = [#tpu.dimension_semantics<parallel>], iteration_bounds = array<i64: 1>, scalar_prefetch = 0 : i64, scratch_operands = 0 : i64, tpu.core_type = #tpu.core_type<tc>, window_params = [{transform_indices = @transform_0, window_bounds = array<i64: 16, 4>}, {pipeline_mode = #tpu.pipeline_mode<synchronous>, transform_indices = @transform_1, window_bounds = array<i64: 4, 128>}, {pipeline_mode = #tpu.pipeline_mode<synchronous>, transform_indices = @transform_2, window_bounds = array<i64: 1, 128>}, {pipeline_mode = #tpu.pipeline_mode<synchronous>, transform_indices = @transform_3, window_bounds = array<i64: 2, 128, 128>}, {pipeline_mode = #tpu.pipeline_mode<synchronous>, transform_indices = @transform_4, window_bounds = array<i64: 2, 1, 128>}, {pipeline_mode = #tpu.pipeline_mode<synchronous>, transform_indices = @transform_5, window_bounds = array<i64: 128, 128>}, {pipeline_mode = #tpu.pipeline_mode<synchronous>, transform_indices = @transform_6, window_bounds = array<i64: 1, 128>}, {transform_indices = @transform_7, window_bounds = array<i64: 16, 128>}]} {
    %c0 = arith.constant 0 : index
    %c0_0 = arith.constant 0 : index
    %0 = vector.load %arg1[%c0, %c0_0] : memref<16x4xf32, #tpu.memory_space<vmem>>, vector<16x4xf32>
    %c0_1 = arith.constant 0 : index
    %c0_2 = arith.constant 0 : index
    %1 = vector.load %arg2[%c0_1, %c0_2] : memref<4x128xf32, #tpu.memory_space<vmem>>, vector<4x128xf32>
    %cst = arith.constant dense<0.000000e+00> : vector<16x128xf32>
    %2 = tpu.matmul %0, %1, %cst {dimension_numbers = #tpu.dot_dimension_numbers<[1], [0], [0], [1], [0, 0, 1, 1], [], []>} : vector<16x4xf32>, vector<4x128xf32>, vector<16x128xf32> -> vector<16x128xf32>
    %c0_3 = arith.constant 0 : index
    %c0_4 = arith.constant 0 : index
    %3 = vector.load %arg3[%c0_3, %c0_4] : memref<1x128xf32, #tpu.memory_space<vmem>>, vector<1x128xf32>
    %4 = vector.broadcast %3 : vector<1x128xf32> to vector<16x128xf32>
    %5 = arith.addf %2, %4 : vector<16x128xf32>
    %6 = math.sin %5 : vector<16x128xf32>
    %c0_5 = arith.constant 0 : index
    %c0_6 = arith.constant 0 : index
    %c0_7 = arith.constant 0 : index
    %7 = vector.load %arg4[%c0_5, %c0_6, %c0_7] : memref<2x128x128xbf16, #tpu.memory_space<vmem>>, vector<1x128x128xbf16>
    %8 = vector.shape_cast %7 : vector<1x128x128xbf16> to vector<128x128xbf16>
    %c0_8 = arith.constant 0 : index
    %c0_9 = arith.constant 0 : index
    %c0_10 = arith.constant 0 : index
    %9 = vector.load %arg5[%c0_8, %c0_9, %c0_10] : memref<2x1x128xf32, #tpu.memory_space<vmem>>, vector<1x1x128xf32>
    %10 = vector.shape_cast %9 : vector<1x1x128xf32> to vector<1x128xf32>
    %11 = arith.truncf %6 : vector<16x128xf32> to vector<16x128xbf16>
    %cst_11 = arith.constant dense<0.000000e+00> : vector<16x128xf32>
    %12 = tpu.matmul %11, %8, %cst_11 {dimension_numbers = #tpu.dot_dimension_numbers<[1], [0], [0], [1], [0, 0, 1, 1], [], []>} : vector<16x128xbf16>, vector<128x128xbf16>, vector<16x128xf32> -> vector<16x128xf32>
    %13 = vector.broadcast %10 : vector<1x128xf32> to vector<16x128xf32>
    %14 = arith.addf %12, %13 : vector<16x128xf32>
    %15 = math.sin %14 : vector<16x128xf32>
    %c1 = arith.constant 1 : index
    %c0_12 = arith.constant 0 : index
    %c0_13 = arith.constant 0 : index
    %16 = vector.load %arg4[%c1, %c0_12, %c0_13] : memref<2x128x128xbf16, #tpu.memory_space<vmem>>, vector<1x128x128xbf16>
    %17 = vector.shape_cast %16 : vector<1x128x128xbf16> to vector<128x128xbf16>
    %c1_14 = arith.constant 1 : index
    %c0_15 = arith.constant 0 : index
    %c0_16 = arith.constant 0 : index
    %18 = vector.load %arg5[%c1_14, %c0_15, %c0_16] : memref<2x1x128xf32, #tpu.memory_space<vmem>>, vector<1x1x128xf32>
    %19 = vector.shape_cast %18 : vector<1x1x128xf32> to vector<1x128xf32>
    %20 = arith.truncf %15 : vector<16x128xf32> to vector<16x128xbf16>
    %cst_17 = arith.constant dense<0.000000e+00> : vector<16x128xf32>
    %21 = tpu.matmul %20, %17, %cst_17 {dimension_numbers = #tpu.dot_dimension_numbers<[1], [0], [0], [1], [0, 0, 1, 1], [], []>} : vector<16x128xbf16>, vector<128x128xbf16>, vector<16x128xf32> -> vector<16x128xf32>
    %22 = vector.broadcast %19 : vector<1x128xf32> to vector<16x128xf32>
    %23 = arith.addf %21, %22 : vector<16x128xf32>
    %24 = math.sin %23 : vector<16x128xf32>
    %25 = arith.truncf %24 : vector<16x128xf32> to vector<16x128xbf16>
    %c0_18 = arith.constant 0 : index
    %c0_19 = arith.constant 0 : index
    %26 = vector.load %arg6[%c0_18, %c0_19] : memref<128x128xbf16, #tpu.memory_space<vmem>>, vector<128x128xbf16>
    %cst_20 = arith.constant dense<0.000000e+00> : vector<16x128xf32>
    %27 = tpu.matmul %25, %26, %cst_20 {dimension_numbers = #tpu.dot_dimension_numbers<[1], [0], [0], [1], [0, 0, 1, 1], [], []>} : vector<16x128xbf16>, vector<128x128xbf16>, vector<16x128xf32> -> vector<16x128xf32>
    %c0_21 = arith.constant 0 : index
    %c0_22 = arith.constant 0 : index
    %28 = vector.load %arg7[%c0_21, %c0_22] : memref<1x128xf32, #tpu.memory_space<vmem>>, vector<1x128xf32>
    %29 = vector.broadcast %28 : vector<1x128xf32> to vector<16x128xf32>
    %30 = arith.addf %27, %29 : vector<16x128xf32>
    %cst_23 = arith.constant dense<0xFF800000> : vector<16xf32>
    %31 = vector.multi_reduction <maximumf>, %30, %cst_23 [1] : vector<16x128xf32> to vector<16xf32>
    %32 = vector.shape_cast %31 : vector<16xf32> to vector<16x1xf32>
    %33 = vector.broadcast %32 : vector<16x1xf32> to vector<16x128xf32>
    %34 = arith.subf %30, %33 : vector<16x128xf32>
    %35 = math.exp %34 : vector<16x128xf32>
    %cst_24 = arith.constant dense<0.000000e+00> : vector<16xf32>
    %36 = vector.multi_reduction <add>, %35, %cst_24 [1] : vector<16x128xf32> to vector<16xf32>
    %37 = vector.shape_cast %36 : vector<16xf32> to vector<16x1xf32>
    %38 = tpu.reciprocal %37 {approx = true} : vector<16x1xf32> -> vector<16x1xf32>
    %cst_25 = arith.constant 5.000000e-01 : f32
    %39 = vector.broadcast %cst_25 : f32 to vector<16x1xf32>
    %40 = arith.mulf %39, %38 : vector<16x1xf32>
    %41 = vector.broadcast %40 : vector<16x1xf32> to vector<16x128xf32>
    %42 = arith.mulf %35, %41 : vector<16x128xf32>
    %c0_26 = arith.constant 0 : index
    %c0_27 = arith.constant 0 : index
    %43 = vector.load %arg8[%c0_26, %c0_27] : memref<16x128xf32, #tpu.memory_space<vmem>>, vector<16x128xf32>
    tpu.vector_store %arg8[%c0_26, %c0_27], %42 {strides = array<i32>} : memref<16x128xf32, #tpu.memory_space<vmem>>, vector<16x128xf32>,
    return
  }
  func.func @transform_0(%arg0: i32) -> (i32, i32) {
    %c0_i32 = arith.constant 0 : i32
    %c0_i32_0 = arith.constant 0 : i32
    return %arg0, %c0_i32 : i32, i32
  }
  func.func @transform_1(%arg0: i32) -> (i32, i32) {
    %c0_i32 = arith.constant 0 : i32
    %c0_i32_0 = arith.constant 0 : i32
    %c0_i32_1 = arith.constant 0 : i32
    return %c0_i32, %c0_i32_0 : i32, i32
  }
  func.func @transform_2(%arg0: i32) -> (i32, i32) {
    %c0_i32 = arith.constant 0 : i32
    %c0_i32_0 = arith.constant 0 : i32
    %c0_i32_1 = arith.constant 0 : i32
    return %c0_i32, %c0_i32_0 : i32, i32
  }
  func.func @transform_3(%arg0: i32) -> (i32, i32, i32) {
    %c0_i32 = arith.constant 0 : i32
    %c0_i32_0 = arith.constant 0 : i32
    %c0_i32_1 = arith.constant 0 : i32
    %c0_i32_2 = arith.constant 0 : i32
    return %c0_i32, %c0_i32_0, %c0_i32_1 : i32, i32, i32
  }
  func.func @transform_4(%arg0: i32) -> (i32, i32, i32) {
    %c0_i32 = arith.constant 0 : i32
    %c0_i32_0 = arith.constant 0 : i32
    %c0_i32_1 = arith.constant 0 : i32
    %c0_i32_2 = arith.constant 0 : i32
    return %c0_i32, %c0_i32_0, %c0_i32_1 : i32, i32, i32
  }
  func.func @transform_5(%arg0: i32) -> (i32, i32) {
    %c0_i32 = arith.constant 0 : i32
    %c0_i32_0 = arith.constant 0 : i32
    %c0_i32_1 = arith.constant 0 : i32
    return %c0_i32, %c0_i32_0 : i32, i32
  }
  func.func @transform_6(%arg0: i32) -> (i32, i32) {
    %c0_i32 = arith.constant 0 : i32
    %c0_i32_0 = arith.constant 0 : i32
    %c0_i32_1 = arith.constant 0 : i32
    return %c0_i32, %c0_i32_0 : i32, i32
  }
  func.func @transform_7(%arg0: i32) -> (i32, i32) {
    %c0_i32 = arith.constant 0 : i32
    %c0_i32_0 = arith.constant 0 : i32
    return %arg0, %c0_i32 : i32, i32
  }
}

module attributes {stable_mosaic.version = 11 : i64} {
  func.func @augmented_proba_kernel(%arg0: i32, %arg1: memref<16x4xf32, #tpu.memory_space<vmem>>, %arg2: memref<4x128xf32, #tpu.memory_space<vmem>>, %arg3: memref<1x128xf32, #tpu.memory_space<vmem>>, %arg4: memref<2x128x128xbf16, #tpu.memory_space<vmem>>, %arg5: memref<2x1x128xf32, #tpu.memory_space<vmem>>, %arg6: memref<128x128xbf16, #tpu.memory_space<vmem>>, %arg7: memref<1x128xf32, #tpu.memory_space<vmem>>, %arg8: memref<16x128xf32, #tpu.memory_space<vmem>>) attributes {dimension_semantics = [#tpu.dimension_semantics<parallel>], iteration_bounds = array<i64: 1>, scalar_prefetch = 0 : i64, scratch_operands = 0 : i64, tpu.core_type = #tpu.core_type<tc>, window_params = [{transform_indices = @transform_0, window_bounds = array<i64: 16, 4>}, {pipeline_mode = #tpu.pipeline_mode<synchronous>, transform_indices = @transform_1, window_bounds = array<i64: 4, 128>}, {pipeline_mode = #tpu.pipeline_mode<synchronous>, transform_indices = @transform_2, window_bounds = array<i64: 1, 128>}, {pipeline_mode = #tpu.pipeline_mode<synchronous>, transform_indices = @transform_3, window_bounds = array<i64: 2, 128, 128>}, {pipeline_mode = #tpu.pipeline_mode<synchronous>, transform_indices = @transform_4, window_bounds = array<i64: 2, 1, 128>}, {pipeline_mode = #tpu.pipeline_mode<synchronous>, transform_indices = @transform_5, window_bounds = array<i64: 128, 128>}, {pipeline_mode = #tpu.pipeline_mode<synchronous>, transform_indices = @transform_6, window_bounds = array<i64: 1, 128>}, {transform_indices = @transform_7, window_bounds = array<i64: 16, 128>}]} {
    %c0 = arith.constant 0 : index
    %c0_0 = arith.constant 0 : index
    %0 = vector.load %arg1[%c0, %c0_0] : memref<16x4xf32, #tpu.memory_space<vmem>>, vector<16x4xf32>
    %c0_1 = arith.constant 0 : index
    %c0_2 = arith.constant 0 : index
    %1 = vector.load %arg2[%c0_1, %c0_2] : memref<4x128xf32, #tpu.memory_space<vmem>>, vector<4x128xf32>
    %cst = arith.constant dense<0.000000e+00> : vector<16x128xf32>
    %2 = tpu.matmul %0, %1, %cst {dimension_numbers = #tpu.dot_dimension_numbers<[1], [0], [0], [1], [0, 0, 1, 1], [], []>} : vector<16x4xf32>, vector<4x128xf32>, vector<16x128xf32> -> vector<16x128xf32>
    %c0_3 = arith.constant 0 : index
    %c0_4 = arith.constant 0 : index
    %3 = vector.load %arg3[%c0_3, %c0_4] : memref<1x128xf32, #tpu.memory_space<vmem>>, vector<1x128xf32>
    %4 = vector.broadcast %3 : vector<1x128xf32> to vector<16x128xf32>
    %5 = arith.addf %2, %4 : vector<16x128xf32>
    %6 = math.sin %5 : vector<16x128xf32>
    %c0_5 = arith.constant 0 : index
    %c0_6 = arith.constant 0 : index
    %c0_7 = arith.constant 0 : index
    %7 = vector.load %arg4[%c0_5, %c0_6, %c0_7] : memref<2x128x128xbf16, #tpu.memory_space<vmem>>, vector<1x128x128xbf16>
    %8 = vector.shape_cast %7 : vector<1x128x128xbf16> to vector<128x128xbf16>
    %c0_8 = arith.constant 0 : index
    %c0_9 = arith.constant 0 : index
    %c0_10 = arith.constant 0 : index
    %9 = vector.load %arg5[%c0_8, %c0_9, %c0_10] : memref<2x1x128xf32, #tpu.memory_space<vmem>>, vector<1x1x128xf32>
    %10 = vector.shape_cast %9 : vector<1x1x128xf32> to vector<1x128xf32>
    %11 = arith.truncf %6 : vector<16x128xf32> to vector<16x128xbf16>
    %cst_11 = arith.constant dense<0.000000e+00> : vector<16x128xf32>
    %12 = tpu.matmul %11, %8, %cst_11 {dimension_numbers = #tpu.dot_dimension_numbers<[1], [0], [0], [1], [0, 0, 1, 1], [], []>} : vector<16x128xbf16>, vector<128x128xbf16>, vector<16x128xf32> -> vector<16x128xf32>
    %13 = vector.broadcast %10 : vector<1x128xf32> to vector<16x128xf32>
    %14 = arith.addf %12, %13 : vector<16x128xf32>
    %15 = math.sin %14 : vector<16x128xf32>
    %c1 = arith.constant 1 : index
    %c0_12 = arith.constant 0 : index
    %c0_13 = arith.constant 0 : index
    %16 = vector.load %arg4[%c1, %c0_12, %c0_13] : memref<2x128x128xbf16, #tpu.memory_space<vmem>>, vector<1x128x128xbf16>
    %17 = vector.shape_cast %16 : vector<1x128x128xbf16> to vector<128x128xbf16>
    %c1_14 = arith.constant 1 : index
    %c0_15 = arith.constant 0 : index
    %c0_16 = arith.constant 0 : index
    %18 = vector.load %arg5[%c1_14, %c0_15, %c0_16] : memref<2x1x128xf32, #tpu.memory_space<vmem>>, vector<1x1x128xf32>
    %19 = vector.shape_cast %18 : vector<1x1x128xf32> to vector<1x128xf32>
    %20 = arith.truncf %15 : vector<16x128xf32> to vector<16x128xbf16>
    %cst_17 = arith.constant dense<0.000000e+00> : vector<16x128xf32>
    %21 = tpu.matmul %20, %17, %cst_17 {dimension_numbers = #tpu.dot_dimension_numbers<[1], [0], [0], [1], [0, 0, 1, 1], [], []>} : vector<16x128xbf16>, vector<128x128xbf16>, vector<16x128xf32> -> vector<16x128xf32>
    %22 = vector.broadcast %19 : vector<1x128xf32> to vector<16x128xf32>
    %23 = arith.addf %21, %22 : vector<16x128xf32>
    %24 = math.sin %23 : vector<16x128xf32>
    %25 = arith.truncf %24 : vector<16x128xf32> to vector<16x128xbf16>
    %c0_18 = arith.constant 0 : index
    %c0_19 = arith.constant 0 : index
    %26 = vector.load %arg6[%c0_18, %c0_19] : memref<128x128xbf16, #tpu.memory_space<vmem>>, vector<128x128xbf16>
    %cst_20 = arith.constant dense<0.000000e+00> : vector<16x128xf32>
    %27 = tpu.matmul %25, %26, %cst_20 {dimension_numbers = #tpu.dot_dimension_numbers<[1], [0], [0], [1], [0, 0, 1, 1], [], []>} : vector<16x128xbf16>, vector<128x128xbf16>, vector<16x128xf32> -> vector<16x128xf32>
    %c0_21 = arith.constant 0 : index
    %c0_22 = arith.constant 0 : index
    %28 = vector.load %arg7[%c0_21, %c0_22] : memref<1x128xf32, #tpu.memory_space<vmem>>, vector<1x128xf32>
    %29 = vector.broadcast %28 : vector<1x128xf32> to vector<16x128xf32>
    %30 = arith.addf %27, %29 : vector<16x128xf32>
    %cst_23 = arith.constant dense<0xFF800000> : vector<16xf32>
    %31 = vector.multi_reduction <maximumf>, %30, %cst_23 [1] : vector<16x128xf32> to vector<16xf32>
    %32 = vector.shape_cast %31 : vector<16xf32> to vector<16x1xf32>
    %33 = vector.broadcast %32 : vector<16x1xf32> to vector<16x128xf32>
    %34 = arith.subf %30, %33 : vector<16x128xf32>
    %35 = math.exp %34 : vector<16x128xf32>
    %cst_24 = arith.constant dense<0.000000e+00> : vector<16xf32>
    %36 = vector.multi_reduction <add>, %35, %cst_24 [1] : vector<16x128xf32> to vector<16xf32>
    %37 = vector.shape_cast %36 : vector<16xf32> to vector<16x1xf32>
    %38 = tpu.reciprocal %37 {approx = true} : vector<16x1xf32> -> vector<16x1xf32>
    %cst_25 = arith.constant 5.000000e-01 : f32
    %39 = vector.broadcast %cst_25 : f32 to vector<16x1xf32>
    %40 = arith.mulf %39, %38 : vector<16x1xf32>
    %41 = vector.broadcast %40 : vector<16x1xf32> to vector<16x128xf32>
    %42 = arith.mulf %35, %41 : vector<16x128xf32>
    %c0_26 = arith.constant 0 : index
    %c0_27 = arith.constant 0 : index
    %43 = vector.load %arg8[%c0_26, %c0_27] : memref<16x128xf32, #tpu.memory_space<vmem>>, vector<16x128xf32>
    tpu.vector_store %arg8[%c0_26, %c0_27], %42 {strides = array<i32>} : memref<16x128xf32, #tpu.memory_space<vmem>>, vector<16x128xf32>,
    return
  }
  func.func @transform_0(%arg0: i32) -> (i32, i32) {
    %c0_i32 = arith.constant 0 : i32
    %c0_i32_0 = arith.constant 0 : i32
    return %arg0, %c0_i32 : i32, i32
  }
  func.func @transform_1(%arg0: i32) -> (i32, i32) {
    %c0_i32 = arith.constant 0 : i32
    %c0_i32_0 = arith.constant 0 : i32
    %c0_i32_1 = arith.constant 0 : i32
    return %c0_i32, %c0_i32_0 : i32, i32
  }
  func.func @transform_2(%arg0: i32) -> (i32, i32) {
    %c0_i32 = arith.constant 0 : i32
    %c0_i32_0 = arith.constant 0 : i32
    %c0_i32_1 = arith.constant 0 : i32
    return %c0_i32, %c0_i32_0 : i32, i32
  }
  func.func @transform_3(%arg0: i32) -> (i32, i32, i32) {
    %c0_i32 = arith.constant 0 : i32
    %c0_i32_0 = arith.constant 0 : i32
    %c0_i32_1 = arith.constant 0 : i32
    %c0_i32_2 = arith.constant 0 : i32
    return %c0_i32, %c0_i32_0, %c0_i32_1 : i32, i32, i32
  }
  func.func @transform_4(%arg0: i32) -> (i32, i32, i32) {
    %c0_i32 = arith.constant 0 : i32
    %c0_i32_0 = arith.constant 0 : i32
    %c0_i32_1 = arith.constant 0 : i32
    %c0_i32_2 = arith.constant 0 : i32
    return %c0_i32, %c0_i32_0, %c0_i32_1 : i32, i32, i32
  }
  func.func @transform_5(%arg0: i32) -> (i32, i32) {
    %c0_i32 = arith.constant 0 : i32
    %c0_i32_0 = arith.constant 0 : i32
    %c0_i32_1 = arith.constant 0 : i32
    return %c0_i32, %c0_i32_0 : i32, i32
  }
  func.func @transform_6(%arg0: i32) -> (i32, i32) {
    %c0_i32 = arith.constant 0 : i32
    %c0_i32_0 = arith.constant 0 : i32
    %c0_i32_1 = arith.constant 0 : i32
    return %c0_i32, %c0_i32_0 : i32, i32
  }
  func.func @transform_7(%arg0: i32) -> (i32, i32) {
    %c0_i32 = arith.constant 0 : i32
    %c0_i32_0 = arith.constant 0 : i32
    return %arg0, %c0_i32 : i32, i32
  }
}

</mosaic_0001>

<bundles_post_ra>
// kernel: tpu_custom_call.1
= control target key start
LH: loop header
LB: loop body
LE: loop exit
PB: predicated region body
PF: predicated region fallthrough
CT: control target
= control target key end

     0   :  { %12 = vsyncpa [#allocation3], 0  ;;  %s2223_s0 = inlined_call_operand.vmem [shape: f32[16,4], index: 0, kind: input, shape index: {}]   ;;  %s2224_s1 = inlined_call_operand.vmem [shape: f32[4,128], index: 1, kind: input, shape index: {}]   ;;  %s2225_s2 = inlined_call_operand.vmem [shape: f32[1,128], index: 2, kind: input, shape index: {}]   ;;  %s2226_s3 = inlined_call_operand.hbm [shape: bf16[2,128,128], index: 3, kind: input, shape index: {}]   ;;  %s2227_s4 = inlined_call_operand.vmem [shape: f32[2,1,128], index: 4, kind: input, shape index: {}]   ;;  %s2228_s5 = inlined_call_operand.hbm [shape: bf16[128,128], index: 5, kind: input, shape index: {}]   ;;  %s2229_s6 = inlined_call_operand.vmem [shape: f32[1,128], index: 6, kind: input, shape index: {}]   ;;  %s2230_s7 = inlined_call_operand.hbm [shape: f32[16,128], index: 7, kind: output, shape index: {}]  }
   0x1   :  { %13 = vsyncpa [#allocation6], 0 }
   0x2   :  { %14 = vsyncpa [#allocation4], 0  ;;  %s25_s26 = sshll.u32 %s2226_s3, 4  ;;  %s1569_s27 = smov [#allocation2]   ;;  %s26_s26 = int_to_ptr.hbm [resolvable:$true] %s25_s26 }
   0x3   :  { %s27_s28 = sshll.u32 %s1569_s27, 4  ;;  %s40_s8 = sshll.u32 %s2228_s5, 4  ;;  %s28_s28 = int_to_ptr.vmem [resolvable:$true] %s27_s28  ;;  %s41_s8 = int_to_ptr.hbm [resolvable:$true] %s40_s8 }
   0x4   :  { %s1570_s9 = smov 64   ;;  %s1571_s10 = smov 4  }
   0x5   :  { %33 = dma.hbm_to_vmem [thread:$0]  %s26_s26, 2048, %s28_s28, [#allocation3], %s1570_s9, %s1570_s9, %s1571_s10  }
   0x6   :  { %s1572_s11 = smov [#allocation5]  }
   0x7   :  { %s42_s12 = sshll.u32 %s1572_s11, 4  ;;  %s43_s12 = int_to_ptr.vmem [resolvable:$true] %s42_s12 }
   0x8   :  { %48 = dma.hbm_to_vmem [thread:$0]  %s41_s8, 1024, %s43_s12, [#allocation6], %s1570_s9, %s1570_s9, %s1571_s10  }
   0x9   :  { %1563 = dma.done.wait [#allocation3], 2048  }
   0xa   :  { %1564 = vsyncadd [#allocation3], 4294965248 }
   0xb   :  { %1565 = dma.done.wait [#allocation6], 1024  }
   0xc   :  { %1566 = vsyncadd [#allocation6], 4294966272  ;;  %vm73_vm0 = vcmask 1043456   ;;  %vm66_vm1 = vcmask 31744   ;;  %v61_v0 = vld [vmem:[%s2224_s1] sm:$0xf] }
   0xd   :  { %v59_v1 = vld [vmem:[%s2223_s0] sm:$0xff]  ;;  %1323 = vmatpush.msk.msra.mxu0 %vm73_vm0, %v61_v0  ;;  %v60_v2 = vld [vmem:[%s2223_s0 + $0x8] sm:$0xff]  ;;  %v1448_v19 = vld [vmem:[#allocation2 + $0x38] sm:$0xff]  ;;  %v1573_v24 = vmov 683565275   ;;  %s1309_s24 = sshll.u32 %s2230_s7, 4  ;;  %s1310_s24 = int_to_ptr.hbm [resolvable:$true] %s1309_s24 }
   0xe   :  { %1324 = vmatmul.msk.f32.vlgmr.msra.gmra.mxu0 %vm66_vm1, %v59_v1  ;;  %v1479_v3 = vld [vmem:[%s2225_s2] ss:$0 sm:$0xff]  ;;  %v1574_v26 = vmov 2475754826   ;;  %479 = vmatpush.bf16.msra.mxu1 %v1448_v19  ;;  %v1447_v29 = vld [vmem:[#allocation2 + $0x30] sm:$0xff]  ;;  %v1446_v48 = vld [vmem:[#allocation2 + $0x28] sm:$0xff] }
   0xf   :  { %v1575_v31 = vmov 2131351028   ;;  %v1576_v34 = vmov 2102212464   ;;  %v1577_v37 = vmov 920167782  }
  0x10   :  { %v1578_v40 = vmov 1326507024   ;;  %v1445_v60 = vld [vmem:[#allocation2 + $0x20] sm:$0xff]  ;;  %s1581_s25 = smov 128   ;;  %s1582_s26 = smov 8  }
  0x12   :  { %480 = vmatpush.bf16.msra.mxu1 %v1447_v29 }
  0x16   :  { %1325 = vmatmul.msk.f32.gmra.mxu0 %vm66_vm1, %v60_v2  ;;  %481 = vmatpush.bf16.msra.mxu1 %v1446_v48 }
  0x1a   :  { %482 = vmatpush.bf16.msra.mxu1 %v1445_v60 }
  0x8b   :  { %v94_v4 = vpop.f32.mrf.mxu0 }
  0x8c   :  { %v1641_v5 = vadd.f32 %v1479_v3, %v94_v4 }
  0x8e   :  { %v100_v6 = vand.u32 2147483647, %v1641_v5  ;;  %v103_v7 = vand.u32 2139095040, %v1641_v5 }
  0x90   :  { %v104_v8 = vshrl.u32 %v103_v7, 23  ;;  %v107_v10 = vand.u32 8388607, %v100_v6 }
  0x92   :  { %v1326_v9 = vadd.s32 4294967169, %v104_v8  ;;  %v108_v14 = vor.u32 8388608, %v107_v10  ;;  %v1444_v10 = vld [vmem:[#allocation2 + $0x18] sm:$0xff] }
  0x93   :  { %v97_v11 = vpop.f32.mrf.mxu0  ;;  %483 = vmatpush.bf16.msra.mxu1 %v1444_v10 }
  0x94   :  { %v110_v12 = vadd.s32 1, %v1326_v9  ;;  %v1647_v13 = vadd.f32 %v1479_v3, %v97_v11  ;;  %v1651_v21 = vshll.u32 %v108_v14, 8 }
  0x96   :  { %vm111_vm2 = vcmp.gt.s32.totalorder %v110_v12, 0  ;;  %v255_v16 = vand.u32 2147483647, %v1647_v13  ;;  %v258_v17 = vand.u32 2139095040, %v1647_v13  ;;  %v1674_v63 = vand.u32 65535, %v1651_v21 }
  0x97   :  { %v112_v15 = vsel %vm111_vm2, %v110_v12, 0  ;;  %v150_v8 = vshrl.u32 %v1651_v21, 16 }
  0x98   :  { %v114_v18 = vand.u32 31, %v112_v15  ;;  %v259_v22 = vshrl.u32 %v258_v17, 23  ;;  %v113_v23 = vshrl.u32 %v112_v15, 5  ;;  %v262_v28 = vand.u32 8388607, %v255_v16 }
  0x9a   :  { %v115_v20 = vsub.s32 32, %v114_v18  ;;  %v117_v25 = vshll.u32 %v1573_v24, %v114_v18  ;;  %v120_v27 = vshll.u32 %v1574_v26, %v114_v18  ;;  %v123_v33 = vshll.u32 %v1575_v31, %v114_v18 }
  0x9b   :  { %v126_v36 = vshll.u32 %v1576_v34, %v114_v18  ;;  %v129_v39 = vshll.u32 %v1577_v37, %v114_v18  ;;  %v1329_v45 = vadd.s32 4294967169, %v259_v22  ;;  %vm132_vm3 = vcmp.lt.s32.totalorder %v113_v23, 1 }
  0x9c   :  { %v118_v30 = vshrl.u32 %v1574_v26, %v115_v20  ;;  %v121_v32 = vshrl.u32 %v1575_v31, %v115_v20  ;;  %v124_v35 = vshrl.u32 %v1576_v34, %v115_v20  ;;  %v127_v38 = vshrl.u32 %v1577_v37, %v115_v20 }
  0x9d   :  { %v130_v41 = vshrl.u32 %v1578_v40, %v115_v20  ;;  %vm135_vm4 = vcmp.lt.s32.totalorder %v113_v23, 4  ;;  %vm133_vm5 = vcmp.lt.s32.totalorder %v113_v23, 2  ;;  %vm134_vm6 = vcmp.lt.s32.totalorder %v113_v23, 3 }
  0x9e   :  { %v119_v42 = vor.u32 %v118_v30, %v117_v25  ;;  %v122_v43 = vor.u32 %v121_v32, %v120_v27  ;;  %v125_v44 = vor.u32 %v124_v35, %v123_v33  ;;  %v128_v46 = vor.u32 %v127_v38, %v126_v36  ;;  %v1443_v32 = vld [vmem:[#allocation2 + $0x10] sm:$0xff] }
  0x9f   :  { %v131_v47 = vor.u32 %v130_v41, %v129_v39  ;;  %v263_v53 = vor.u32 8388608, %v262_v28  ;;  %v265_v54 = vadd.s32 1, %v1329_v45  ;;  %v116_v55 = vshrl.u32 %v1573_v24, %v115_v20  ;;  %484 = vmatpush.bf16.msra.mxu1 %v1443_v32 }
  0xa0   :  { %v137_v49 = vsel %vm135_vm4, %v125_v44, 2102212464  ;;  %v144_v50 = vsel %vm132_vm3, %v122_v43, %v125_v44  ;;  %v141_v51 = vsel %vm135_vm4, %v128_v46, 920167782  ;;  %v140_v56 = vsel %vm132_vm3, %v119_v42, %v122_v43 }
  0xa1   :  { %v145_v52 = vsel %vm135_vm4, %v131_v47, 1326507024  ;;  %v142_v57 = vsel %vm134_vm6, %v125_v44, %v141_v51  ;;  %vm266_vm7 = vcmp.gt.s32.totalorder %v265_v54, 0  ;;  %v136_v61 = vsel %vm132_vm3, %v116_v55, %v119_v42 }
  0xa2   :  { %v146_v58 = vsel %vm134_vm6, %v128_v46, %v145_v52  ;;  %v138_v62 = vsel %vm134_vm6, %v122_v43, %v137_v49  ;;  %v1677_v1 = vsel %vm133_vm5, %v140_v56, %v142_v57  ;;  %v267_v3 = vsel %vm266_vm7, %v265_v54, 0 }
  0xa3   :  { %v147_v59 = vsel %vm133_vm5, %v144_v50, %v146_v58  ;;  %v1679_v4 = vshll.u32 %v263_v53, 8  ;;  %v269_v9 = vand.u32 31, %v267_v3  ;;  %v1686_v11 = vsel %vm133_vm5, %v136_v61, %v138_v62  ;;  %v1442_v50 = vld [vmem:[#allocation2 + $0x8] sm:$0xff] }
  0xa4   :  { %v152_v0 = vshrl.u32 %v147_v59, 16  ;;  %v151_v2 = vand.u32 65535, %v147_v59  ;;  %v173_v12 = vand.u32 65535, %v1677_v1  ;;  %v174_v14 = vshrl.u32 %v1677_v1, 16  ;;  %485 = vmatpush.bf16.msra.mxu1 %v1442_v50 }
  0xa5   :  { %v1691_v18 = vsub.s32 32, %v269_v9  ;;  %v1694_v19 = vand.u32 65535, %v1679_v4  ;;  %v1697_v22 = vshrl.u32 %v267_v3, 5  ;;  %v272_v23 = vshll.u32 %v1573_v24, %v269_v9 }
  0xa6   :  { %v1682_v7 = vmul.u32 %v152_v0, %v1674_v63  ;;  %v153_v15 = vmul.u32 %v151_v2, %v1674_v63  ;;  %v156_v17 = vmul.u32 %v152_v0, %v150_v8  ;;  %v275_v25 = vshll.u32 %v1574_v26, %v269_v9 }
  0xa7   :  { %v273_v27 = vshrl.u32 %v1574_v26, %v1691_v18  ;;  %v276_v28 = vshrl.u32 %v1575_v31, %v1691_v18  ;;  %v278_v29 = vshll.u32 %v1575_v31, %v269_v9  ;;  %v279_v30 = vshrl.u32 %v1576_v34, %v1691_v18 }
  0xa8   :  { %v157_v20 = vshll.u32 %v1682_v7, 16  ;;  %v281_v33 = vshll.u32 %v1576_v34, %v269_v9  ;;  %v282_v35 = vshrl.u32 %v1577_v37, %v1691_v18  ;;  %v284_v36 = vshll.u32 %v1577_v37, %v269_v9 }
  0xa9   :  { %v285_v38 = vshrl.u32 %v1578_v40, %v1691_v18  ;;  %v1714_v39 = vor.u32 %v273_v27, %v272_v23  ;;  %v1716_v41 = vor.u32 %v276_v28, %v275_v25  ;;  %v1718_v42 = vor.u32 %v279_v30, %v278_v29 }
  0xaa   :  { %v1720_v43 = vmul.u32 %v151_v2, %v150_v8  ;;  %vm1722_vm8 = vc.u32 %v153_v15, %v157_v20  ;;  %v283_v45 = vor.u32 %v282_v35, %v281_v33  ;;  %vm287_vm9 = vcmp.lt.s32.totalorder %v1697_v22, 1  ;;  %v1441_v2 = vld [vmem:[#allocation2] sm:$0xff] }
  0xab   :  { %v286_v46 = vor.u32 %v285_v38, %v284_v36  ;;  %v1728_v47 = vmul.u32 %v174_v14, %v1674_v63  ;;  %vm290_vm10 = vcmp.lt.s32.totalorder %v1697_v22, 4  ;;  %v295_v48 = vsel %vm287_vm9, %v1714_v39, %v1716_v41  ;;  %486 = vmatpush.bf16.msra.mxu1 %v1441_v2 }
  0xac   :  { %v299_v49 = vsel %vm287_vm9, %v1716_v41, %v1718_v42  ;;  %v163_v51 = vadd.s32 %v157_v20, %v153_v15  ;;  %vm289_vm11 = vcmp.lt.s32.totalorder %v1697_v22, 3  ;;  %v296_v52 = vsel %vm290_vm10, %v283_v45, 920167782 }
  0xad   :  { %v300_v53 = vsel %vm290_vm10, %v286_v46, 1326507024  ;;  %vm288_vm12 = vcmp.lt.s32.totalorder %v1697_v22, 2  ;;  %v297_v54 = vsel %vm289_vm11, %v1718_v42, %v296_v52  ;;  %v1579_v56 = vmov 0  }
  0xae   :  { %v301_v55 = vsel %vm289_vm11, %v283_v45, %v300_v53  ;;  %v162_v57 = vsel %vm1722_vm8, 1, %v1579_v56  ;;  %v298_v58 = vsel %vm288_vm12, %v295_v48, %v297_v54  ;;  %v159_v60 = vshll.u32 %v1720_v43, 16 }
  0xaf   :  { %v302_v59 = vsel %vm288_vm12, %v299_v49, %v301_v55  ;;  %v177_v61 = vmul.u32 %v173_v12, %v150_v8  ;;  %v305_v62 = vshrl.u32 %v1679_v4, 16  ;;  %v164_v3 = vadd.s32 %v162_v57, %v156_v17 }
  0xb0   :  { %v306_v0 = vand.u32 65535, %v302_v59  ;;  %v307_v1 = vshrl.u32 %v302_v59, 16  ;;  %v329_v9 = vshrl.u32 %v298_v58, 16  ;;  %vm165_vm13 = vc.u32 %v163_v51, %v159_v60 }
  0xb1   :  { %v175_v10 = vmul.u32 %v173_v12, %v1674_v63  ;;  %v179_v15 = vshll.u32 %v1728_v47, 16  ;;  %v178_v20 = vmul.u32 %v174_v14, %v150_v8  ;;  %v328_v25 = vand.u32 65535, %v298_v58 }
  0xb2   :  { %v309_v23 = vmul.u32 %v307_v1, %v1694_v19  ;;  %v158_v27 = vshrl.u32 %v1682_v7, 16  ;;  %v308_v28 = vmul.u32 %v306_v0, %v1694_v19  ;;  %v166_v29 = vsel %vm165_vm13, 1, %v1579_v56 }
  0xb3   :  { %v181_v30 = vshll.u32 %v177_v61, 16  ;;  %vm183_vm14 = vc.u32 %v175_v10, %v179_v15  ;;  %v168_v17 = vadd.s32 %v166_v29, %v164_v3  ;;  %v185_v63 = vadd.s32 %v179_v15, %v175_v10 }
  0xb4   :  { %v312_v32 = vshll.u32 %v309_v23, 16  ;;  %v184_v33 = vsel %vm183_vm14, 1, %v1579_v56  ;;  %v331_v12 = vmul.u32 %v329_v9, %v1694_v19  ;;  %v160_v8 = vshrl.u32 %v1720_v43, 16 }
  0xb5   :  { %v186_v14 = vadd.s32 %v184_v33, %v178_v20  ;;  %v310_v35 = vmul.u32 %v306_v0, %v305_v62  ;;  %v169_v36 = vadd.s32 %v168_v17, %v158_v27  ;;  %vm187_vm0 = vc.u32 %v185_v63, %v181_v30 }
  0xb6   :  { %vm316_vm15 = vc.u32 %v308_v28, %v312_v32  ;;  %v318_v7 = vadd.s32 %v312_v32, %v308_v28  ;;  %v311_v38 = vmul.u32 %v307_v1, %v305_v62  ;;  %v180_v44 = vshrl.u32 %v1728_v47, 16 }
  0xb7   :  { %v188_v45 = vsel %vm187_vm0, 1, %v1579_v56  ;;  %v314_v46 = vshll.u32 %v310_v35, 16  ;;  %v317_v49 = vsel %vm316_vm15, 1, %v1579_v56  ;;  %v330_v50 = vmul.u32 %v328_v25, %v1694_v19 }
  0xb8   :  { %v190_v48 = vadd.s32 %v188_v45, %v186_v14  ;;  %v332_v51 = vmul.u32 %v328_v25, %v305_v62  ;;  %v170_v52 = vadd.s32 %v169_v36, %v160_v8  ;;  %v319_v43 = vadd.s32 %v317_v49, %v311_v38 }
  0xb9   :  { %vm320_vm1 = vc.u32 %v318_v7, %v314_v46  ;;  %v334_v53 = vshll.u32 %v331_v12, 16  ;;  %v333_v54 = vmul.u32 %v329_v9, %v305_v62  ;;  %v182_v55 = vshrl.u32 %v177_v61, 16 }
  0xba   :  { %v191_v57 = vadd.s32 %v190_v48, %v180_v44  ;;  %v321_v58 = vsel %vm320_vm1, 1, %v1579_v56  ;;  %v189_v59 = vadd.s32 %v185_v63, %v181_v30  ;;  %v313_v47 = vshrl.u32 %v309_v23, 16 }
  0xbb   :  { %v323_v60 = vadd.s32 %v321_v58, %v319_v43  ;;  %vm338_vm2 = vc.u32 %v330_v50, %v334_v53  ;;  %v336_v1 = vshll.u32 %v332_v51, 16  ;;  %v340_v3 = vadd.s32 %v334_v53, %v330_v50 }
  0xbc   :  { %v192_v0 = vadd.s32 %v191_v57, %v182_v55  ;;  %v339_v2 = vsel %vm338_vm2, 1, %v1579_v56  ;;  %vm195_vm3 = vc.u32 %v170_v52, %v189_v59  ;;  %v292_v62 = vsel %vm290_vm10, %v1718_v42, 2102212464 }
  0xbd   :  { %v324_v19 = vadd.s32 %v323_v60, %v313_v47  ;;  %v341_v10 = vadd.s32 %v339_v2, %v333_v54  ;;  %vm342_vm4 = vc.u32 %v340_v3, %v336_v1  ;;  %v193_v9 = vmul.u32 %v1651_v21, %v1686_v11 }
  0xbe   :  { %v196_v61 = vadd.s32 1, %v192_v0  ;;  %v271_v15 = vshrl.u32 %v1573_v24, %v1691_v18  ;;  %v315_v20 = vshrl.u32 %v310_v35, 16  ;;  %v343_v23 = vsel %vm342_vm4, 1, %v1579_v56 }
  0xbf   :  { %v335_v27 = vshrl.u32 %v331_v12, 16  ;;  %v345_v28 = vadd.s32 %v343_v23, %v341_v10  ;;  %v293_v42 = vsel %vm289_vm11, %v1716_v41, %v292_v62  ;;  %v337_v21 = vshrl.u32 %v332_v51, 16 }
  0xc0   :  { %v197_v25 = vsel %vm195_vm3, %v196_v61, %v192_v0  ;;  %v291_v29 = vsel %vm287_vm9, %v271_v15, %v1714_v39  ;;  %v325_v32 = vadd.s32 %v324_v19, %v315_v20  ;;  %v344_v18 = vadd.s32 %v340_v3, %v336_v1 }
  0xc1   :  { %v198_v30 = vadd.s32 %v197_v25, %v193_v9  ;;  %v346_v11 = vadd.s32 %v345_v28, %v335_v27  ;;  %v294_v33 = vsel %vm288_vm12, %v291_v29, %v293_v42  ;;  %v194_v51 = vadd.s32 %v189_v59, %v170_v52 }
  0xc2   :  { %vm350_vm5 = vc.u32 %v325_v32, %v344_v18  ;;  %v348_v39 = vmul.u32 %v1679_v4, %v294_v33  ;;  %v349_v3 = vadd.s32 %v344_v18, %v325_v32  ;;  %vm102_vm10 = vcmp.lt.s32.totalorder %v1641_v5, 0 }
  0xc3   :  { %v199_v17 = vadd.s32 536870912, %v198_v30  ;;  %v347_v63 = vadd.s32 %v346_v11, %v337_v21  ;;  %vm1800_vm11 = vcmp.le.f32.partialorder %v100_v6, 0.7853982  ;;  %vm257_vm12 = vcmp.lt.s32.totalorder %v1647_v13, 0 }
  0xc4   :  { %vm1813_vm13 = vcmp.le.f32.partialorder %v255_v16, 0.7853982  ;;  %vm243_vm4 = vweird.f32 %v1641_v5 }
  0xc5   :  { %v1790_v12 = vshrl.u32 %v199_v17, 30  ;;  %v351_v8 = vadd.s32 1, %v347_v63 }
  0xc7   :  { %v201_v14 = vshll.u32 %v1790_v12, 30  ;;  %v352_v35 = vsel %vm350_vm5, %v351_v8, %v347_v63  ;;  %v224_v63 = vsub.s32 4, %v1790_v12  ;;  %vm398_vm5 = vweird.f32 %v1647_v13 }
  0xc8   :  { %v353_v7 = vadd.s32 %v352_v35, %v348_v39 }
  0xc9   :  { %v202_v41 = vsub.s32 %v198_v30, %v201_v14 }
  0xca   :  { %v354_v38 = vadd.s32 536870912, %v353_v7 }
  0xcb   :  { %vm203_vm6 = vcmp.lt.s32.totalorder %v202_v41, 0  ;;  %v204_v36 = vsub.s32 0, %v202_v41 }
  0xcc   :  { %v1794_v45 = vshrl.u32 %v354_v38, 30 }
  0xcd   :  { %v205_v44 = vsel %vm203_vm6, %v204_v36, %v202_v41  ;;  %v225_v36 = vsel %vm102_vm10, %v224_v63, %v1790_v12 }
  0xce   :  { %v206_v22 = vclz %v205_v44  ;;  %v356_v46 = vshll.u32 %v1794_v45, 30  ;;  %v379_v38 = vsub.s32 4, %v1794_v45  ;;  %v227_v16 = vsel %vm1800_vm11, 0, %v225_v36 }
  0xd0   :  { %v1327_v48 = vadd.s32 4294967294, %v206_v22  ;;  %v357_v49 = vsub.s32 %v353_v7, %v356_v46 }
  0xd2   :  { %vm1328_vm7 = vcmp.lt.s32.totalorder %v1327_v48, 0  ;;  %vm358_vm8 = vcmp.lt.s32.totalorder %v357_v49, 0  ;;  %v359_v4 = vsub.s32 0, %v357_v49 }
  0xd3   :  { %v209_v50 = vsel %vm1328_vm7, 0, %v1327_v48 }
  0xd4   :  { %v210_v43 = vsub.s32 32, %v209_v50  ;;  %v214_v53 = vsub.s32 4294967266, %v209_v50  ;;  %v360_v54 = vsel %vm358_vm8, %v359_v4, %v357_v49  ;;  %v211_v55 = vshll.u32 %v202_v41, %v209_v50 }
  0xd5   :  { %v361_v47 = vclz %v360_v54 }
  0xd6   :  { %v212_v57 = vshrl.u32 %v194_v51, %v210_v43  ;;  %v215_v58 = vadd.s32 127, %v214_v53  ;;  %v380_v51 = vsel %vm257_vm12, %v379_v38, %v1794_v45 }
  0xd7   :  { %v1330_v1 = vadd.s32 4294967294, %v361_v47 }
  0xd8   :  { %v213_v60 = vor.u32 %v212_v57, %v211_v55  ;;  %v216_v0 = vshll.u32 %v215_v58, 23  ;;  %v244_v55 = vadd.s32 3, %v227_v16  ;;  %v382_v58 = vsel %vm1813_vm13, 0, %v380_v51 }
  0xd9   :  { %vm1331_vm9 = vcmp.lt.s32.totalorder %v1330_v1, 0 }
  0xda   :  { %v217_v2 = vor.u32 4788187, %v216_v0  ;;  %v364_v19 = vsel %vm1331_vm9, 0, %v1330_v1  ;;  %v220_v62 = vcvt.s32.f32 %v213_v60 }
  0xdb   :  { %v365_v61 = vsub.s32 32, %v364_v19  ;;  %v369_v9 = vsub.s32 4294967266, %v364_v19  ;;  %v366_v52 = vshll.u32 %v357_v49, %v364_v19  ;;  %v399_v19 = vadd.s32 3, %v382_v58 }
  0xdc   :  { %v218_v10 = vand.u32 2147483647, %v217_v2 }
  0xdd   :  { %v367_v59 = vshrl.u32 %v349_v3, %v365_v61  ;;  %v370_v20 = vadd.s32 127, %v369_v9  ;;  %v245_v3 = vand.u32 3, %v244_v55 }
  0xde   :  { %v221_v15 = vmul.f32 %v220_v62, %v218_v10 }
  0xdf   :  { %v368_v25 = vor.u32 %v367_v59, %v366_v52  ;;  %v371_v27 = vshll.u32 %v370_v20, 23  ;;  %vm247_vm14 = vcmp.eq.s32.totalorder %v245_v3, 0  ;;  %v400_v52 = vand.u32 3, %v399_v19 }
  0xe0   :  { %v222_v23 = vxor.u32 2147483648, %v221_v15  ;;  %vm250_vm15 = vcmp.eq.s32.totalorder %v245_v3, 2  ;;  %vm246_vm0 = vcmp.lt.s32.totalorder %v245_v3, 2 }
  0xe1   :  { %v372_v42 = vor.u32 4788187, %v371_v27  ;;  %v375_v11 = vcvt.s32.f32 %v368_v25  ;;  %vm402_vm1 = vcmp.eq.s32.totalorder %v400_v52, 0  ;;  %vm405_vm2 = vcmp.eq.s32.totalorder %v400_v52, 2 }
  0xe2   :  { %v223_v29 = vsel %vm102_vm10, %v222_v23, %v221_v15  ;;  %vm401_vm3 = vcmp.lt.s32.totalorder %v400_v52, 2 }
  0xe3   :  { %v226_v30 = vsel %vm1800_vm11, %v1641_v5, %v223_v29  ;;  %v373_v21 = vand.u32 2147483647, %v372_v42 }
  0xe4   :  { %v228_v32 = vmul.f32 %v226_v30, %v226_v30 }
  0xe5   :  { %v376_v33 = vmul.f32 %v375_v11, %v373_v21 }
  0xe6   :  { %v229_v17 = vmul.f32 -0.001358992, %v228_v32  ;;  %v236_v18 = vmul.f32 -0.00019511016, %v228_v32 }
  0xe7   :  { %v377_v39 = vxor.u32 2147483648, %v376_v33 }
  0xe8   :  { %v230_v6 = vadd.f32 0.041655596, %v229_v17  ;;  %v237_v8 = vadd.f32 0.008332121, %v236_v18  ;;  %v1480_v17 = vld [vmem:[%s2227_s4] ss:$0 sm:$0xff] }
  0xe9   :  { %v378_v7 = vsel %vm257_vm12, %v377_v39, %v376_v33 }
  0xea   :  { %v231_v14 = vmul.f32 %v230_v6, %v228_v32  ;;  %v238_v35 = vmul.f32 %v237_v8, %v228_v32  ;;  %v381_v44 = vsel %vm1813_vm13, %v1647_v13, %v378_v7 }
  0xeb   :  { %v383_v48 = vmul.f32 %v381_v44, %v381_v44 }
  0xec   :  { %v232_v22 = vadd.f32 -0.4999988, %v231_v14  ;;  %v239_v46 = vadd.f32 -0.16666654, %v238_v35 }
  0xed   :  { %v384_v50 = vmul.f32 -0.001358992, %v383_v48  ;;  %v391_v4 = vmul.f32 -0.00019511016, %v383_v48 }
  0xee   :  { %v240_v49 = vmul.f32 %v239_v46, %v228_v32  ;;  %v233_v43 = vmul.f32 %v232_v22, %v228_v32  ;;  %v1456_v22 = vld [vmem:[#allocation2 + $0x78] sm:$0xff] }
  0xef   :  { %v385_v12 = vadd.f32 0.041655596, %v384_v50  ;;  %v392_v54 = vadd.f32 0.008332121, %v391_v4  ;;  %874 = vmatpush.bf16.msra.mxu2 %v1456_v22 }
  0xf0   :  { %v241_v53 = vadd.f32 1.0, %v240_v49  ;;  %v234_v0 = vadd.f32 1.0, %v233_v43  ;;  %v1455_v43 = vld [vmem:[#allocation2 + $0x70] sm:$0xff] }
  0xf1   :  { %v386_v47 = vmul.f32 %v385_v12, %v383_v48  ;;  %v393_v60 = vmul.f32 %v392_v54, %v383_v48 }
  0xf2   :  { %v242_v57 = vmul.f32 %v241_v53, %v226_v30  ;;  %v251_v45 = vxor.u32 2147483648, %v234_v0 }
  0xf3   :  { %v387_v1 = vadd.f32 -0.4999988, %v386_v47  ;;  %v394_v2 = vadd.f32 -0.16666654, %v393_v60  ;;  %875 = vmatpush.bf16.msra.mxu2 %v1455_v43 }
  0xf4   :  { %v248_v10 = vxor.u32 2147483648, %v242_v57  ;;  %v252_v25 = vsel %vm250_vm15, %v251_v45, %v242_v57 }
  0xf5   :  { %v388_v62 = vmul.f32 %v387_v1, %v383_v48  ;;  %v395_v61 = vmul.f32 %v394_v2, %v383_v48 }
  0xf6   :  { %v249_v59 = vsel %vm247_vm14, %v234_v0, %v248_v10 }
  0xf7   :  { %v389_v9 = vadd.f32 1.0, %v388_v62  ;;  %v396_v15 = vadd.f32 1.0, %v395_v61  ;;  %v253_v28 = vsel %vm246_vm0, %v249_v59, %v252_v25  ;;  %v1454_v62 = vld [vmem:[#allocation2 + $0x68] sm:$0xff] }
  0xf8   :  { %v254_v32 = vsel %vm243_vm4, nan, %v253_v28  ;;  %876 = vmatpush.bf16.msra.mxu2 %v1454_v62 }
  0xf9   :  { %v397_v20 = vmul.f32 %v396_v15, %v381_v44  ;;  %v406_v23 = vxor.u32 2147483648, %v389_v9 }
  0xfb   :  { %v403_v27 = vxor.u32 2147483648, %v397_v20  ;;  %v407_v42 = vsel %vm405_vm2, %v406_v23, %v397_v20 }
  0xfd   :  { %v404_v29 = vsel %vm402_vm1, %v389_v9, %v403_v27 }
  0xfe   :  { %v408_v30 = vsel %vm401_vm3, %v404_v29, %v407_v42  ;;  %v1453_v29 = vld [vmem:[#allocation2 + $0x60] sm:$0xff] }
  0xff   :  { %v409_v21 = vsel %vm398_vm5, nan, %v408_v30  ;;  %877 = vmatpush.bf16.msra.mxu2 %v1453_v29 }
 0x100   :  { %v427_v11 = vpack.c.bf16 %v409_v21, %v254_v32 }
 0x102   :  { %487 = vmatmul.bf16.vlgmr.msra.gmra.mxu1 %v427_v11 }
 0x17f   :  { %v488_v18 = vpop.f32.mrf.mxu1 }
 0x180   :  { %v1834_v33 = vadd.f32 %v1480_v17, %v488_v18 }
 0x182   :  { %v493_v63 = vand.u32 2147483647, %v1834_v33  ;;  %v496_v6 = vand.u32 2139095040, %v1834_v33 }
 0x184   :  { %v497_v8 = vshrl.u32 %v496_v6, 23  ;;  %v500_v13 = vand.u32 8388607, %v493_v63 }
 0x186   :  { %v1364_v5 = vadd.s32 4294967169, %v497_v8  ;;  %v501_v41 = vor.u32 8388608, %v500_v13 }
 0x187   :  { %v490_v39 = vpop.f32.mrf.mxu1 }
 0x188   :  { %v503_v14 = vadd.s32 1, %v1364_v5  ;;  %v1840_v35 = vadd.f32 %v1480_v17, %v490_v39  ;;  %v1844_v48 = vshll.u32 %v501_v41, 8  ;;  %v1452_v39 = vld [vmem:[#allocation2 + $0x58] sm:$0xff] }
 0x189   :  { %878 = vmatpush.bf16.msra.mxu2 %v1452_v39 }
 0x18a   :  { %vm504_vm6 = vcmp.gt.s32.totalorder %v503_v14, 0  ;;  %v648_v36 = vand.u32 2147483647, %v1840_v35  ;;  %v651_v38 = vand.u32 2139095040, %v1840_v35  ;;  %v1867_v32 = vand.u32 65535, %v1844_v48 }
 0x18b   :  { %v505_v7 = vsel %vm504_vm6, %v503_v14, 0  ;;  %v543_v5 = vshrl.u32 %v1844_v48, 16 }
 0x18c   :  { %v507_v44 = vand.u32 31, %v505_v7  ;;  %v652_v16 = vshrl.u32 %v651_v38, 23  ;;  %v506_v49 = vshrl.u32 %v505_v7, 5  ;;  %v655_v51 = vand.u32 8388607, %v648_v36 }
 0x18e   :  { %v508_v46 = vsub.s32 32, %v507_v44  ;;  %v510_v50 = vshll.u32 %v1573_v24, %v507_v44  ;;  %v513_v4 = vshll.u32 %v1574_v26, %v507_v44  ;;  %v516_v54 = vshll.u32 %v1575_v31, %v507_v44 }
 0x18f   :  { %v519_v57 = vshll.u32 %v1576_v34, %v507_v44  ;;  %v522_v47 = vshll.u32 %v1577_v37, %v507_v44  ;;  %v1367_v3 = vadd.s32 4294967169, %v652_v16  ;;  %vm525_vm7 = vcmp.lt.s32.totalorder %v506_v49, 1 }
 0x190   :  { %v511_v53 = vshrl.u32 %v1574_v26, %v508_v46  ;;  %v514_v12 = vshrl.u32 %v1575_v31, %v508_v46  ;;  %v517_v55 = vshrl.u32 %v1576_v34, %v508_v46  ;;  %v520_v58 = vshrl.u32 %v1577_v37, %v508_v46 }
 0x191   :  { %v523_v60 = vshrl.u32 %v1578_v40, %v508_v46  ;;  %vm528_vm8 = vcmp.lt.s32.totalorder %v506_v49, 4  ;;  %vm526_vm9 = vcmp.lt.s32.totalorder %v506_v49, 2  ;;  %vm527_vm10 = vcmp.lt.s32.totalorder %v506_v49, 3 }
 0x192   :  { %v512_v0 = vor.u32 %v511_v53, %v510_v50  ;;  %v515_v1 = vor.u32 %v514_v12, %v513_v4  ;;  %v518_v2 = vor.u32 %v517_v55, %v516_v54  ;;  %v521_v19 = vor.u32 %v520_v58, %v519_v57  ;;  %v1451_v54 = vld [vmem:[#allocation2 + $0x50] sm:$0xff] }
 0x193   :  { %v524_v10 = vor.u32 %v523_v60, %v522_v47  ;;  %v656_v52 = vor.u32 8388608, %v655_v51  ;;  %v658_v59 = vadd.s32 1, %v1367_v3  ;;  %v509_v20 = vshrl.u32 %v1573_v24, %v508_v46  ;;  %879 = vmatpush.bf16.msra.mxu2 %v1451_v54 }
 0x194   :  { %v530_v61 = vsel %vm528_vm8, %v518_v2, 2102212464  ;;  %v537_v45 = vsel %vm525_vm7, %v515_v1, %v518_v2  ;;  %v534_v9 = vsel %vm528_vm8, %v521_v19, 920167782  ;;  %v533_v23 = vsel %vm525_vm7, %v512_v0, %v515_v1 }
 0x195   :  { %v538_v15 = vsel %vm528_vm8, %v524_v10, 1326507024  ;;  %v535_v25 = vsel %vm527_vm10, %v518_v2, %v534_v9  ;;  %vm659_vm11 = vcmp.gt.s32.totalorder %v658_v59, 0  ;;  %v529_v42 = vsel %vm525_vm7, %v509_v20, %v512_v0  ;;  %v1450_v9 = vld [vmem:[#allocation2 + $0x48] sm:$0xff] }
 0x196   :  { %v539_v27 = vsel %vm527_vm10, %v521_v19, %v538_v15  ;;  %v531_v30 = vsel %vm527_vm10, %v515_v1, %v530_v61  ;;  %v1870_v11 = vsel %vm526_vm9, %v533_v23, %v535_v25  ;;  %v660_v18 = vsel %vm659_vm11, %v658_v59, 0 }
 0x197   :  { %v540_v28 = vsel %vm526_vm9, %v537_v45, %v539_v27  ;;  %v1872_v6 = vshll.u32 %v656_v52, 8  ;;  %v662_v13 = vand.u32 31, %v660_v18  ;;  %v1879_v14 = vsel %vm526_vm9, %v529_v42, %v531_v30  ;;  %880 = vmatpush.bf16.msra.mxu2 %v1450_v9 }
 0x198   :  { %v545_v21 = vshrl.u32 %v540_v28, 16  ;;  %v544_v17 = vand.u32 65535, %v540_v28  ;;  %v566_v41 = vand.u32 65535, %v1870_v11  ;;  %v567_v7 = vshrl.u32 %v1870_v11, 16 }
 0x199   :  { %v1884_v22 = vsub.s32 32, %v662_v13  ;;  %v1887_v46 = vand.u32 65535, %v1872_v6  ;;  %v1890_v50 = vshrl.u32 %v660_v18, 5  ;;  %v665_v49 = vshll.u32 %v1573_v24, %v662_v13 }
 0x19a   :  { %v1875_v8 = vmul.u32 %v545_v21, %v1867_v32  ;;  %v546_v38 = vmul.u32 %v544_v17, %v1867_v32  ;;  %v549_v44 = vmul.u32 %v545_v21, %v543_v5  ;;  %v668_v4 = vshll.u32 %v1574_v26, %v662_v13 }
 0x19b   :  { %v666_v51 = vshrl.u32 %v1574_v26, %v1884_v22  ;;  %v669_v43 = vshrl.u32 %v1575_v31, %v1884_v22  ;;  %v671_v53 = vshll.u32 %v1575_v31, %v662_v13  ;;  %v672_v12 = vshrl.u32 %v1576_v34, %v1884_v22 }
 0x19c   :  { %v550_v16 = vshll.u32 %v1875_v8, 16  ;;  %v674_v55 = vshll.u32 %v1576_v34, %v662_v13  ;;  %v675_v57 = vshrl.u32 %v1577_v37, %v1884_v22  ;;  %v677_v58 = vshll.u32 %v1577_v37, %v662_v13 }
 0x19d   :  { %v678_v47 = vshrl.u32 %v1578_v40, %v1884_v22  ;;  %v1907_v60 = vor.u32 %v666_v51, %v665_v49  ;;  %v1909_v0 = vor.u32 %v669_v43, %v668_v4  ;;  %v1911_v1 = vor.u32 %v672_v12, %v671_v53 }
 0x19e   :  { %v1913_v2 = vmul.u32 %v544_v17, %v543_v5  ;;  %vm1915_vm12 = vc.u32 %v546_v38, %v550_v16  ;;  %v676_v19 = vor.u32 %v675_v57, %v674_v55  ;;  %vm680_vm13 = vcmp.lt.s32.totalorder %v1890_v50, 1  ;;  %v1449_v17 = vld [vmem:[#allocation2 + $0x40] sm:$0xff] }
 0x19f   :  { %v679_v10 = vor.u32 %v678_v47, %v677_v58  ;;  %v1921_v62 = vmul.u32 %v567_v7, %v1867_v32  ;;  %vm683_vm14 = vcmp.lt.s32.totalorder %v1890_v50, 4  ;;  %v688_v61 = vsel %vm680_vm13, %v1907_v60, %v1909_v0  ;;  %881 = vmatpush.bf16.msra.mxu2 %v1449_v17 }
 0x1a0   :  { %v692_v45 = vsel %vm680_vm13, %v1909_v0, %v1911_v1  ;;  %v556_v15 = vadd.s32 %v550_v16, %v546_v38  ;;  %vm682_vm15 = vcmp.lt.s32.totalorder %v1890_v50, 3  ;;  %v689_v52 = vsel %vm683_vm14, %v676_v19, 920167782 }
 0x1a1   :  { %v693_v59 = vsel %vm683_vm14, %v679_v10, 1326507024  ;;  %vm681_vm0 = vcmp.lt.s32.totalorder %v1890_v50, 2  ;;  %v690_v20 = vsel %vm682_vm15, %v1911_v1, %v689_v52  ;;  %v555_v25 = vsel %vm1915_vm12, 1, %v1579_v56 }
 0x1a2   :  { %v694_v23 = vsel %vm682_vm15, %v676_v19, %v693_v59  ;;  %v691_v27 = vsel %vm681_vm0, %v688_v61, %v690_v20  ;;  %v552_v29 = vshll.u32 %v1913_v2, 16  ;;  %v570_v42 = vmul.u32 %v566_v41, %v543_v5 }
 0x1a3   :  { %v695_v28 = vsel %vm681_vm0, %v692_v45, %v694_v23  ;;  %v698_v30 = vshrl.u32 %v1872_v6, 16  ;;  %v557_v18 = vadd.s32 %v555_v25, %v549_v44  ;;  %v722_v13 = vshrl.u32 %v691_v27, 16 }
 0x1a4   :  { %v699_v21 = vand.u32 65535, %v695_v28  ;;  %v700_v11 = vshrl.u32 %v695_v28, 16  ;;  %vm558_vm1 = vc.u32 %v556_v15, %v552_v29  ;;  %v568_v39 = vmul.u32 %v566_v41, %v1867_v32 }
 0x1a5   :  { %v572_v38 = vshll.u32 %v1921_v62, 16  ;;  %v571_v16 = vmul.u32 %v567_v7, %v543_v5  ;;  %v721_v4 = vand.u32 65535, %v691_v27  ;;  %v551_v51 = vshrl.u32 %v1875_v8, 16 }
 0x1a6   :  { %v702_v49 = vmul.u32 %v700_v11, %v1887_v46  ;;  %v701_v43 = vmul.u32 %v699_v21, %v1887_v46  ;;  %v559_v53 = vsel %vm558_vm1, 1, %v1579_v56  ;;  %v574_v12 = vshll.u32 %v570_v42, 16 }
 0x1a7   :  { %vm576_vm2 = vc.u32 %v568_v39, %v572_v38  ;;  %v561_v44 = vadd.s32 %v559_v53, %v557_v18  ;;  %v578_v32 = vadd.s32 %v572_v38, %v568_v39  ;;  %v724_v41 = vmul.u32 %v722_v13, %v1887_v46 }
 0x1a8   :  { %v705_v54 = vshll.u32 %v702_v49, 16  ;;  %v577_v55 = vsel %vm576_vm2, 1, %v1579_v56  ;;  %v553_v5 = vshrl.u32 %v1913_v2, 16  ;;  %v703_v57 = vmul.u32 %v699_v21, %v698_v30 }
 0x1a9   :  { %v579_v7 = vadd.s32 %v577_v55, %v571_v16  ;;  %v562_v58 = vadd.s32 %v561_v44, %v551_v51  ;;  %vm580_vm4 = vc.u32 %v578_v32, %v574_v12  ;;  %v704_v47 = vmul.u32 %v700_v11, %v698_v30 }
 0x1aa   :  { %vm709_vm3 = vc.u32 %v701_v43, %v705_v54  ;;  %v711_v8 = vadd.s32 %v705_v54, %v701_v43  ;;  %v573_v3 = vshrl.u32 %v1921_v62, 16  ;;  %v581_v19 = vsel %vm580_vm4, 1, %v1579_v56 }
 0x1ab   :  { %v707_v10 = vshll.u32 %v703_v57, 16  ;;  %v583_v61 = vadd.s32 %v581_v19, %v579_v7  ;;  %v710_v45 = vsel %vm709_vm3, 1, %v1579_v56  ;;  %v723_v9 = vmul.u32 %v721_v4, %v1887_v46 }
 0x1ac   :  { %v725_v15 = vmul.u32 %v721_v4, %v698_v30  ;;  %v563_v52 = vadd.s32 %v562_v58, %v553_v5  ;;  %v712_v2 = vadd.s32 %v710_v45, %v704_v47  ;;  %v727_v59 = vshll.u32 %v724_v41, 16 }
 0x1ad   :  { %vm713_vm5 = vc.u32 %v711_v8, %v707_v10  ;;  %v726_v20 = vmul.u32 %v722_v13, %v698_v30  ;;  %v575_v23 = vshrl.u32 %v570_v42, 16  ;;  %v584_v25 = vadd.s32 %v583_v61, %v573_v3 }
 0x1ae   :  { %v714_v27 = vsel %vm713_vm5, 1, %v1579_v56  ;;  %v582_v28 = vadd.s32 %v578_v32, %v574_v12  ;;  %v706_v62 = vshrl.u32 %v702_v49, 16  ;;  %vm731_vm6 = vc.u32 %v723_v9, %v727_v59 }
 0x1af   :  { %v716_v29 = vadd.s32 %v714_v27, %v712_v2  ;;  %v585_v21 = vadd.s32 %v584_v25, %v575_v23  ;;  %v729_v11 = vshll.u32 %v725_v15, 16  ;;  %v732_v17 = vsel %vm731_vm6, 1, %v1579_v56 }
 0x1b0   :  { %v733_v18 = vadd.s32 %v727_v59, %v723_v9  ;;  %vm588_vm7 = vc.u32 %v563_v52, %v582_v28  ;;  %v734_v39 = vadd.s32 %v732_v17, %v726_v20  ;;  %v685_v30 = vsel %vm683_vm14, %v1911_v1, 2102212464 }
 0x1b1   :  { %v717_v46 = vadd.s32 %v716_v29, %v706_v62  ;;  %v589_v42 = vadd.s32 1, %v585_v21  ;;  %v586_v13 = vmul.u32 %v1844_v48, %v1879_v14  ;;  %v664_v38 = vshrl.u32 %v1573_v24, %v1884_v22 }
 0x1b2   :  { %vm735_vm8 = vc.u32 %v733_v18, %v729_v11  ;;  %v708_v16 = vshrl.u32 %v703_v57, 16  ;;  %v728_v51 = vshrl.u32 %v724_v41, 16  ;;  %v686_v1 = vsel %vm682_vm15, %v1909_v0, %v685_v30 }
 0x1b3   :  { %v736_v49 = vsel %vm735_vm8, 1, %v1579_v56  ;;  %v590_v4 = vsel %vm588_vm7, %v589_v42, %v585_v21  ;;  %v684_v53 = vsel %vm680_vm13, %v664_v38, %v1907_v60  ;;  %v730_v48 = vshrl.u32 %v725_v15, 16 }
 0x1b4   :  { %v738_v43 = vadd.s32 %v736_v49, %v734_v39  ;;  %v591_v12 = vadd.s32 %v590_v4, %v586_v13  ;;  %v718_v54 = vadd.s32 %v717_v46, %v708_v16  ;;  %v737_v22 = vadd.s32 %v733_v18, %v729_v11 }
 0x1b5   :  { %v687_v55 = vsel %vm681_vm0, %v684_v53, %v686_v1  ;;  %v587_v15 = vadd.s32 %v582_v28, %v563_v52  ;;  %vm495_vm14 = vcmp.lt.s32.totalorder %v1834_v33, 0  ;;  %vm1993_vm15 = vcmp.le.f32.partialorder %v493_v63, 0.7853982 }
 0x1b6   :  { %v739_v14 = vadd.s32 %v738_v43, %v728_v51  ;;  %v592_v44 = vadd.s32 536870912, %v591_v12  ;;  %vm743_vm9 = vc.u32 %v718_v54, %v737_v22  ;;  %v741_v60 = vmul.u32 %v1872_v6, %v687_v55 }
 0x1b7   :  { %v742_v18 = vadd.s32 %v737_v22, %v718_v54  ;;  %vm650_vm0 = vcmp.lt.s32.totalorder %v1840_v35, 0  ;;  %vm2006_vm1 = vcmp.le.f32.partialorder %v648_v36, 0.7853982  ;;  %vm636_vm8 = vweird.f32 %v1834_v33 }
 0x1b8   :  { %v740_v32 = vadd.s32 %v739_v14, %v730_v48  ;;  %v1983_v41 = vshrl.u32 %v592_v44, 30 }
 0x1ba   :  { %v744_v5 = vadd.s32 1, %v740_v32  ;;  %v594_v7 = vshll.u32 %v1983_v41, 30 }
 0x1bc   :  { %v745_v57 = vsel %vm743_vm9, %v744_v5, %v740_v32  ;;  %v595_v0 = vsub.s32 %v591_v12, %v594_v7  ;;  %v617_v32 = vsub.s32 4, %v1983_v41  ;;  %vm791_vm9 = vweird.f32 %v1840_v35 }
 0x1bd   :  { %v746_v8 = vadd.s32 %v745_v57, %v741_v60 }
 0x1be   :  { %vm596_vm10 = vcmp.lt.s32.totalorder %v595_v0, 0  ;;  %v597_v58 = vsub.s32 0, %v595_v0 }
 0x1bf   :  { %v747_v47 = vadd.s32 536870912, %v746_v8 }
 0x1c0   :  { %v598_v3 = vsel %vm596_vm10, %v597_v58, %v595_v0  ;;  %v618_v58 = vsel %vm495_vm14, %v617_v32, %v1983_v41 }
 0x1c1   :  { %v1987_v19 = vshrl.u32 %v747_v47, 30  ;;  %v599_v50 = vclz %v598_v3  ;;  %v620_v36 = vsel %vm1993_vm15, 0, %v618_v58 }
 0x1c3   :  { %v749_v10 = vshll.u32 %v1987_v19, 30  ;;  %v1365_v61 = vadd.s32 4294967294, %v599_v50  ;;  %v772_v47 = vsub.s32 4, %v1987_v19 }
 0x1c5   :  { %v750_v45 = vsub.s32 %v746_v8, %v749_v10  ;;  %vm1366_vm11 = vcmp.lt.s32.totalorder %v1365_v61, 0 }
 0x1c6   :  { %v602_v9 = vsel %vm1366_vm11, 0, %v1365_v61 }
 0x1c7   :  { %vm751_vm12 = vcmp.lt.s32.totalorder %v750_v45, 0  ;;  %v752_v6 = vsub.s32 0, %v750_v45  ;;  %v603_v2 = vsub.s32 32, %v602_v9  ;;  %v607_v59 = vsub.s32 4294967266, %v602_v9 }
 0x1c8   :  { %v604_v23 = vshll.u32 %v595_v0, %v602_v9 }
 0x1c9   :  { %v753_v20 = vsel %vm751_vm12, %v752_v6, %v750_v45  ;;  %v605_v25 = vshrl.u32 %v587_v15, %v603_v2  ;;  %v608_v27 = vadd.s32 127, %v607_v59  ;;  %v773_v15 = vsel %vm650_vm0, %v772_v47, %v1987_v19 }
 0x1ca   :  { %v754_v62 = vclz %v753_v20 }
 0x1cb   :  { %v606_v29 = vor.u32 %v605_v25, %v604_v23  ;;  %v609_v21 = vshll.u32 %v608_v27, 23  ;;  %v637_v23 = vadd.s32 3, %v620_v36  ;;  %v775_v27 = vsel %vm2006_vm1, 0, %v773_v15 }
 0x1cc   :  { %v1368_v11 = vadd.s32 4294967294, %v754_v62 }
 0x1cd   :  { %v610_v17 = vor.u32 4788187, %v609_v21  ;;  %v613_v30 = vcvt.s32.f32 %v606_v29 }
 0x1ce   :  { %vm1369_vm13 = vcmp.lt.s32.totalorder %v1368_v11, 0 }
 0x1cf   :  { %v757_v46 = vsel %vm1369_vm13, 0, %v1368_v11  ;;  %v611_v39 = vand.u32 2147483647, %v610_v17 }
 0x1d0   :  { %v758_v42 = vsub.s32 32, %v757_v46  ;;  %v762_v13 = vsub.s32 4294967266, %v757_v46  ;;  %v759_v52 = vshll.u32 %v750_v45, %v757_v46  ;;  %v792_v46 = vadd.s32 3, %v775_v27 }
 0x1d1   :  { %v614_v38 = vmul.f32 %v613_v30, %v611_v39 }
 0x1d2   :  { %v760_v28 = vshrl.u32 %v742_v18, %v758_v42  ;;  %v763_v16 = vadd.s32 127, %v762_v13  ;;  %v638_v18 = vand.u32 3, %v637_v23 }
 0x1d3   :  { %v615_v49 = vxor.u32 2147483648, %v614_v38 }
 0x1d4   :  { %v761_v4 = vor.u32 %v760_v28, %v759_v52  ;;  %v764_v51 = vshll.u32 %v763_v16, 23  ;;  %vm640_vm2 = vcmp.eq.s32.totalorder %v638_v18, 0  ;;  %v793_v52 = vand.u32 3, %v792_v46 }
 0x1d5   :  { %v616_v53 = vsel %vm495_vm14, %v615_v49, %v614_v38  ;;  %vm643_vm3 = vcmp.eq.s32.totalorder %v638_v18, 2  ;;  %vm639_vm4 = vcmp.lt.s32.totalorder %v638_v18, 2 }
 0x1d6   :  { %v765_v1 = vor.u32 4788187, %v764_v51  ;;  %v619_v12 = vsel %vm1993_vm15, %v1834_v33, %v616_v53  ;;  %v768_v14 = vcvt.s32.f32 %v761_v4  ;;  %vm795_vm5 = vcmp.eq.s32.totalorder %v793_v52, 0 }
 0x1d7   :  { %v621_v54 = vmul.f32 %v619_v12, %v619_v12  ;;  %vm798_vm6 = vcmp.eq.s32.totalorder %v793_v52, 2  ;;  %vm794_vm7 = vcmp.lt.s32.totalorder %v793_v52, 2 }
 0x1d8   :  { %v766_v48 = vand.u32 2147483647, %v765_v1 }
 0x1d9   :  { %v622_v44 = vmul.f32 -0.001358992, %v621_v54  ;;  %v629_v22 = vmul.f32 -0.00019511016, %v621_v54 }
 0x1da   :  { %v769_v55 = vmul.f32 %v768_v14, %v766_v48 }
 0x1db   :  { %v623_v63 = vadd.f32 0.041655596, %v622_v44  ;;  %v630_v5 = vadd.f32 0.008332121, %v629_v22  ;;  %v1481_v44 = vld [vmem:[%s2227_s4 + $0x1] ss:$0 sm:$0xff] }
 0x1dc   :  { %v770_v60 = vxor.u32 2147483648, %v769_v55 }
 0x1dd   :  { %v624_v7 = vmul.f32 %v623_v63, %v621_v54  ;;  %v631_v57 = vmul.f32 %v630_v5, %v621_v54 }
 0x1de   :  { %v771_v8 = vsel %vm650_vm0, %v770_v60, %v769_v55 }
 0x1df   :  { %v774_v3 = vsel %vm2006_vm1, %v1840_v35, %v771_v8  ;;  %v625_v50 = vadd.f32 -0.4999988, %v624_v7  ;;  %v632_v10 = vadd.f32 -0.16666654, %v631_v57 }
 0x1e0   :  { %v776_v61 = vmul.f32 %v774_v3, %v774_v3 }
 0x1e1   :  { %v633_v45 = vmul.f32 %v632_v10, %v621_v54  ;;  %v626_v2 = vmul.f32 %v625_v50, %v621_v54  ;;  %v1464_v50 = vld [vmem:[#allocation5 + $0x38] sm:$0xff] }
 0x1e2   :  { %v777_v9 = vmul.f32 -0.001358992, %v776_v61  ;;  %v784_v6 = vmul.f32 -0.00019511016, %v776_v61  ;;  %1267 = vmatpush.bf16.msra.mxu3 %v1464_v50 }
 0x1e3   :  { %v634_v59 = vadd.f32 1.0, %v633_v45  ;;  %v627_v21 = vadd.f32 1.0, %v626_v2  ;;  %v1463_v2 = vld [vmem:[#allocation5 + $0x30] sm:$0xff] }
 0x1e4   :  { %v778_v41 = vadd.f32 0.041655596, %v777_v9  ;;  %v785_v20 = vadd.f32 0.008332121, %v784_v6 }
 0x1e5   :  { %v635_v25 = vmul.f32 %v634_v59, %v619_v12  ;;  %v644_v19 = vxor.u32 2147483648, %v627_v21 }
 0x1e6   :  { %v779_v62 = vmul.f32 %v778_v41, %v776_v61  ;;  %v786_v29 = vmul.f32 %v785_v20, %v776_v61  ;;  %1268 = vmatpush.bf16.msra.mxu3 %v1463_v2 }
 0x1e7   :  { %v641_v39 = vxor.u32 2147483648, %v635_v25  ;;  %v645_v4 = vsel %vm643_vm3, %v644_v19, %v635_v25 }
 0x1e8   :  { %v780_v11 = vadd.f32 -0.4999988, %v779_v62  ;;  %v787_v17 = vadd.f32 -0.16666654, %v786_v29 }
 0x1e9   :  { %v642_v28 = vsel %vm640_vm2, %v627_v21, %v641_v39 }
 0x1ea   :  { %v781_v30 = vmul.f32 %v780_v11, %v776_v61  ;;  %v788_v42 = vmul.f32 %v787_v17, %v776_v61  ;;  %v646_v43 = vsel %vm639_vm4, %v642_v28, %v645_v4 }
 0x1eb   :  { %v647_v54 = vsel %vm636_vm8, nan, %v646_v43 }
 0x1ec   :  { %v782_v13 = vadd.f32 1.0, %v781_v30  ;;  %v789_v38 = vadd.f32 1.0, %v788_v42  ;;  %v1462_v30 = vld [vmem:[#allocation5 + $0x28] sm:$0xff] }
 0x1ed   :  { %1269 = vmatpush.bf16.msra.mxu3 %v1462_v30 }
 0x1ee   :  { %v790_v16 = vmul.f32 %v789_v38, %v774_v3  ;;  %v799_v49 = vxor.u32 2147483648, %v782_v13 }
 0x1f0   :  { %v796_v51 = vxor.u32 2147483648, %v790_v16  ;;  %v800_v1 = vsel %vm798_vm6, %v799_v49, %v790_v16 }
 0x1f2   :  { %v797_v53 = vsel %vm795_vm5, %v782_v13, %v796_v51 }
 0x1f3   :  { %v801_v12 = vsel %vm794_vm7, %v797_v53, %v800_v1  ;;  %v1461_v53 = vld [vmem:[#allocation5 + $0x20] sm:$0xff] }
 0x1f4   :  { %v802_v48 = vsel %vm791_vm9, nan, %v801_v12  ;;  %1270 = vmatpush.bf16.msra.mxu3 %v1461_v53  ;;  %v1457_v53 = vld [vmem:[#allocation5] sm:$0xff] }
 0x1f5   :  { %v822_v14 = vpack.c.bf16 %v802_v48, %v647_v54 }
 0x1f7   :  { %882 = vmatmul.bf16.vlgmr.msra.gmra.mxu2 %v822_v14 }
 0x27a   :  { %v883_v22 = vpop.f32.mrf.mxu2 }
 0x27b   :  { %v2027_v55 = vadd.f32 %v1481_v44, %v883_v22 }
 0x27d   :  { %v888_v32 = vand.u32 2147483647, %v2027_v55  ;;  %v891_v63 = vand.u32 2139095040, %v2027_v55 }
 0x27f   :  { %v892_v5 = vshrl.u32 %v891_v63, 23  ;;  %v895_v35 = vand.u32 8388607, %v888_v32 }
 0x281   :  { %v1403_v33 = vadd.s32 4294967169, %v892_v5  ;;  %v896_v0 = vor.u32 8388608, %v895_v35 }
 0x282   :  { %v885_v60 = vpop.f32.mrf.mxu2 }
 0x283   :  { %v898_v7 = vadd.s32 1, %v1403_v33  ;;  %v2033_v57 = vadd.f32 %v1481_v44, %v885_v60  ;;  %v2037_v61 = vshll.u32 %v896_v0, 8  ;;  %v1460_v60 = vld [vmem:[#allocation5 + $0x18] sm:$0xff] }
 0x284   :  { %1271 = vmatpush.bf16.msra.mxu3 %v1460_v60 }
 0x285   :  { %vm899_vm10 = vcmp.gt.s32.totalorder %v898_v7, 0  ;;  %v1043_v58 = vand.u32 2147483647, %v2033_v57  ;;  %v1046_v47 = vand.u32 2139095040, %v2033_v57  ;;  %v2060_v54 = vand.u32 65535, %v2037_v61 }
 0x286   :  { %v900_v8 = vsel %vm899_vm10, %v898_v7, 0  ;;  %v938_v33 = vshrl.u32 %v2037_v61, 16 }
 0x287   :  { %v902_v3 = vand.u32 31, %v900_v8  ;;  %v1047_v36 = vshrl.u32 %v1046_v47, 23  ;;  %v901_v45 = vshrl.u32 %v900_v8, 5  ;;  %v1050_v15 = vand.u32 8388607, %v1043_v58 }
 0x289   :  { %v903_v10 = vsub.s32 32, %v902_v3  ;;  %v905_v9 = vshll.u32 %v1573_v24, %v902_v3  ;;  %v908_v6 = vshll.u32 %v1574_v26, %v902_v3  ;;  %v911_v20 = vshll.u32 %v1575_v31, %v902_v3 }
 0x28a   :  { %v914_v25 = vshll.u32 %v1576_v34, %v902_v3  ;;  %v917_v62 = vshll.u32 %v1577_v37, %v902_v3  ;;  %v1406_v18 = vadd.s32 4294967169, %v1047_v36  ;;  %vm920_vm11 = vcmp.lt.s32.totalorder %v901_v45, 1 }
 0x28b   :  { %v906_v59 = vshrl.u32 %v1574_v26, %v903_v10  ;;  %v909_v41 = vshrl.u32 %v1575_v31, %v903_v10  ;;  %v912_v23 = vshrl.u32 %v1576_v34, %v903_v10  ;;  %v915_v27 = vshrl.u32 %v1577_v37, %v903_v10 }
 0x28c   :  { %v918_v29 = vshrl.u32 %v1578_v40, %v903_v10  ;;  %vm923_vm12 = vcmp.lt.s32.totalorder %v901_v45, 4  ;;  %vm921_vm13 = vcmp.lt.s32.totalorder %v901_v45, 2  ;;  %vm922_vm14 = vcmp.lt.s32.totalorder %v901_v45, 3 }
 0x28d   :  { %v907_v21 = vor.u32 %v906_v59, %v905_v9  ;;  %v910_v11 = vor.u32 %v909_v41, %v908_v6  ;;  %v913_v17 = vor.u32 %v912_v23, %v911_v20  ;;  %v916_v46 = vor.u32 %v915_v27, %v914_v25  ;;  %v1459_v20 = vld [vmem:[#allocation5 + $0x10] sm:$0xff] }
 0x28e   :  { %v919_v39 = vor.u32 %v918_v29, %v917_v62  ;;  %v1051_v52 = vor.u32 8388608, %v1050_v15  ;;  %v1053_v28 = vadd.s32 1, %v1406_v18  ;;  %v904_v16 = vshrl.u32 %v1573_v24, %v903_v10  ;;  %1272 = vmatpush.bf16.msra.mxu3 %v1459_v20 }
 0x28f   :  { %v925_v42 = vsel %vm923_vm12, %v913_v17, 2102212464  ;;  %v932_v19 = vsel %vm920_vm11, %v910_v11, %v913_v17  ;;  %v929_v13 = vsel %vm923_vm12, %v916_v46, 920167782  ;;  %v928_v49 = vsel %vm920_vm11, %v907_v21, %v910_v11 }
 0x290   :  { %v933_v38 = vsel %vm923_vm12, %v919_v39, 1326507024  ;;  %v930_v4 = vsel %vm922_vm14, %v913_v17, %v929_v13  ;;  %vm1054_vm15 = vcmp.gt.s32.totalorder %v1053_v28, 0  ;;  %v924_v1 = vsel %vm920_vm11, %v904_v16, %v907_v21 }
 0x291   :  { %v934_v51 = vsel %vm922_vm14, %v916_v46, %v933_v38  ;;  %v926_v12 = vsel %vm922_vm14, %v910_v11, %v925_v42  ;;  %v2063_v14 = vsel %vm921_vm13, %v928_v49, %v930_v4  ;;  %v1055_v22 = vsel %vm1054_vm15, %v1053_v28, 0  ;;  %v1458_v46 = vld [vmem:[#allocation5 + $0x8] sm:$0xff] }
 0x292   :  { %v935_v43 = vsel %vm921_vm13, %v932_v19, %v934_v51  ;;  %v2065_v63 = vshll.u32 %v1051_v52, 8  ;;  %v1057_v35 = vand.u32 31, %v1055_v22  ;;  %v2072_v7 = vsel %vm921_vm13, %v924_v1, %v926_v12  ;;  %1273 = vmatpush.bf16.msra.mxu3 %v1458_v46 }
 0x293   :  { %v940_v48 = vshrl.u32 %v935_v43, 16  ;;  %v939_v44 = vand.u32 65535, %v935_v43  ;;  %v961_v0 = vand.u32 65535, %v2063_v14  ;;  %v962_v8 = vshrl.u32 %v2063_v14, 16 }
 0x294   :  { %v2077_v50 = vsub.s32 32, %v1057_v35  ;;  %v2080_v10 = vand.u32 65535, %v2065_v63  ;;  %v2083_v9 = vshrl.u32 %v1055_v22, 5  ;;  %v1060_v45 = vshll.u32 %v1573_v24, %v1057_v35 }
 0x295   :  { %v2068_v5 = vmul.u32 %v940_v48, %v2060_v54  ;;  %v941_v47 = vmul.u32 %v939_v44, %v2060_v54  ;;  %v944_v3 = vmul.u32 %v940_v48, %v938_v33  ;;  %v1063_v6 = vshll.u32 %v1574_v26, %v1057_v35 }
 0x296   :  { %v1061_v15 = vshrl.u32 %v1574_v26, %v2077_v50  ;;  %v1064_v2 = vshrl.u32 %v1575_v31, %v2077_v50  ;;  %v1066_v59 = vshll.u32 %v1575_v31, %v1057_v35  ;;  %v1067_v41 = vshrl.u32 %v1576_v34, %v2077_v50  ;;  %1274 = vmatpush.bf16.msra.mxu3 %v1457_v53 }
 0x297   :  { %v945_v36 = vshll.u32 %v2068_v5, 16  ;;  %v1069_v23 = vshll.u32 %v1576_v34, %v1057_v35  ;;  %v1070_v25 = vshrl.u32 %v1577_v37, %v2077_v50  ;;  %v1072_v27 = vshll.u32 %v1577_v37, %v1057_v35 }
 0x298   :  { %v1073_v26 = vshrl.u32 %v1578_v40, %v2077_v50  ;;  %v2100_v62 = vor.u32 %v1061_v15, %v1060_v45  ;;  %v2102_v29 = vor.u32 %v1064_v2, %v1063_v6  ;;  %v2104_v31 = vor.u32 %v1067_v41, %v1066_v59 }
 0x299   :  { %v2106_v21 = vmul.u32 %v939_v44, %v938_v33  ;;  %vm2108_vm0 = vc.u32 %v941_v47, %v945_v36  ;;  %v1071_v34 = vor.u32 %v1070_v25, %v1069_v23  ;;  %vm1075_vm1 = vcmp.lt.s32.totalorder %v2083_v9, 1 }
 0x29a   :  { %v1074_v17 = vor.u32 %v1073_v26, %v1072_v27  ;;  %v2114_v37 = vmul.u32 %v962_v8, %v2060_v54  ;;  %vm1078_vm2 = vcmp.lt.s32.totalorder %v2083_v9, 4  ;;  %v1083_v40 = vsel %vm1075_vm1, %v2100_v62, %v2102_v29 }
 0x29b   :  { %v1087_v18 = vsel %vm1075_vm1, %v2102_v29, %v2104_v31  ;;  %v951_v39 = vadd.s32 %v945_v36, %v941_v47  ;;  %vm1077_vm3 = vcmp.lt.s32.totalorder %v2083_v9, 3  ;;  %v1084_v30 = vsel %vm1078_vm2, %v1071_v34, 920167782 }
 0x29c   :  { %v1088_v42 = vsel %vm1078_vm2, %v1074_v17, 1326507024  ;;  %vm1076_vm4 = vcmp.lt.s32.totalorder %v2083_v9, 2  ;;  %v1085_v19 = vsel %vm1077_vm3, %v2104_v31, %v1084_v30  ;;  %v950_v38 = vsel %vm2108_vm0, 1, %v1579_v56 }
 0x29d   :  { %v1089_v13 = vsel %vm1077_vm3, %v1071_v34, %v1088_v42  ;;  %v1086_v52 = vsel %vm1076_vm4, %v1083_v40, %v1085_v19  ;;  %v947_v16 = vshll.u32 %v2106_v21, 16  ;;  %v965_v49 = vmul.u32 %v961_v0, %v938_v33 }
 0x29e   :  { %v1090_v28 = vsel %vm1076_vm4, %v1087_v18, %v1089_v13  ;;  %v1093_v4 = vshrl.u32 %v2065_v63, 16  ;;  %v952_v1 = vadd.s32 %v950_v38, %v944_v3  ;;  %v1117_v12 = vshrl.u32 %v1086_v52, 16 }
 0x29f   :  { %v1094_v51 = vand.u32 65535, %v1090_v28  ;;  %v1095_v43 = vshrl.u32 %v1090_v28, 16  ;;  %vm953_vm5 = vc.u32 %v951_v39, %v947_v16  ;;  %v963_v48 = vmul.u32 %v961_v0, %v2060_v54 }
 0x2a0   :  { %v967_v14 = vshll.u32 %v2114_v37, 16  ;;  %v966_v44 = vmul.u32 %v962_v8, %v938_v33  ;;  %v1116_v35 = vand.u32 65535, %v1086_v52  ;;  %v946_v60 = vshrl.u32 %v2068_v5, 16 }
 0x2a1   :  { %v1097_v22 = vmul.u32 %v1095_v43, %v2080_v10  ;;  %v1096_v47 = vmul.u32 %v1094_v51, %v2080_v10  ;;  %v954_v36 = vsel %vm953_vm5, 1, %v1579_v56  ;;  %v969_v45 = vshll.u32 %v965_v49, 16 }
 0x2a2   :  { %vm971_vm6 = vc.u32 %v963_v48, %v967_v14  ;;  %v956_v3 = vadd.s32 %v954_v36, %v952_v1  ;;  %v973_v54 = vadd.s32 %v967_v14, %v963_v48  ;;  %v1119_v0 = vmul.u32 %v1117_v12, %v2080_v10 }
 0x2a3   :  { %v1100_v6 = vshll.u32 %v1097_v22, 16  ;;  %v972_v15 = vsel %vm971_vm6, 1, %v1579_v56  ;;  %v948_v33 = vshrl.u32 %v2106_v21, 16  ;;  %v1098_v2 = vmul.u32 %v1094_v51, %v1093_v4 }
 0x2a4   :  { %v974_v8 = vadd.s32 %v972_v15, %v966_v44  ;;  %v957_v59 = vadd.s32 %v956_v3, %v946_v60  ;;  %vm975_vm8 = vc.u32 %v973_v54, %v969_v45  ;;  %v1099_v41 = vmul.u32 %v1095_v43, %v1093_v4 }
 0x2a5   :  { %vm1104_vm7 = vc.u32 %v1096_v47, %v1100_v6  ;;  %v1106_v5 = vadd.s32 %v1100_v6, %v1096_v47  ;;  %v968_v20 = vshrl.u32 %v2114_v37, 16  ;;  %v976_v23 = vsel %vm975_vm8, 1, %v1579_v56 }
 0x2a6   :  { %v1102_v25 = vshll.u32 %v1098_v2, 16  ;;  %v978_v27 = vadd.s32 %v976_v23, %v974_v8  ;;  %v1105_v26 = vsel %vm1104_vm7, 1, %v1579_v56  ;;  %v1118_v11 = vmul.u32 %v1116_v35, %v2080_v10 }
 0x2a7   :  { %v1120_v34 = vmul.u32 %v1116_v35, %v1093_v4  ;;  %v958_v17 = vadd.s32 %v957_v59, %v948_v33  ;;  %v1107_v21 = vadd.s32 %v1105_v26, %v1099_v41  ;;  %v1122_v40 = vshll.u32 %v1119_v0, 16 }
 0x2a8   :  { %vm1108_vm9 = vc.u32 %v1106_v5, %v1102_v25  ;;  %v1121_v18 = vmul.u32 %v1117_v12, %v1093_v4  ;;  %v970_v46 = vshrl.u32 %v965_v49, 16  ;;  %v979_v39 = vadd.s32 %v978_v27, %v968_v20 }
 0x2a9   :  { %v1109_v30 = vsel %vm1108_vm9, 1, %v1579_v56  ;;  %v977_v42 = vadd.s32 %v973_v54, %v969_v45  ;;  %v1101_v37 = vshrl.u32 %v1097_v22, 16  ;;  %vm1126_vm10 = vc.u32 %v1118_v11, %v1122_v40 }
 0x2aa   :  { %v1111_v19 = vadd.s32 %v1109_v30, %v1107_v21  ;;  %v980_v13 = vadd.s32 %v979_v39, %v970_v46  ;;  %v1124_v38 = vshll.u32 %v1120_v34, 16  ;;  %v1127_v52 = vsel %vm1126_vm10, 1, %v1579_v56 }
 0x2ab   :  { %v1128_v28 = vadd.s32 %v1122_v40, %v1118_v11  ;;  %vm983_vm11 = vc.u32 %v958_v17, %v977_v42  ;;  %v1129_v16 = vadd.s32 %v1127_v52, %v1121_v18  ;;  %v1080_v4 = vsel %vm1078_vm2, %v2104_v31, 2102212464 }
 0x2ac   :  { %v1112_v10 = vadd.s32 %v1111_v19, %v1101_v37  ;;  %v984_v49 = vadd.s32 1, %v980_v13  ;;  %v981_v51 = vmul.u32 %v2037_v61, %v2072_v7  ;;  %v1059_v43 = vshrl.u32 %v1573_v24, %v2077_v50 }
 0x2ad   :  { %vm1130_vm12 = vc.u32 %v1128_v28, %v1124_v38  ;;  %v1103_v53 = vshrl.u32 %v1098_v2, 16  ;;  %v1123_v48 = vshrl.u32 %v1119_v0, 16  ;;  %v1081_v31 = vsel %vm1077_vm3, %v2102_v29, %v1080_v4 }
 0x2ae   :  { %v1131_v1 = vsel %vm1130_vm12, 1, %v1579_v56  ;;  %v985_v12 = vsel %vm983_vm11, %v984_v49, %v980_v13  ;;  %v1079_v44 = vsel %vm1075_vm1, %v1059_v43, %v2100_v62  ;;  %v1125_v61 = vshrl.u32 %v1120_v34, 16  ;;  %v1482_v49 = vld [vmem:[%s2229_s6] ss:$0 sm:$0xff]  ;;  %s1580_s6 = smov [#allocation7]  }
 0x2af   :  { %v1133_v14 = vadd.s32 %v1131_v1, %v1129_v16  ;;  %v986_v22 = vadd.s32 %v985_v12, %v981_v51  ;;  %v1113_v35 = vadd.s32 %v1112_v10, %v1103_v53  ;;  %v1132_v24 = vadd.s32 %v1128_v28, %v1124_v38  ;;  %s1307_s21 = sshll.u32 %s1580_s6, 4  ;;  %s1308_s21 = int_to_ptr.vmem [resolvable:$true] %s1307_s21 }
 0x2b0   :  { %v1082_v56 = vsel %vm1076_vm4, %v1079_v44, %v1081_v31  ;;  %v982_v41 = vadd.s32 %v977_v42, %v958_v17  ;;  %vm890_vm2 = vcmp.lt.s32.totalorder %v2027_v55, 0  ;;  %vm2186_vm3 = vcmp.le.f32.partialorder %v888_v32, 0.7853982 }
 0x2b1   :  { %v1134_v7 = vadd.s32 %v1133_v14, %v1123_v48  ;;  %v987_v60 = vadd.s32 536870912, %v986_v22  ;;  %vm1138_vm13 = vc.u32 %v1113_v35, %v1132_v24  ;;  %v1136_v62 = vmul.u32 %v2065_v63, %v1082_v56 }
 0x2b2   :  { %v1137_v39 = vadd.s32 %v1132_v24, %v1113_v35  ;;  %vm1045_vm4 = vcmp.lt.s32.totalorder %v2033_v57, 0  ;;  %vm2199_vm5 = vcmp.le.f32.partialorder %v1043_v58, 0.7853982  ;;  %vm1031_vm12 = vweird.f32 %v2027_v55 }
 0x2b3   :  { %v1135_v50 = vadd.s32 %v1134_v7, %v1125_v61  ;;  %v2176_v47 = vshrl.u32 %v987_v60, 30 }
 0x2b5   :  { %v1139_v36 = vadd.s32 1, %v1135_v50  ;;  %v989_v45 = vshll.u32 %v2176_v47, 30 }
 0x2b7   :  { %v1140_v6 = vsel %vm1138_vm13, %v1139_v36, %v1135_v50  ;;  %v990_v29 = vsub.s32 %v986_v22, %v989_v45  ;;  %v1012_v22 = vsub.s32 4, %v2176_v47  ;;  %vm1186_vm13 = vweird.f32 %v2033_v57 }
 0x2b8   :  { %v1141_v3 = vadd.s32 %v1140_v6, %v1136_v62 }
 0x2b9   :  { %vm991_vm14 = vcmp.lt.s32.totalorder %v990_v29, 0  ;;  %v992_v15 = vsub.s32 0, %v990_v29  ;;  %v1013_v50 = vsel %vm890_vm2, %v1012_v22, %v2176_v47 }
 0x2ba   :  { %v1142_v54 = vadd.s32 536870912, %v1141_v3  ;;  %v1015_v58 = vsel %vm2186_vm3, 0, %v1013_v50 }
 0x2bb   :  { %v993_v0 = vsel %vm991_vm14, %v992_v15, %v990_v29 }
 0x2bc   :  { %v2180_v33 = vshrl.u32 %v1142_v54, 30  ;;  %v994_v9 = vclz %v993_v0 }
 0x2be   :  { %v1144_v8 = vshll.u32 %v2180_v33, 30  ;;  %v1404_v2 = vadd.s32 4294967294, %v994_v9  ;;  %v1167_v36 = vsub.s32 4, %v2180_v33 }
 0x2c0   :  { %v1145_v5 = vsub.s32 %v1141_v3, %v1144_v8  ;;  %vm1405_vm15 = vcmp.lt.s32.totalorder %v1404_v2, 0  ;;  %v1168_v0 = vsel %vm1045_vm4, %v1167_v36, %v2180_v33 }
 0x2c1   :  { %v997_v59 = vsel %vm1405_vm15, 0, %v1404_v2 }
 0x2c2   :  { %vm1146_vm0 = vcmp.lt.s32.totalorder %v1145_v5, 0  ;;  %v1147_v63 = vsub.s32 0, %v1145_v5  ;;  %v998_v20 = vsub.s32 32, %v997_v59  ;;  %v1002_v23 = vsub.s32 4294967266, %v997_v59 }
 0x2c3   :  { %v999_v27 = vshll.u32 %v990_v29, %v997_v59 }
 0x2c4   :  { %v1148_v25 = vsel %vm1146_vm0, %v1147_v63, %v1145_v5  ;;  %v1000_v26 = vshrl.u32 %v982_v41, %v998_v20  ;;  %v1003_v11 = vadd.s32 127, %v1002_v23  ;;  %v1170_v63 = vsel %vm2199_vm5, 0, %v1168_v0 }
 0x2c5   :  { %v1149_v34 = vclz %v1148_v25 }
 0x2c6   :  { %v1001_v21 = vor.u32 %v1000_v26, %v999_v27  ;;  %v1004_v40 = vshll.u32 %v1003_v11, 23  ;;  %v1187_v11 = vadd.s32 3, %v1170_v63 }
 0x2c7   :  { %v1407_v18 = vadd.s32 4294967294, %v1149_v34 }
 0x2c8   :  { %v1005_v46 = vor.u32 4788187, %v1004_v40  ;;  %v1008_v19 = vcvt.s32.f32 %v1001_v21 }
 0x2c9   :  { %vm1408_vm1 = vcmp.lt.s32.totalorder %v1407_v18, 0 }
 0x2ca   :  { %v1152_v30 = vsel %vm1408_vm1, 0, %v1407_v18  ;;  %v1006_v37 = vand.u32 2147483647, %v1005_v46 }
 0x2cb   :  { %v1153_v13 = vsub.s32 32, %v1152_v30  ;;  %v1157_v38 = vsub.s32 4294967266, %v1152_v30  ;;  %v1154_v17 = vshll.u32 %v1145_v5, %v1152_v30  ;;  %v1032_v5 = vadd.s32 3, %v1015_v58 }
 0x2cc   :  { %v1009_v52 = vmul.f32 %v1008_v19, %v1006_v37 }
 0x2cd   :  { %v1155_v42 = vshrl.u32 %v1137_v39, %v1153_v13  ;;  %v1158_v28 = vadd.s32 127, %v1157_v38  ;;  %v1033_v26 = vand.u32 3, %v1032_v5  ;;  %v1188_v39 = vand.u32 3, %v1187_v11 }
 0x2ce   :  { %v1010_v10 = vxor.u32 2147483648, %v1009_v52 }
 0x2cf   :  { %v1156_v16 = vor.u32 %v1155_v42, %v1154_v17  ;;  %v1159_v4 = vshll.u32 %v1158_v28, 23  ;;  %vm1035_vm6 = vcmp.eq.s32.totalorder %v1033_v26, 0  ;;  %vm1038_vm7 = vcmp.eq.s32.totalorder %v1033_v26, 2 }
 0x2d0   :  { %v1011_v51 = vsel %vm890_vm2, %v1010_v10, %v1009_v52  ;;  %vm1034_vm8 = vcmp.lt.s32.totalorder %v1033_v26, 2  ;;  %vm1190_vm9 = vcmp.eq.s32.totalorder %v1188_v39, 0  ;;  %vm1193_vm10 = vcmp.eq.s32.totalorder %v1188_v39, 2 }
 0x2d1   :  { %v1160_v43 = vor.u32 4788187, %v1159_v4  ;;  %v1014_v53 = vsel %vm2186_vm3, %v2027_v55, %v1011_v51  ;;  %v1163_v48 = vcvt.s32.f32 %v1156_v16  ;;  %vm1189_vm11 = vcmp.lt.s32.totalorder %v1188_v39, 2 }
 0x2d2   :  { %v1016_v1 = vmul.f32 %v1014_v53, %v1014_v53 }
 0x2d3   :  { %v1161_v12 = vand.u32 2147483647, %v1160_v43 }
 0x2d4   :  { %v1017_v14 = vmul.f32 -0.001358992, %v1016_v1  ;;  %v1024_v44 = vmul.f32 -0.00019511016, %v1016_v1 }
 0x2d5   :  { %v1164_v31 = vmul.f32 %v1163_v48, %v1161_v12 }
 0x2d6   :  { %v1018_v32 = vadd.f32 0.041655596, %v1017_v14  ;;  %v1025_v35 = vadd.f32 0.008332121, %v1024_v44 }
 0x2d7   :  { %v1165_v61 = vxor.u32 2147483648, %v1164_v31 }
 0x2d8   :  { %v1019_v7 = vmul.f32 %v1018_v32, %v1016_v1  ;;  %v1026_v60 = vmul.f32 %v1025_v35, %v1016_v1 }
 0x2d9   :  { %v1166_v56 = vsel %vm1045_vm4, %v1165_v61, %v1164_v31 }
 0x2da   :  { %v1169_v62 = vsel %vm2199_vm5, %v2033_v57, %v1166_v56  ;;  %v1020_v45 = vadd.f32 -0.4999988, %v1019_v7  ;;  %v1027_v6 = vadd.f32 -0.16666654, %v1026_v60 }
 0x2db   :  { %v1171_v29 = vmul.f32 %v1169_v62, %v1169_v62 }
 0x2dc   :  { %v1028_v3 = vmul.f32 %v1027_v6, %v1016_v1  ;;  %v1021_v9 = vmul.f32 %v1020_v45, %v1016_v1 }
 0x2dd   :  { %v1172_v15 = vmul.f32 -0.001358992, %v1171_v29  ;;  %v1179_v54 = vmul.f32 -0.00019511016, %v1171_v29 }
 0x2de   :  { %v1029_v8 = vadd.f32 1.0, %v1028_v3  ;;  %v1022_v23 = vadd.f32 1.0, %v1021_v9 }
 0x2df   :  { %v1173_v47 = vadd.f32 0.041655596, %v1172_v15  ;;  %v1180_v2 = vadd.f32 0.008332121, %v1179_v54 }
 0x2e0   :  { %v1030_v59 = vmul.f32 %v1029_v8, %v1014_v53  ;;  %v1039_v33 = vxor.u32 2147483648, %v1022_v23 }
 0x2e1   :  { %v1174_v41 = vmul.f32 %v1173_v47, %v1171_v29  ;;  %v1181_v20 = vmul.f32 %v1180_v2, %v1171_v29 }
 0x2e2   :  { %v1036_v34 = vxor.u32 2147483648, %v1030_v59  ;;  %v1040_v13 = vsel %vm1038_vm7, %v1039_v33, %v1030_v59 }
 0x2e3   :  { %v1175_v25 = vadd.f32 -0.4999988, %v1174_v41  ;;  %v1182_v27 = vadd.f32 -0.16666654, %v1181_v20 }
 0x2e4   :  { %v1037_v30 = vsel %vm1035_vm6, %v1022_v23, %v1036_v34 }
 0x2e5   :  { %v1176_v21 = vmul.f32 %v1175_v25, %v1171_v29  ;;  %v1183_v40 = vmul.f32 %v1182_v27, %v1171_v29  ;;  %v1041_v52 = vsel %vm1034_vm8, %v1037_v30, %v1040_v13 }
 0x2e6   :  { %v1042_v10 = vsel %vm1031_vm12, nan, %v1041_v52 }
 0x2e7   :  { %v1177_v18 = vadd.f32 1.0, %v1176_v21  ;;  %v1184_v46 = vadd.f32 1.0, %v1183_v40 }
 0x2e9   :  { %v1185_v37 = vmul.f32 %v1184_v46, %v1169_v62  ;;  %v1194_v19 = vxor.u32 2147483648, %v1177_v18 }
 0x2eb   :  { %v1191_v38 = vxor.u32 2147483648, %v1185_v37  ;;  %v1195_v42 = vsel %vm1193_vm10, %v1194_v19, %v1185_v37 }
 0x2ed   :  { %v1192_v17 = vsel %vm1190_vm9, %v1177_v18, %v1191_v38 }
 0x2ee   :  { %v1196_v28 = vsel %vm1189_vm11, %v1192_v17, %v1195_v42 }
 0x2ef   :  { %v1197_v16 = vsel %vm1186_vm13, nan, %v1196_v28 }
 0x2f0   :  { %v1198_v4 = vpack.c.bf16 %v1197_v16, %v1042_v10 }
 0x2f2   :  { %1275 = vmatmul.bf16.vlgmr.msra.gmra.mxu3 %v1198_v4 }
 0x375   :  { %v1276_v51 = vpop.f32.mrf.mxu3 }
 0x376   :  { %v1277_v43 = vadd.f32 %v1482_v49, %v1276_v51 }
 0x378   :  { %1281 = vmax.xlane.f32.xlu0 %v1277_v43 }
 0x37d   :  { %v1278_v53 = vpop.f32.mrf.mxu3 }
 0x37e   :  { %v1279_v1 = vadd.f32 %v1482_v49, %v1278_v53 }
 0x380   :  { %1283 = vmax.xlane.f32.xlu0 %v1279_v1 }
 0x3eb   :  { %v1282_v12 = vpop.xlane.xlu0 %1281 }
 0x3ec   :  { %v1285_v48 = vsub.f32 %v1277_v43, %v1282_v12 }
 0x3ee   :  { %v1287_v55 = vmul.f32 1.442695, %v1285_v48 }
 0x3f0   :  { %1483 = vpow2.f32 %v1287_v55 }
 0x3f3   :  { %v1284_v57 = vpop.xlane.xlu0 %1283 }
 0x3f4   :  { %v1286_v14 = vsub.f32 %v1279_v1, %v1284_v57 }
 0x3f6   :  { %v1484_v44 = vpop.eup %1483  ;;  %v1289_v31 = vmul.f32 1.442695, %v1286_v14 }
 0x3f7   :  { %1291 = vadd.xlane.f32.xlu1 %v1484_v44 }
 0x3f8   :  { %1485 = vpow2.f32 %v1289_v31 }
 0x3fe   :  { %v1486_v22 = vpop.eup %1485 }
 0x3ff   :  { %1293 = vadd.xlane.f32.xlu1 %v1486_v22 }
 0x46a   :  { %v1292_v32 = vpop.xlane.xlu1 %1291 }
 0x46b   :  { %1487 = vrcp.f32 %v1292_v32 }
 0x471   :  { %v1488_v35 = vpop.eup %1487 }
 0x472   :  { %v1297_v61 = vmul.f32 0.5, %v1488_v35  ;;  %v1294_v7 = vpop.xlane.xlu1 %1293 }
 0x473   :  { %1489 = vrcp.f32 %v1294_v7 }
 0x474   :  { %v1299_v60 = vmul.f32 %v1484_v44, %v1297_v61 }
 0x476   :  { %1301 = vst [vmem:[#allocation7] sm:$0xff] %v1299_v60 }
 0x479   :  { %v1490_v24 = vpop.eup %1489 }
 0x47a   :  { %v1298_v56 = vmul.f32 0.5, %v1490_v24 }
 0x47c   :  { %v1300_v50 = vmul.f32 %v1486_v22, %v1298_v56 }
 0x47e   :  { %1302 = vst [vmem:[#allocation7 + $0x8] sm:$0xff] %v1300_v50 }
 0x47f   :  { %1315 = dma.vmem_to_hbm [thread:$0]  %s1308_s21, 256, %s1310_s24, [#allocation4], %s1581_s25, %s1581_s25, %s1582_s26  }
 0x480   :  { %1567 = dma.done.wait [#allocation4], 256  }
 0x481   :  { %1568 = vsyncadd [#allocation4], 4294967040 }
 0x482   :  { %1320 = vsyncpa [#allocation3], 1 }
 0x483   :  { %1321 = vsyncpa [#allocation6], 1 }
 0x484   :  { %1322 = vsyncpa [#allocation4], 1 }

// kernel: tpu_custom_call.1
= control target key start
LH: loop header
LB: loop body
LE: loop exit
PB: predicated region body
PF: predicated region fallthrough
CT: control target
= control target key end

     0   :  { %12 = vsyncpa [#allocation3], 0  ;;  %s2223_s0 = inlined_call_operand.vmem [shape: f32[16,4], index: 0, kind: input, shape index: {}]   ;;  %s2224_s1 = inlined_call_operand.vmem [shape: f32[4,128], index: 1, kind: input, shape index: {}]   ;;  %s2225_s2 = inlined_call_operand.vmem [shape: f32[1,128], index: 2, kind: input, shape index: {}]   ;;  %s2226_s3 = inlined_call_operand.hbm [shape: bf16[2,128,128], index: 3, kind: input, shape index: {}]   ;;  %s2227_s4 = inlined_call_operand.vmem [shape: f32[2,1,128], index: 4, kind: input, shape index: {}]   ;;  %s2228_s5 = inlined_call_operand.hbm [shape: bf16[128,128], index: 5, kind: input, shape index: {}]   ;;  %s2229_s6 = inlined_call_operand.vmem [shape: f32[1,128], index: 6, kind: input, shape index: {}]   ;;  %s2230_s7 = inlined_call_operand.hbm [shape: f32[16,128], index: 7, kind: output, shape index: {}]  }
   0x1   :  { %13 = vsyncpa [#allocation6], 0 }
   0x2   :  { %14 = vsyncpa [#allocation4], 0  ;;  %s25_s26 = sshll.u32 %s2226_s3, 4  ;;  %s1569_s27 = smov [#allocation2]   ;;  %s26_s26 = int_to_ptr.hbm [resolvable:$true] %s25_s26 }
   0x3   :  { %s27_s28 = sshll.u32 %s1569_s27, 4  ;;  %s40_s8 = sshll.u32 %s2228_s5, 4  ;;  %s28_s28 = int_to_ptr.vmem [resolvable:$true] %s27_s28  ;;  %s41_s8 = int_to_ptr.hbm [resolvable:$true] %s40_s8 }
   0x4   :  { %s1570_s9 = smov 64   ;;  %s1571_s10 = smov 4  }
   0x5   :  { %33 = dma.hbm_to_vmem [thread:$0]  %s26_s26, 2048, %s28_s28, [#allocation3], %s1570_s9, %s1570_s9, %s1571_s10  }
   0x6   :  { %s1572_s11 = smov [#allocation5]  }
   0x7   :  { %s42_s12 = sshll.u32 %s1572_s11, 4  ;;  %s43_s12 = int_to_ptr.vmem [resolvable:$true] %s42_s12 }
   0x8   :  { %48 = dma.hbm_to_vmem [thread:$0]  %s41_s8, 1024, %s43_s12, [#allocation6], %s1570_s9, %s1570_s9, %s1571_s10  }
   0x9   :  { %1563 = dma.done.wait [#allocation3], 2048  }
   0xa   :  { %1564 = vsyncadd [#allocation3], 4294965248 }
   0xb   :  { %1565 = dma.done.wait [#allocation6], 1024  }
   0xc   :  { %1566 = vsyncadd [#allocation6], 4294966272  ;;  %vm73_vm0 = vcmask 1043456   ;;  %vm66_vm1 = vcmask 31744   ;;  %v61_v0 = vld [vmem:[%s2224_s1] sm:$0xf] }
   0xd   :  { %v59_v1 = vld [vmem:[%s2223_s0] sm:$0xff]  ;;  %1323 = vmatpush.msk.msra.mxu0 %vm73_vm0, %v61_v0  ;;  %v60_v2 = vld [vmem:[%s2223_s0 + $0x8] sm:$0xff]  ;;  %v1448_v19 = vld [vmem:[#allocation2 + $0x38] sm:$0xff]  ;;  %v1573_v24 = vmov 683565275   ;;  %s1309_s24 = sshll.u32 %s2230_s7, 4  ;;  %s1310_s24 = int_to_ptr.hbm [resolvable:$true] %s1309_s24 }
   0xe   :  { %1324 = vmatmul.msk.f32.vlgmr.msra.gmra.mxu0 %vm66_vm1, %v59_v1  ;;  %v1479_v3 = vld [vmem:[%s2225_s2] ss:$0 sm:$0xff]  ;;  %v1574_v26 = vmov 2475754826   ;;  %479 = vmatpush.bf16.msra.mxu1 %v1448_v19  ;;  %v1447_v29 = vld [vmem:[#allocation2 + $0x30] sm:$0xff]  ;;  %v1446_v48 = vld [vmem:[#allocation2 + $0x28] sm:$0xff] }
   0xf   :  { %v1575_v31 = vmov 2131351028   ;;  %v1576_v34 = vmov 2102212464   ;;  %v1577_v37 = vmov 920167782  }
  0x10   :  { %v1578_v40 = vmov 1326507024   ;;  %v1445_v60 = vld [vmem:[#allocation2 + $0x20] sm:$0xff]  ;;  %s1581_s25 = smov 128   ;;  %s1582_s26 = smov 8  }
  0x12   :  { %480 = vmatpush.bf16.msra.mxu1 %v1447_v29 }
  0x16   :  { %1325 = vmatmul.msk.f32.gmra.mxu0 %vm66_vm1, %v60_v2  ;;  %481 = vmatpush.bf16.msra.mxu1 %v1446_v48 }
  0x1a   :  { %482 = vmatpush.bf16.msra.mxu1 %v1445_v60 }
  0x8b   :  { %v94_v4 = vpop.f32.mrf.mxu0 }
  0x8c   :  { %v1641_v5 = vadd.f32 %v1479_v3, %v94_v4 }
  0x8e   :  { %v100_v6 = vand.u32 2147483647, %v1641_v5  ;;  %v103_v7 = vand.u32 2139095040, %v1641_v5 }
  0x90   :  { %v104_v8 = vshrl.u32 %v103_v7, 23  ;;  %v107_v10 = vand.u32 8388607, %v100_v6 }
  0x92   :  { %v1326_v9 = vadd.s32 4294967169, %v104_v8  ;;  %v108_v14 = vor.u32 8388608, %v107_v10  ;;  %v1444_v10 = vld [vmem:[#allocation2 + $0x18] sm:$0xff] }
  0x93   :  { %v97_v11 = vpop.f32.mrf.mxu0  ;;  %483 = vmatpush.bf16.msra.mxu1 %v1444_v10 }
  0x94   :  { %v110_v12 = vadd.s32 1, %v1326_v9  ;;  %v1647_v13 = vadd.f32 %v1479_v3, %v97_v11  ;;  %v1651_v21 = vshll.u32 %v108_v14, 8 }
  0x96   :  { %vm111_vm2 = vcmp.gt.s32.totalorder %v110_v12, 0  ;;  %v255_v16 = vand.u32 2147483647, %v1647_v13  ;;  %v258_v17 = vand.u32 2139095040, %v1647_v13  ;;  %v1674_v63 = vand.u32 65535, %v1651_v21 }
  0x97   :  { %v112_v15 = vsel %vm111_vm2, %v110_v12, 0  ;;  %v150_v8 = vshrl.u32 %v1651_v21, 16 }
  0x98   :  { %v114_v18 = vand.u32 31, %v112_v15  ;;  %v259_v22 = vshrl.u32 %v258_v17, 23  ;;  %v113_v23 = vshrl.u32 %v112_v15, 5  ;;  %v262_v28 = vand.u32 8388607, %v255_v16 }
  0x9a   :  { %v115_v20 = vsub.s32 32, %v114_v18  ;;  %v117_v25 = vshll.u32 %v1573_v24, %v114_v18  ;;  %v120_v27 = vshll.u32 %v1574_v26, %v114_v18  ;;  %v123_v33 = vshll.u32 %v1575_v31, %v114_v18 }
  0x9b   :  { %v126_v36 = vshll.u32 %v1576_v34, %v114_v18  ;;  %v129_v39 = vshll.u32 %v1577_v37, %v114_v18  ;;  %v1329_v45 = vadd.s32 4294967169, %v259_v22  ;;  %vm132_vm3 = vcmp.lt.s32.totalorder %v113_v23, 1 }
  0x9c   :  { %v118_v30 = vshrl.u32 %v1574_v26, %v115_v20  ;;  %v121_v32 = vshrl.u32 %v1575_v31, %v115_v20  ;;  %v124_v35 = vshrl.u32 %v1576_v34, %v115_v20  ;;  %v127_v38 = vshrl.u32 %v1577_v37, %v115_v20 }
  0x9d   :  { %v130_v41 = vshrl.u32 %v1578_v40, %v115_v20  ;;  %vm135_vm4 = vcmp.lt.s32.totalorder %v113_v23, 4  ;;  %vm133_vm5 = vcmp.lt.s32.totalorder %v113_v23, 2  ;;  %vm134_vm6 = vcmp.lt.s32.totalorder %v113_v23, 3 }
  0x9e   :  { %v119_v42 = vor.u32 %v118_v30, %v117_v25  ;;  %v122_v43 = vor.u32 %v121_v32, %v120_v27  ;;  %v125_v44 = vor.u32 %v124_v35, %v123_v33  ;;  %v128_v46 = vor.u32 %v127_v38, %v126_v36  ;;  %v1443_v32 = vld [vmem:[#allocation2 + $0x10] sm:$0xff] }
  0x9f   :  { %v131_v47 = vor.u32 %v130_v41, %v129_v39  ;;  %v263_v53 = vor.u32 8388608, %v262_v28  ;;  %v265_v54 = vadd.s32 1, %v1329_v45  ;;  %v116_v55 = vshrl.u32 %v1573_v24, %v115_v20  ;;  %484 = vmatpush.bf16.msra.mxu1 %v1443_v32 }
  0xa0   :  { %v137_v49 = vsel %vm135_vm4, %v125_v44, 2102212464  ;;  %v144_v50 = vsel %vm132_vm3, %v122_v43, %v125_v44  ;;  %v141_v51 = vsel %vm135_vm4, %v128_v46, 920167782  ;;  %v140_v56 = vsel %vm132_vm3, %v119_v42, %v122_v43 }
  0xa1   :  { %v145_v52 = vsel %vm135_vm4, %v131_v47, 1326507024  ;;  %v142_v57 = vsel %vm134_vm6, %v125_v44, %v141_v51  ;;  %vm266_vm7 = vcmp.gt.s32.totalorder %v265_v54, 0  ;;  %v136_v61 = vsel %vm132_vm3, %v116_v55, %v119_v42 }
  0xa2   :  { %v146_v58 = vsel %vm134_vm6, %v128_v46, %v145_v52  ;;  %v138_v62 = vsel %vm134_vm6, %v122_v43, %v137_v49  ;;  %v1677_v1 = vsel %vm133_vm5, %v140_v56, %v142_v57  ;;  %v267_v3 = vsel %vm266_vm7, %v265_v54, 0 }
  0xa3   :  { %v147_v59 = vsel %vm133_vm5, %v144_v50, %v146_v58  ;;  %v1679_v4 = vshll.u32 %v263_v53, 8  ;;  %v269_v9 = vand.u32 31, %v267_v3  ;;  %v1686_v11 = vsel %vm133_vm5, %v136_v61, %v138_v62  ;;  %v1442_v50 = vld [vmem:[#allocation2 + $0x8] sm:$0xff] }
  0xa4   :  { %v152_v0 = vshrl.u32 %v147_v59, 16  ;;  %v151_v2 = vand.u32 65535, %v147_v59  ;;  %v173_v12 = vand.u32 65535, %v1677_v1  ;;  %v174_v14 = vshrl.u32 %v1677_v1, 16  ;;  %485 = vmatpush.bf16.msra.mxu1 %v1442_v50 }
  0xa5   :  { %v1691_v18 = vsub.s32 32, %v269_v9  ;;  %v1694_v19 = vand.u32 65535, %v1679_v4  ;;  %v1697_v22 = vshrl.u32 %v267_v3, 5  ;;  %v272_v23 = vshll.u32 %v1573_v24, %v269_v9 }
  0xa6   :  { %v1682_v7 = vmul.u32 %v152_v0, %v1674_v63  ;;  %v153_v15 = vmul.u32 %v151_v2, %v1674_v63  ;;  %v156_v17 = vmul.u32 %v152_v0, %v150_v8  ;;  %v275_v25 = vshll.u32 %v1574_v26, %v269_v9 }
  0xa7   :  { %v273_v27 = vshrl.u32 %v1574_v26, %v1691_v18  ;;  %v276_v28 = vshrl.u32 %v1575_v31, %v1691_v18  ;;  %v278_v29 = vshll.u32 %v1575_v31, %v269_v9  ;;  %v279_v30 = vshrl.u32 %v1576_v34, %v1691_v18 }
  0xa8   :  { %v157_v20 = vshll.u32 %v1682_v7, 16  ;;  %v281_v33 = vshll.u32 %v1576_v34, %v269_v9  ;;  %v282_v35 = vshrl.u32 %v1577_v37, %v1691_v18  ;;  %v284_v36 = vshll.u32 %v1577_v37, %v269_v9 }
  0xa9   :  { %v285_v38 = vshrl.u32 %v1578_v40, %v1691_v18  ;;  %v1714_v39 = vor.u32 %v273_v27, %v272_v23  ;;  %v1716_v41 = vor.u32 %v276_v28, %v275_v25  ;;  %v1718_v42 = vor.u32 %v279_v30, %v278_v29 }
  0xaa   :  { %v1720_v43 = vmul.u32 %v151_v2, %v150_v8  ;;  %vm1722_vm8 = vc.u32 %v153_v15, %v157_v20  ;;  %v283_v45 = vor.u32 %v282_v35, %v281_v33  ;;  %vm287_vm9 = vcmp.lt.s32.totalorder %v1697_v22, 1  ;;  %v1441_v2 = vld [vmem:[#allocation2] sm:$0xff] }
  0xab   :  { %v286_v46 = vor.u32 %v285_v38, %v284_v36  ;;  %v1728_v47 = vmul.u32 %v174_v14, %v1674_v63  ;;  %vm290_vm10 = vcmp.lt.s32.totalorder %v1697_v22, 4  ;;  %v295_v48 = vsel %vm287_vm9, %v1714_v39, %v1716_v41  ;;  %486 = vmatpush.bf16.msra.mxu1 %v1441_v2 }
  0xac   :  { %v299_v49 = vsel %vm287_vm9, %v1716_v41, %v1718_v42  ;;  %v163_v51 = vadd.s32 %v157_v20, %v153_v15  ;;  %vm289_vm11 = vcmp.lt.s32.totalorder %v1697_v22, 3  ;;  %v296_v52 = vsel %vm290_vm10, %v283_v45, 920167782 }
  0xad   :  { %v300_v53 = vsel %vm290_vm10, %v286_v46, 1326507024  ;;  %vm288_vm12 = vcmp.lt.s32.totalorder %v1697_v22, 2  ;;  %v297_v54 = vsel %vm289_vm11, %v1718_v42, %v296_v52  ;;  %v1579_v56 = vmov 0  }
  0xae   :  { %v301_v55 = vsel %vm289_vm11, %v283_v45, %v300_v53  ;;  %v162_v57 = vsel %vm1722_vm8, 1, %v1579_v56  ;;  %v298_v58 = vsel %vm288_vm12, %v295_v48, %v297_v54  ;;  %v159_v60 = vshll.u32 %v1720_v43, 16 }
  0xaf   :  { %v302_v59 = vsel %vm288_vm12, %v299_v49, %v301_v55  ;;  %v177_v61 = vmul.u32 %v173_v12, %v150_v8  ;;  %v305_v62 = vshrl.u32 %v1679_v4, 16  ;;  %v164_v3 = vadd.s32 %v162_v57, %v156_v17 }
  0xb0   :  { %v306_v0 = vand.u32 65535, %v302_v59  ;;  %v307_v1 = vshrl.u32 %v302_v59, 16  ;;  %v329_v9 = vshrl.u32 %v298_v58, 16  ;;  %vm165_vm13 = vc.u32 %v163_v51, %v159_v60 }
  0xb1   :  { %v175_v10 = vmul.u32 %v173_v12, %v1674_v63  ;;  %v179_v15 = vshll.u32 %v1728_v47, 16  ;;  %v178_v20 = vmul.u32 %v174_v14, %v150_v8  ;;  %v328_v25 = vand.u32 65535, %v298_v58 }
  0xb2   :  { %v309_v23 = vmul.u32 %v307_v1, %v1694_v19  ;;  %v158_v27 = vshrl.u32 %v1682_v7, 16  ;;  %v308_v28 = vmul.u32 %v306_v0, %v1694_v19  ;;  %v166_v29 = vsel %vm165_vm13, 1, %v1579_v56 }
  0xb3   :  { %v181_v30 = vshll.u32 %v177_v61, 16  ;;  %vm183_vm14 = vc.u32 %v175_v10, %v179_v15  ;;  %v168_v17 = vadd.s32 %v166_v29, %v164_v3  ;;  %v185_v63 = vadd.s32 %v179_v15, %v175_v10 }
  0xb4   :  { %v312_v32 = vshll.u32 %v309_v23, 16  ;;  %v184_v33 = vsel %vm183_vm14, 1, %v1579_v56  ;;  %v331_v12 = vmul.u32 %v329_v9, %v1694_v19  ;;  %v160_v8 = vshrl.u32 %v1720_v43, 16 }
  0xb5   :  { %v186_v14 = vadd.s32 %v184_v33, %v178_v20  ;;  %v310_v35 = vmul.u32 %v306_v0, %v305_v62  ;;  %v169_v36 = vadd.s32 %v168_v17, %v158_v27  ;;  %vm187_vm0 = vc.u32 %v185_v63, %v181_v30 }
  0xb6   :  { %vm316_vm15 = vc.u32 %v308_v28, %v312_v32  ;;  %v318_v7 = vadd.s32 %v312_v32, %v308_v28  ;;  %v311_v38 = vmul.u32 %v307_v1, %v305_v62  ;;  %v180_v44 = vshrl.u32 %v1728_v47, 16 }
  0xb7   :  { %v188_v45 = vsel %vm187_vm0, 1, %v1579_v56  ;;  %v314_v46 = vshll.u32 %v310_v35, 16  ;;  %v317_v49 = vsel %vm316_vm15, 1, %v1579_v56  ;;  %v330_v50 = vmul.u32 %v328_v25, %v1694_v19 }
  0xb8   :  { %v190_v48 = vadd.s32 %v188_v45, %v186_v14  ;;  %v332_v51 = vmul.u32 %v328_v25, %v305_v62  ;;  %v170_v52 = vadd.s32 %v169_v36, %v160_v8  ;;  %v319_v43 = vadd.s32 %v317_v49, %v311_v38 }
  0xb9   :  { %vm320_vm1 = vc.u32 %v318_v7, %v314_v46  ;;  %v334_v53 = vshll.u32 %v331_v12, 16  ;;  %v333_v54 = vmul.u32 %v329_v9, %v305_v62  ;;  %v182_v55 = vshrl.u32 %v177_v61, 16 }
  0xba   :  { %v191_v57 = vadd.s32 %v190_v48, %v180_v44  ;;  %v321_v58 = vsel %vm320_vm1, 1, %v1579_v56  ;;  %v189_v59 = vadd.s32 %v185_v63, %v181_v30  ;;  %v313_v47 = vshrl.u32 %v309_v23, 16 }
  0xbb   :  { %v323_v60 = vadd.s32 %v321_v58, %v319_v43  ;;  %vm338_vm2 = vc.u32 %v330_v50, %v334_v53  ;;  %v336_v1 = vshll.u32 %v332_v51, 16  ;;  %v340_v3 = vadd.s32 %v334_v53, %v330_v50 }
  0xbc   :  { %v192_v0 = vadd.s32 %v191_v57, %v182_v55  ;;  %v339_v2 = vsel %vm338_vm2, 1, %v1579_v56  ;;  %vm195_vm3 = vc.u32 %v170_v52, %v189_v59  ;;  %v292_v62 = vsel %vm290_vm10, %v1718_v42, 2102212464 }
  0xbd   :  { %v324_v19 = vadd.s32 %v323_v60, %v313_v47  ;;  %v341_v10 = vadd.s32 %v339_v2, %v333_v54  ;;  %vm342_vm4 = vc.u32 %v340_v3, %v336_v1  ;;  %v193_v9 = vmul.u32 %v1651_v21, %v1686_v11 }
  0xbe   :  { %v196_v61 = vadd.s32 1, %v192_v0  ;;  %v271_v15 = vshrl.u32 %v1573_v24, %v1691_v18  ;;  %v315_v20 = vshrl.u32 %v310_v35, 16  ;;  %v343_v23 = vsel %vm342_vm4, 1, %v1579_v56 }
  0xbf   :  { %v335_v27 = vshrl.u32 %v331_v12, 16  ;;  %v345_v28 = vadd.s32 %v343_v23, %v341_v10  ;;  %v293_v42 = vsel %vm289_vm11, %v1716_v41, %v292_v62  ;;  %v337_v21 = vshrl.u32 %v332_v51, 16 }
  0xc0   :  { %v197_v25 = vsel %vm195_vm3, %v196_v61, %v192_v0  ;;  %v291_v29 = vsel %vm287_vm9, %v271_v15, %v1714_v39  ;;  %v325_v32 = vadd.s32 %v324_v19, %v315_v20  ;;  %v344_v18 = vadd.s32 %v340_v3, %v336_v1 }
  0xc1   :  { %v198_v30 = vadd.s32 %v197_v25, %v193_v9  ;;  %v346_v11 = vadd.s32 %v345_v28, %v335_v27  ;;  %v294_v33 = vsel %vm288_vm12, %v291_v29, %v293_v42  ;;  %v194_v51 = vadd.s32 %v189_v59, %v170_v52 }
  0xc2   :  { %vm350_vm5 = vc.u32 %v325_v32, %v344_v18  ;;  %v348_v39 = vmul.u32 %v1679_v4, %v294_v33  ;;  %v349_v3 = vadd.s32 %v344_v18, %v325_v32  ;;  %vm102_vm10 = vcmp.lt.s32.totalorder %v1641_v5, 0 }
  0xc3   :  { %v199_v17 = vadd.s32 536870912, %v198_v30  ;;  %v347_v63 = vadd.s32 %v346_v11, %v337_v21  ;;  %vm1800_vm11 = vcmp.le.f32.partialorder %v100_v6, 0.7853982  ;;  %vm257_vm12 = vcmp.lt.s32.totalorder %v1647_v13, 0 }
  0xc4   :  { %vm1813_vm13 = vcmp.le.f32.partialorder %v255_v16, 0.7853982  ;;  %vm243_vm4 = vweird.f32 %v1641_v5 }
  0xc5   :  { %v1790_v12 = vshrl.u32 %v199_v17, 30  ;;  %v351_v8 = vadd.s32 1, %v347_v63 }
  0xc7   :  { %v201_v14 = vshll.u32 %v1790_v12, 30  ;;  %v352_v35 = vsel %vm350_vm5, %v351_v8, %v347_v63  ;;  %v224_v63 = vsub.s32 4, %v1790_v12  ;;  %vm398_vm5 = vweird.f32 %v1647_v13 }
  0xc8   :  { %v353_v7 = vadd.s32 %v352_v35, %v348_v39 }
  0xc9   :  { %v202_v41 = vsub.s32 %v198_v30, %v201_v14 }
  0xca   :  { %v354_v38 = vadd.s32 536870912, %v353_v7 }
  0xcb   :  { %vm203_vm6 = vcmp.lt.s32.totalorder %v202_v41, 0  ;;  %v204_v36 = vsub.s32 0, %v202_v41 }
  0xcc   :  { %v1794_v45 = vshrl.u32 %v354_v38, 30 }
  0xcd   :  { %v205_v44 = vsel %vm203_vm6, %v204_v36, %v202_v41  ;;  %v225_v36 = vsel %vm102_vm10, %v224_v63, %v1790_v12 }
  0xce   :  { %v206_v22 = vclz %v205_v44  ;;  %v356_v46 = vshll.u32 %v1794_v45, 30  ;;  %v379_v38 = vsub.s32 4, %v1794_v45  ;;  %v227_v16 = vsel %vm1800_vm11, 0, %v225_v36 }
  0xd0   :  { %v1327_v48 = vadd.s32 4294967294, %v206_v22  ;;  %v357_v49 = vsub.s32 %v353_v7, %v356_v46 }
  0xd2   :  { %vm1328_vm7 = vcmp.lt.s32.totalorder %v1327_v48, 0  ;;  %vm358_vm8 = vcmp.lt.s32.totalorder %v357_v49, 0  ;;  %v359_v4 = vsub.s32 0, %v357_v49 }
  0xd3   :  { %v209_v50 = vsel %vm1328_vm7, 0, %v1327_v48 }
  0xd4   :  { %v210_v43 = vsub.s32 32, %v209_v50  ;;  %v214_v53 = vsub.s32 4294967266, %v209_v50  ;;  %v360_v54 = vsel %vm358_vm8, %v359_v4, %v357_v49  ;;  %v211_v55 = vshll.u32 %v202_v41, %v209_v50 }
  0xd5   :  { %v361_v47 = vclz %v360_v54 }
  0xd6   :  { %v212_v57 = vshrl.u32 %v194_v51, %v210_v43  ;;  %v215_v58 = vadd.s32 127, %v214_v53  ;;  %v380_v51 = vsel %vm257_vm12, %v379_v38, %v1794_v45 }
  0xd7   :  { %v1330_v1 = vadd.s32 4294967294, %v361_v47 }
  0xd8   :  { %v213_v60 = vor.u32 %v212_v57, %v211_v55  ;;  %v216_v0 = vshll.u32 %v215_v58, 23  ;;  %v244_v55 = vadd.s32 3, %v227_v16  ;;  %v382_v58 = vsel %vm1813_vm13, 0, %v380_v51 }
  0xd9   :  { %vm1331_vm9 = vcmp.lt.s32.totalorder %v1330_v1, 0 }
  0xda   :  { %v217_v2 = vor.u32 4788187, %v216_v0  ;;  %v364_v19 = vsel %vm1331_vm9, 0, %v1330_v1  ;;  %v220_v62 = vcvt.s32.f32 %v213_v60 }
  0xdb   :  { %v365_v61 = vsub.s32 32, %v364_v19  ;;  %v369_v9 = vsub.s32 4294967266, %v364_v19  ;;  %v366_v52 = vshll.u32 %v357_v49, %v364_v19  ;;  %v399_v19 = vadd.s32 3, %v382_v58 }
  0xdc   :  { %v218_v10 = vand.u32 2147483647, %v217_v2 }
  0xdd   :  { %v367_v59 = vshrl.u32 %v349_v3, %v365_v61  ;;  %v370_v20 = vadd.s32 127, %v369_v9  ;;  %v245_v3 = vand.u32 3, %v244_v55 }
  0xde   :  { %v221_v15 = vmul.f32 %v220_v62, %v218_v10 }
  0xdf   :  { %v368_v25 = vor.u32 %v367_v59, %v366_v52  ;;  %v371_v27 = vshll.u32 %v370_v20, 23  ;;  %vm247_vm14 = vcmp.eq.s32.totalorder %v245_v3, 0  ;;  %v400_v52 = vand.u32 3, %v399_v19 }
  0xe0   :  { %v222_v23 = vxor.u32 2147483648, %v221_v15  ;;  %vm250_vm15 = vcmp.eq.s32.totalorder %v245_v3, 2  ;;  %vm246_vm0 = vcmp.lt.s32.totalorder %v245_v3, 2 }
  0xe1   :  { %v372_v42 = vor.u32 4788187, %v371_v27  ;;  %v375_v11 = vcvt.s32.f32 %v368_v25  ;;  %vm402_vm1 = vcmp.eq.s32.totalorder %v400_v52, 0  ;;  %vm405_vm2 = vcmp.eq.s32.totalorder %v400_v52, 2 }
  0xe2   :  { %v223_v29 = vsel %vm102_vm10, %v222_v23, %v221_v15  ;;  %vm401_vm3 = vcmp.lt.s32.totalorder %v400_v52, 2 }
  0xe3   :  { %v226_v30 = vsel %vm1800_vm11, %v1641_v5, %v223_v29  ;;  %v373_v21 = vand.u32 2147483647, %v372_v42 }
  0xe4   :  { %v228_v32 = vmul.f32 %v226_v30, %v226_v30 }
  0xe5   :  { %v376_v33 = vmul.f32 %v375_v11, %v373_v21 }
  0xe6   :  { %v229_v17 = vmul.f32 -0.001358992, %v228_v32  ;;  %v236_v18 = vmul.f32 -0.00019511016, %v228_v32 }
  0xe7   :  { %v377_v39 = vxor.u32 2147483648, %v376_v33 }
  0xe8   :  { %v230_v6 = vadd.f32 0.041655596, %v229_v17  ;;  %v237_v8 = vadd.f32 0.008332121, %v236_v18  ;;  %v1480_v17 = vld [vmem:[%s2227_s4] ss:$0 sm:$0xff] }
  0xe9   :  { %v378_v7 = vsel %vm257_vm12, %v377_v39, %v376_v33 }
  0xea   :  { %v231_v14 = vmul.f32 %v230_v6, %v228_v32  ;;  %v238_v35 = vmul.f32 %v237_v8, %v228_v32  ;;  %v381_v44 = vsel %vm1813_vm13, %v1647_v13, %v378_v7 }
  0xeb   :  { %v383_v48 = vmul.f32 %v381_v44, %v381_v44 }
  0xec   :  { %v232_v22 = vadd.f32 -0.4999988, %v231_v14  ;;  %v239_v46 = vadd.f32 -0.16666654, %v238_v35 }
  0xed   :  { %v384_v50 = vmul.f32 -0.001358992, %v383_v48  ;;  %v391_v4 = vmul.f32 -0.00019511016, %v383_v48 }
  0xee   :  { %v240_v49 = vmul.f32 %v239_v46, %v228_v32  ;;  %v233_v43 = vmul.f32 %v232_v22, %v228_v32  ;;  %v1456_v22 = vld [vmem:[#allocation2 + $0x78] sm:$0xff] }
  0xef   :  { %v385_v12 = vadd.f32 0.041655596, %v384_v50  ;;  %v392_v54 = vadd.f32 0.008332121, %v391_v4  ;;  %874 = vmatpush.bf16.msra.mxu2 %v1456_v22 }
  0xf0   :  { %v241_v53 = vadd.f32 1.0, %v240_v49  ;;  %v234_v0 = vadd.f32 1.0, %v233_v43  ;;  %v1455_v43 = vld [vmem:[#allocation2 + $0x70] sm:$0xff] }
  0xf1   :  { %v386_v47 = vmul.f32 %v385_v12, %v383_v48  ;;  %v393_v60 = vmul.f32 %v392_v54, %v383_v48 }
  0xf2   :  { %v242_v57 = vmul.f32 %v241_v53, %v226_v30  ;;  %v251_v45 = vxor.u32 2147483648, %v234_v0 }
  0xf3   :  { %v387_v1 = vadd.f32 -0.4999988, %v386_v47  ;;  %v394_v2 = vadd.f32 -0.16666654, %v393_v60  ;;  %875 = vmatpush.bf16.msra.mxu2 %v1455_v43 }
  0xf4   :  { %v248_v10 = vxor.u32 2147483648, %v242_v57  ;;  %v252_v25 = vsel %vm250_vm15, %v251_v45, %v242_v57 }
  0xf5   :  { %v388_v62 = vmul.f32 %v387_v1, %v383_v48  ;;  %v395_v61 = vmul.f32 %v394_v2, %v383_v48 }
  0xf6   :  { %v249_v59 = vsel %vm247_vm14, %v234_v0, %v248_v10 }
  0xf7   :  { %v389_v9 = vadd.f32 1.0, %v388_v62  ;;  %v396_v15 = vadd.f32 1.0, %v395_v61  ;;  %v253_v28 = vsel %vm246_vm0, %v249_v59, %v252_v25  ;;  %v1454_v62 = vld [vmem:[#allocation2 + $0x68] sm:$0xff] }
  0xf8   :  { %v254_v32 = vsel %vm243_vm4, nan, %v253_v28  ;;  %876 = vmatpush.bf16.msra.mxu2 %v1454_v62 }
  0xf9   :  { %v397_v20 = vmul.f32 %v396_v15, %v381_v44  ;;  %v406_v23 = vxor.u32 2147483648, %v389_v9 }
  0xfb   :  { %v403_v27 = vxor.u32 2147483648, %v397_v20  ;;  %v407_v42 = vsel %vm405_vm2, %v406_v23, %v397_v20 }
  0xfd   :  { %v404_v29 = vsel %vm402_vm1, %v389_v9, %v403_v27 }
  0xfe   :  { %v408_v30 = vsel %vm401_vm3, %v404_v29, %v407_v42  ;;  %v1453_v29 = vld [vmem:[#allocation2 + $0x60] sm:$0xff] }
  0xff   :  { %v409_v21 = vsel %vm398_vm5, nan, %v408_v30  ;;  %877 = vmatpush.bf16.msra.mxu2 %v1453_v29 }
 0x100   :  { %v427_v11 = vpack.c.bf16 %v409_v21, %v254_v32 }
 0x102   :  { %487 = vmatmul.bf16.vlgmr.msra.gmra.mxu1 %v427_v11 }
 0x17f   :  { %v488_v18 = vpop.f32.mrf.mxu1 }
 0x180   :  { %v1834_v33 = vadd.f32 %v1480_v17, %v488_v18 }
 0x182   :  { %v493_v63 = vand.u32 2147483647, %v1834_v33  ;;  %v496_v6 = vand.u32 2139095040, %v1834_v33 }
 0x184   :  { %v497_v8 = vshrl.u32 %v496_v6, 23  ;;  %v500_v13 = vand.u32 8388607, %v493_v63 }
 0x186   :  { %v1364_v5 = vadd.s32 4294967169, %v497_v8  ;;  %v501_v41 = vor.u32 8388608, %v500_v13 }
 0x187   :  { %v490_v39 = vpop.f32.mrf.mxu1 }
 0x188   :  { %v503_v14 = vadd.s32 1, %v1364_v5  ;;  %v1840_v35 = vadd.f32 %v1480_v17, %v490_v39  ;;  %v1844_v48 = vshll.u32 %v501_v41, 8  ;;  %v1452_v39 = vld [vmem:[#allocation2 + $0x58] sm:$0xff] }
 0x189   :  { %878 = vmatpush.bf16.msra.mxu2 %v1452_v39 }
 0x18a   :  { %vm504_vm6 = vcmp.gt.s32.totalorder %v503_v14, 0  ;;  %v648_v36 = vand.u32 2147483647, %v1840_v35  ;;  %v651_v38 = vand.u32 2139095040, %v1840_v35  ;;  %v1867_v32 = vand.u32 65535, %v1844_v48 }
 0x18b   :  { %v505_v7 = vsel %vm504_vm6, %v503_v14, 0  ;;  %v543_v5 = vshrl.u32 %v1844_v48, 16 }
 0x18c   :  { %v507_v44 = vand.u32 31, %v505_v7  ;;  %v652_v16 = vshrl.u32 %v651_v38, 23  ;;  %v506_v49 = vshrl.u32 %v505_v7, 5  ;;  %v655_v51 = vand.u32 8388607, %v648_v36 }
 0x18e   :  { %v508_v46 = vsub.s32 32, %v507_v44  ;;  %v510_v50 = vshll.u32 %v1573_v24, %v507_v44  ;;  %v513_v4 = vshll.u32 %v1574_v26, %v507_v44  ;;  %v516_v54 = vshll.u32 %v1575_v31, %v507_v44 }
 0x18f   :  { %v519_v57 = vshll.u32 %v1576_v34, %v507_v44  ;;  %v522_v47 = vshll.u32 %v1577_v37, %v507_v44  ;;  %v1367_v3 = vadd.s32 4294967169, %v652_v16  ;;  %vm525_vm7 = vcmp.lt.s32.totalorder %v506_v49, 1 }
 0x190   :  { %v511_v53 = vshrl.u32 %v1574_v26, %v508_v46  ;;  %v514_v12 = vshrl.u32 %v1575_v31, %v508_v46  ;;  %v517_v55 = vshrl.u32 %v1576_v34, %v508_v46  ;;  %v520_v58 = vshrl.u32 %v1577_v37, %v508_v46 }
 0x191   :  { %v523_v60 = vshrl.u32 %v1578_v40, %v508_v46  ;;  %vm528_vm8 = vcmp.lt.s32.totalorder %v506_v49, 4  ;;  %vm526_vm9 = vcmp.lt.s32.totalorder %v506_v49, 2  ;;  %vm527_vm10 = vcmp.lt.s32.totalorder %v506_v49, 3 }
 0x192   :  { %v512_v0 = vor.u32 %v511_v53, %v510_v50  ;;  %v515_v1 = vor.u32 %v514_v12, %v513_v4  ;;  %v518_v2 = vor.u32 %v517_v55, %v516_v54  ;;  %v521_v19 = vor.u32 %v520_v58, %v519_v57  ;;  %v1451_v54 = vld [vmem:[#allocation2 + $0x50] sm:$0xff] }
 0x193   :  { %v524_v10 = vor.u32 %v523_v60, %v522_v47  ;;  %v656_v52 = vor.u32 8388608, %v655_v51  ;;  %v658_v59 = vadd.s32 1, %v1367_v3  ;;  %v509_v20 = vshrl.u32 %v1573_v24, %v508_v46  ;;  %879 = vmatpush.bf16.msra.mxu2 %v1451_v54 }
 0x194   :  { %v530_v61 = vsel %vm528_vm8, %v518_v2, 2102212464  ;;  %v537_v45 = vsel %vm525_vm7, %v515_v1, %v518_v2  ;;  %v534_v9 = vsel %vm528_vm8, %v521_v19, 920167782  ;;  %v533_v23 = vsel %vm525_vm7, %v512_v0, %v515_v1 }
 0x195   :  { %v538_v15 = vsel %vm528_vm8, %v524_v10, 1326507024  ;;  %v535_v25 = vsel %vm527_vm10, %v518_v2, %v534_v9  ;;  %vm659_vm11 = vcmp.gt.s32.totalorder %v658_v59, 0  ;;  %v529_v42 = vsel %vm525_vm7, %v509_v20, %v512_v0  ;;  %v1450_v9 = vld [vmem:[#allocation2 + $0x48] sm:$0xff] }
 0x196   :  { %v539_v27 = vsel %vm527_vm10, %v521_v19, %v538_v15  ;;  %v531_v30 = vsel %vm527_vm10, %v515_v1, %v530_v61  ;;  %v1870_v11 = vsel %vm526_vm9, %v533_v23, %v535_v25  ;;  %v660_v18 = vsel %vm659_vm11, %v658_v59, 0 }
 0x197   :  { %v540_v28 = vsel %vm526_vm9, %v537_v45, %v539_v27  ;;  %v1872_v6 = vshll.u32 %v656_v52, 8  ;;  %v662_v13 = vand.u32 31, %v660_v18  ;;  %v1879_v14 = vsel %vm526_vm9, %v529_v42, %v531_v30  ;;  %880 = vmatpush.bf16.msra.mxu2 %v1450_v9 }
 0x198   :  { %v545_v21 = vshrl.u32 %v540_v28, 16  ;;  %v544_v17 = vand.u32 65535, %v540_v28  ;;  %v566_v41 = vand.u32 65535, %v1870_v11  ;;  %v567_v7 = vshrl.u32 %v1870_v11, 16 }
 0x199   :  { %v1884_v22 = vsub.s32 32, %v662_v13  ;;  %v1887_v46 = vand.u32 65535, %v1872_v6  ;;  %v1890_v50 = vshrl.u32 %v660_v18, 5  ;;  %v665_v49 = vshll.u32 %v1573_v24, %v662_v13 }
 0x19a   :  { %v1875_v8 = vmul.u32 %v545_v21, %v1867_v32  ;;  %v546_v38 = vmul.u32 %v544_v17, %v1867_v32  ;;  %v549_v44 = vmul.u32 %v545_v21, %v543_v5  ;;  %v668_v4 = vshll.u32 %v1574_v26, %v662_v13 }
 0x19b   :  { %v666_v51 = vshrl.u32 %v1574_v26, %v1884_v22  ;;  %v669_v43 = vshrl.u32 %v1575_v31, %v1884_v22  ;;  %v671_v53 = vshll.u32 %v1575_v31, %v662_v13  ;;  %v672_v12 = vshrl.u32 %v1576_v34, %v1884_v22 }
 0x19c   :  { %v550_v16 = vshll.u32 %v1875_v8, 16  ;;  %v674_v55 = vshll.u32 %v1576_v34, %v662_v13  ;;  %v675_v57 = vshrl.u32 %v1577_v37, %v1884_v22  ;;  %v677_v58 = vshll.u32 %v1577_v37, %v662_v13 }
 0x19d   :  { %v678_v47 = vshrl.u32 %v1578_v40, %v1884_v22  ;;  %v1907_v60 = vor.u32 %v666_v51, %v665_v49  ;;  %v1909_v0 = vor.u32 %v669_v43, %v668_v4  ;;  %v1911_v1 = vor.u32 %v672_v12, %v671_v53 }
 0x19e   :  { %v1913_v2 = vmul.u32 %v544_v17, %v543_v5  ;;  %vm1915_vm12 = vc.u32 %v546_v38, %v550_v16  ;;  %v676_v19 = vor.u32 %v675_v57, %v674_v55  ;;  %vm680_vm13 = vcmp.lt.s32.totalorder %v1890_v50, 1  ;;  %v1449_v17 = vld [vmem:[#allocation2 + $0x40] sm:$0xff] }
 0x19f   :  { %v679_v10 = vor.u32 %v678_v47, %v677_v58  ;;  %v1921_v62 = vmul.u32 %v567_v7, %v1867_v32  ;;  %vm683_vm14 = vcmp.lt.s32.totalorder %v1890_v50, 4  ;;  %v688_v61 = vsel %vm680_vm13, %v1907_v60, %v1909_v0  ;;  %881 = vmatpush.bf16.msra.mxu2 %v1449_v17 }
 0x1a0   :  { %v692_v45 = vsel %vm680_vm13, %v1909_v0, %v1911_v1  ;;  %v556_v15 = vadd.s32 %v550_v16, %v546_v38  ;;  %vm682_vm15 = vcmp.lt.s32.totalorder %v1890_v50, 3  ;;  %v689_v52 = vsel %vm683_vm14, %v676_v19, 920167782 }
 0x1a1   :  { %v693_v59 = vsel %vm683_vm14, %v679_v10, 1326507024  ;;  %vm681_vm0 = vcmp.lt.s32.totalorder %v1890_v50, 2  ;;  %v690_v20 = vsel %vm682_vm15, %v1911_v1, %v689_v52  ;;  %v555_v25 = vsel %vm1915_vm12, 1, %v1579_v56 }
 0x1a2   :  { %v694_v23 = vsel %vm682_vm15, %v676_v19, %v693_v59  ;;  %v691_v27 = vsel %vm681_vm0, %v688_v61, %v690_v20  ;;  %v552_v29 = vshll.u32 %v1913_v2, 16  ;;  %v570_v42 = vmul.u32 %v566_v41, %v543_v5 }
 0x1a3   :  { %v695_v28 = vsel %vm681_vm0, %v692_v45, %v694_v23  ;;  %v698_v30 = vshrl.u32 %v1872_v6, 16  ;;  %v557_v18 = vadd.s32 %v555_v25, %v549_v44  ;;  %v722_v13 = vshrl.u32 %v691_v27, 16 }
 0x1a4   :  { %v699_v21 = vand.u32 65535, %v695_v28  ;;  %v700_v11 = vshrl.u32 %v695_v28, 16  ;;  %vm558_vm1 = vc.u32 %v556_v15, %v552_v29  ;;  %v568_v39 = vmul.u32 %v566_v41, %v1867_v32 }
 0x1a5   :  { %v572_v38 = vshll.u32 %v1921_v62, 16  ;;  %v571_v16 = vmul.u32 %v567_v7, %v543_v5  ;;  %v721_v4 = vand.u32 65535, %v691_v27  ;;  %v551_v51 = vshrl.u32 %v1875_v8, 16 }
 0x1a6   :  { %v702_v49 = vmul.u32 %v700_v11, %v1887_v46  ;;  %v701_v43 = vmul.u32 %v699_v21, %v1887_v46  ;;  %v559_v53 = vsel %vm558_vm1, 1, %v1579_v56  ;;  %v574_v12 = vshll.u32 %v570_v42, 16 }
 0x1a7   :  { %vm576_vm2 = vc.u32 %v568_v39, %v572_v38  ;;  %v561_v44 = vadd.s32 %v559_v53, %v557_v18  ;;  %v578_v32 = vadd.s32 %v572_v38, %v568_v39  ;;  %v724_v41 = vmul.u32 %v722_v13, %v1887_v46 }
 0x1a8   :  { %v705_v54 = vshll.u32 %v702_v49, 16  ;;  %v577_v55 = vsel %vm576_vm2, 1, %v1579_v56  ;;  %v553_v5 = vshrl.u32 %v1913_v2, 16  ;;  %v703_v57 = vmul.u32 %v699_v21, %v698_v30 }
 0x1a9   :  { %v579_v7 = vadd.s32 %v577_v55, %v571_v16  ;;  %v562_v58 = vadd.s32 %v561_v44, %v551_v51  ;;  %vm580_vm4 = vc.u32 %v578_v32, %v574_v12  ;;  %v704_v47 = vmul.u32 %v700_v11, %v698_v30 }
 0x1aa   :  { %vm709_vm3 = vc.u32 %v701_v43, %v705_v54  ;;  %v711_v8 = vadd.s32 %v705_v54, %v701_v43  ;;  %v573_v3 = vshrl.u32 %v1921_v62, 16  ;;  %v581_v19 = vsel %vm580_vm4, 1, %v1579_v56 }
 0x1ab   :  { %v707_v10 = vshll.u32 %v703_v57, 16  ;;  %v583_v61 = vadd.s32 %v581_v19, %v579_v7  ;;  %v710_v45 = vsel %vm709_vm3, 1, %v1579_v56  ;;  %v723_v9 = vmul.u32 %v721_v4, %v1887_v46 }
 0x1ac   :  { %v725_v15 = vmul.u32 %v721_v4, %v698_v30  ;;  %v563_v52 = vadd.s32 %v562_v58, %v553_v5  ;;  %v712_v2 = vadd.s32 %v710_v45, %v704_v47  ;;  %v727_v59 = vshll.u32 %v724_v41, 16 }
 0x1ad   :  { %vm713_vm5 = vc.u32 %v711_v8, %v707_v10  ;;  %v726_v20 = vmul.u32 %v722_v13, %v698_v30  ;;  %v575_v23 = vshrl.u32 %v570_v42, 16  ;;  %v584_v25 = vadd.s32 %v583_v61, %v573_v3 }
 0x1ae   :  { %v714_v27 = vsel %vm713_vm5, 1, %v1579_v56  ;;  %v582_v28 = vadd.s32 %v578_v32, %v574_v12  ;;  %v706_v62 = vshrl.u32 %v702_v49, 16  ;;  %vm731_vm6 = vc.u32 %v723_v9, %v727_v59 }
 0x1af   :  { %v716_v29 = vadd.s32 %v714_v27, %v712_v2  ;;  %v585_v21 = vadd.s32 %v584_v25, %v575_v23  ;;  %v729_v11 = vshll.u32 %v725_v15, 16  ;;  %v732_v17 = vsel %vm731_vm6, 1, %v1579_v56 }
 0x1b0   :  { %v733_v18 = vadd.s32 %v727_v59, %v723_v9  ;;  %vm588_vm7 = vc.u32 %v563_v52, %v582_v28  ;;  %v734_v39 = vadd.s32 %v732_v17, %v726_v20  ;;  %v685_v30 = vsel %vm683_vm14, %v1911_v1, 2102212464 }
 0x1b1   :  { %v717_v46 = vadd.s32 %v716_v29, %v706_v62  ;;  %v589_v42 = vadd.s32 1, %v585_v21  ;;  %v586_v13 = vmul.u32 %v1844_v48, %v1879_v14  ;;  %v664_v38 = vshrl.u32 %v1573_v24, %v1884_v22 }
 0x1b2   :  { %vm735_vm8 = vc.u32 %v733_v18, %v729_v11  ;;  %v708_v16 = vshrl.u32 %v703_v57, 16  ;;  %v728_v51 = vshrl.u32 %v724_v41, 16  ;;  %v686_v1 = vsel %vm682_vm15, %v1909_v0, %v685_v30 }
 0x1b3   :  { %v736_v49 = vsel %vm735_vm8, 1, %v1579_v56  ;;  %v590_v4 = vsel %vm588_vm7, %v589_v42, %v585_v21  ;;  %v684_v53 = vsel %vm680_vm13, %v664_v38, %v1907_v60  ;;  %v730_v48 = vshrl.u32 %v725_v15, 16 }
 0x1b4   :  { %v738_v43 = vadd.s32 %v736_v49, %v734_v39  ;;  %v591_v12 = vadd.s32 %v590_v4, %v586_v13  ;;  %v718_v54 = vadd.s32 %v717_v46, %v708_v16  ;;  %v737_v22 = vadd.s32 %v733_v18, %v729_v11 }
 0x1b5   :  { %v687_v55 = vsel %vm681_vm0, %v684_v53, %v686_v1  ;;  %v587_v15 = vadd.s32 %v582_v28, %v563_v52  ;;  %vm495_vm14 = vcmp.lt.s32.totalorder %v1834_v33, 0  ;;  %vm1993_vm15 = vcmp.le.f32.partialorder %v493_v63, 0.7853982 }
 0x1b6   :  { %v739_v14 = vadd.s32 %v738_v43, %v728_v51  ;;  %v592_v44 = vadd.s32 536870912, %v591_v12  ;;  %vm743_vm9 = vc.u32 %v718_v54, %v737_v22  ;;  %v741_v60 = vmul.u32 %v1872_v6, %v687_v55 }
 0x1b7   :  { %v742_v18 = vadd.s32 %v737_v22, %v718_v54  ;;  %vm650_vm0 = vcmp.lt.s32.totalorder %v1840_v35, 0  ;;  %vm2006_vm1 = vcmp.le.f32.partialorder %v648_v36, 0.7853982  ;;  %vm636_vm8 = vweird.f32 %v1834_v33 }
 0x1b8   :  { %v740_v32 = vadd.s32 %v739_v14, %v730_v48  ;;  %v1983_v41 = vshrl.u32 %v592_v44, 30 }
 0x1ba   :  { %v744_v5 = vadd.s32 1, %v740_v32  ;;  %v594_v7 = vshll.u32 %v1983_v41, 30 }
 0x1bc   :  { %v745_v57 = vsel %vm743_vm9, %v744_v5, %v740_v32  ;;  %v595_v0 = vsub.s32 %v591_v12, %v594_v7  ;;  %v617_v32 = vsub.s32 4, %v1983_v41  ;;  %vm791_vm9 = vweird.f32 %v1840_v35 }
 0x1bd   :  { %v746_v8 = vadd.s32 %v745_v57, %v741_v60 }
 0x1be   :  { %vm596_vm10 = vcmp.lt.s32.totalorder %v595_v0, 0  ;;  %v597_v58 = vsub.s32 0, %v595_v0 }
 0x1bf   :  { %v747_v47 = vadd.s32 536870912, %v746_v8 }
 0x1c0   :  { %v598_v3 = vsel %vm596_vm10, %v597_v58, %v595_v0  ;;  %v618_v58 = vsel %vm495_vm14, %v617_v32, %v1983_v41 }
 0x1c1   :  { %v1987_v19 = vshrl.u32 %v747_v47, 30  ;;  %v599_v50 = vclz %v598_v3  ;;  %v620_v36 = vsel %vm1993_vm15, 0, %v618_v58 }
 0x1c3   :  { %v749_v10 = vshll.u32 %v1987_v19, 30  ;;  %v1365_v61 = vadd.s32 4294967294, %v599_v50  ;;  %v772_v47 = vsub.s32 4, %v1987_v19 }
 0x1c5   :  { %v750_v45 = vsub.s32 %v746_v8, %v749_v10  ;;  %vm1366_vm11 = vcmp.lt.s32.totalorder %v1365_v61, 0 }
 0x1c6   :  { %v602_v9 = vsel %vm1366_vm11, 0, %v1365_v61 }
 0x1c7   :  { %vm751_vm12 = vcmp.lt.s32.totalorder %v750_v45, 0  ;;  %v752_v6 = vsub.s32 0, %v750_v45  ;;  %v603_v2 = vsub.s32 32, %v602_v9  ;;  %v607_v59 = vsub.s32 4294967266, %v602_v9 }
 0x1c8   :  { %v604_v23 = vshll.u32 %v595_v0, %v602_v9 }
 0x1c9   :  { %v753_v20 = vsel %vm751_vm12, %v752_v6, %v750_v45  ;;  %v605_v25 = vshrl.u32 %v587_v15, %v603_v2  ;;  %v608_v27 = vadd.s32 127, %v607_v59  ;;  %v773_v15 = vsel %vm650_vm0, %v772_v47, %v1987_v19 }
 0x1ca   :  { %v754_v62 = vclz %v753_v20 }
 0x1cb   :  { %v606_v29 = vor.u32 %v605_v25, %v604_v23  ;;  %v609_v21 = vshll.u32 %v608_v27, 23  ;;  %v637_v23 = vadd.s32 3, %v620_v36  ;;  %v775_v27 = vsel %vm2006_vm1, 0, %v773_v15 }
 0x1cc   :  { %v1368_v11 = vadd.s32 4294967294, %v754_v62 }
 0x1cd   :  { %v610_v17 = vor.u32 4788187, %v609_v21  ;;  %v613_v30 = vcvt.s32.f32 %v606_v29 }
 0x1ce   :  { %vm1369_vm13 = vcmp.lt.s32.totalorder %v1368_v11, 0 }
 0x1cf   :  { %v757_v46 = vsel %vm1369_vm13, 0, %v1368_v11  ;;  %v611_v39 = vand.u32 2147483647, %v610_v17 }
 0x1d0   :  { %v758_v42 = vsub.s32 32, %v757_v46  ;;  %v762_v13 = vsub.s32 4294967266, %v757_v46  ;;  %v759_v52 = vshll.u32 %v750_v45, %v757_v46  ;;  %v792_v46 = vadd.s32 3, %v775_v27 }
 0x1d1   :  { %v614_v38 = vmul.f32 %v613_v30, %v611_v39 }
 0x1d2   :  { %v760_v28 = vshrl.u32 %v742_v18, %v758_v42  ;;  %v763_v16 = vadd.s32 127, %v762_v13  ;;  %v638_v18 = vand.u32 3, %v637_v23 }
 0x1d3   :  { %v615_v49 = vxor.u32 2147483648, %v614_v38 }
 0x1d4   :  { %v761_v4 = vor.u32 %v760_v28, %v759_v52  ;;  %v764_v51 = vshll.u32 %v763_v16, 23  ;;  %vm640_vm2 = vcmp.eq.s32.totalorder %v638_v18, 0  ;;  %v793_v52 = vand.u32 3, %v792_v46 }
 0x1d5   :  { %v616_v53 = vsel %vm495_vm14, %v615_v49, %v614_v38  ;;  %vm643_vm3 = vcmp.eq.s32.totalorder %v638_v18, 2  ;;  %vm639_vm4 = vcmp.lt.s32.totalorder %v638_v18, 2 }
 0x1d6   :  { %v765_v1 = vor.u32 4788187, %v764_v51  ;;  %v619_v12 = vsel %vm1993_vm15, %v1834_v33, %v616_v53  ;;  %v768_v14 = vcvt.s32.f32 %v761_v4  ;;  %vm795_vm5 = vcmp.eq.s32.totalorder %v793_v52, 0 }
 0x1d7   :  { %v621_v54 = vmul.f32 %v619_v12, %v619_v12  ;;  %vm798_vm6 = vcmp.eq.s32.totalorder %v793_v52, 2  ;;  %vm794_vm7 = vcmp.lt.s32.totalorder %v793_v52, 2 }
 0x1d8   :  { %v766_v48 = vand.u32 2147483647, %v765_v1 }
 0x1d9   :  { %v622_v44 = vmul.f32 -0.001358992, %v621_v54  ;;  %v629_v22 = vmul.f32 -0.00019511016, %v621_v54 }
 0x1da   :  { %v769_v55 = vmul.f32 %v768_v14, %v766_v48 }
 0x1db   :  { %v623_v63 = vadd.f32 0.041655596, %v622_v44  ;;  %v630_v5 = vadd.f32 0.008332121, %v629_v22  ;;  %v1481_v44 = vld [vmem:[%s2227_s4 + $0x1] ss:$0 sm:$0xff] }
 0x1dc   :  { %v770_v60 = vxor.u32 2147483648, %v769_v55 }
 0x1dd   :  { %v624_v7 = vmul.f32 %v623_v63, %v621_v54  ;;  %v631_v57 = vmul.f32 %v630_v5, %v621_v54 }
 0x1de   :  { %v771_v8 = vsel %vm650_vm0, %v770_v60, %v769_v55 }
 0x1df   :  { %v774_v3 = vsel %vm2006_vm1, %v1840_v35, %v771_v8  ;;  %v625_v50 = vadd.f32 -0.4999988, %v624_v7  ;;  %v632_v10 = vadd.f32 -0.16666654, %v631_v57 }
 0x1e0   :  { %v776_v61 = vmul.f32 %v774_v3, %v774_v3 }
 0x1e1   :  { %v633_v45 = vmul.f32 %v632_v10, %v621_v54  ;;  %v626_v2 = vmul.f32 %v625_v50, %v621_v54  ;;  %v1464_v50 = vld [vmem:[#allocation5 + $0x38] sm:$0xff] }
 0x1e2   :  { %v777_v9 = vmul.f32 -0.001358992, %v776_v61  ;;  %v784_v6 = vmul.f32 -0.00019511016, %v776_v61  ;;  %1267 = vmatpush.bf16.msra.mxu3 %v1464_v50 }
 0x1e3   :  { %v634_v59 = vadd.f32 1.0, %v633_v45  ;;  %v627_v21 = vadd.f32 1.0, %v626_v2  ;;  %v1463_v2 = vld [vmem:[#allocation5 + $0x30] sm:$0xff] }
 0x1e4   :  { %v778_v41 = vadd.f32 0.041655596, %v777_v9  ;;  %v785_v20 = vadd.f32 0.008332121, %v784_v6 }
 0x1e5   :  { %v635_v25 = vmul.f32 %v634_v59, %v619_v12  ;;  %v644_v19 = vxor.u32 2147483648, %v627_v21 }
 0x1e6   :  { %v779_v62 = vmul.f32 %v778_v41, %v776_v61  ;;  %v786_v29 = vmul.f32 %v785_v20, %v776_v61  ;;  %1268 = vmatpush.bf16.msra.mxu3 %v1463_v2 }
 0x1e7   :  { %v641_v39 = vxor.u32 2147483648, %v635_v25  ;;  %v645_v4 = vsel %vm643_vm3, %v644_v19, %v635_v25 }
 0x1e8   :  { %v780_v11 = vadd.f32 -0.4999988, %v779_v62  ;;  %v787_v17 = vadd.f32 -0.16666654, %v786_v29 }
 0x1e9   :  { %v642_v28 = vsel %vm640_vm2, %v627_v21, %v641_v39 }
 0x1ea   :  { %v781_v30 = vmul.f32 %v780_v11, %v776_v61  ;;  %v788_v42 = vmul.f32 %v787_v17, %v776_v61  ;;  %v646_v43 = vsel %vm639_vm4, %v642_v28, %v645_v4 }
 0x1eb   :  { %v647_v54 = vsel %vm636_vm8, nan, %v646_v43 }
 0x1ec   :  { %v782_v13 = vadd.f32 1.0, %v781_v30  ;;  %v789_v38 = vadd.f32 1.0, %v788_v42  ;;  %v1462_v30 = vld [vmem:[#allocation5 + $0x28] sm:$0xff] }
 0x1ed   :  { %1269 = vmatpush.bf16.msra.mxu3 %v1462_v30 }
 0x1ee   :  { %v790_v16 = vmul.f32 %v789_v38, %v774_v3  ;;  %v799_v49 = vxor.u32 2147483648, %v782_v13 }
 0x1f0   :  { %v796_v51 = vxor.u32 2147483648, %v790_v16  ;;  %v800_v1 = vsel %vm798_vm6, %v799_v49, %v790_v16 }
 0x1f2   :  { %v797_v53 = vsel %vm795_vm5, %v782_v13, %v796_v51 }
 0x1f3   :  { %v801_v12 = vsel %vm794_vm7, %v797_v53, %v800_v1  ;;  %v1461_v53 = vld [vmem:[#allocation5 + $0x20] sm:$0xff] }
 0x1f4   :  { %v802_v48 = vsel %vm791_vm9, nan, %v801_v12  ;;  %1270 = vmatpush.bf16.msra.mxu3 %v1461_v53  ;;  %v1457_v53 = vld [vmem:[#allocation5] sm:$0xff] }
 0x1f5   :  { %v822_v14 = vpack.c.bf16 %v802_v48, %v647_v54 }
 0x1f7   :  { %882 = vmatmul.bf16.vlgmr.msra.gmra.mxu2 %v822_v14 }
 0x27a   :  { %v883_v22 = vpop.f32.mrf.mxu2 }
 0x27b   :  { %v2027_v55 = vadd.f32 %v1481_v44, %v883_v22 }
 0x27d   :  { %v888_v32 = vand.u32 2147483647, %v2027_v55  ;;  %v891_v63 = vand.u32 2139095040, %v2027_v55 }
 0x27f   :  { %v892_v5 = vshrl.u32 %v891_v63, 23  ;;  %v895_v35 = vand.u32 8388607, %v888_v32 }
 0x281   :  { %v1403_v33 = vadd.s32 4294967169, %v892_v5  ;;  %v896_v0 = vor.u32 8388608, %v895_v35 }
 0x282   :  { %v885_v60 = vpop.f32.mrf.mxu2 }
 0x283   :  { %v898_v7 = vadd.s32 1, %v1403_v33  ;;  %v2033_v57 = vadd.f32 %v1481_v44, %v885_v60  ;;  %v2037_v61 = vshll.u32 %v896_v0, 8  ;;  %v1460_v60 = vld [vmem:[#allocation5 + $0x18] sm:$0xff] }
 0x284   :  { %1271 = vmatpush.bf16.msra.mxu3 %v1460_v60 }
 0x285   :  { %vm899_vm10 = vcmp.gt.s32.totalorder %v898_v7, 0  ;;  %v1043_v58 = vand.u32 2147483647, %v2033_v57  ;;  %v1046_v47 = vand.u32 2139095040, %v2033_v57  ;;  %v2060_v54 = vand.u32 65535, %v2037_v61 }
 0x286   :  { %v900_v8 = vsel %vm899_vm10, %v898_v7, 0  ;;  %v938_v33 = vshrl.u32 %v2037_v61, 16 }
 0x287   :  { %v902_v3 = vand.u32 31, %v900_v8  ;;  %v1047_v36 = vshrl.u32 %v1046_v47, 23  ;;  %v901_v45 = vshrl.u32 %v900_v8, 5  ;;  %v1050_v15 = vand.u32 8388607, %v1043_v58 }
 0x289   :  { %v903_v10 = vsub.s32 32, %v902_v3  ;;  %v905_v9 = vshll.u32 %v1573_v24, %v902_v3  ;;  %v908_v6 = vshll.u32 %v1574_v26, %v902_v3  ;;  %v911_v20 = vshll.u32 %v1575_v31, %v902_v3 }
 0x28a   :  { %v914_v25 = vshll.u32 %v1576_v34, %v902_v3  ;;  %v917_v62 = vshll.u32 %v1577_v37, %v902_v3  ;;  %v1406_v18 = vadd.s32 4294967169, %v1047_v36  ;;  %vm920_vm11 = vcmp.lt.s32.totalorder %v901_v45, 1 }
 0x28b   :  { %v906_v59 = vshrl.u32 %v1574_v26, %v903_v10  ;;  %v909_v41 = vshrl.u32 %v1575_v31, %v903_v10  ;;  %v912_v23 = vshrl.u32 %v1576_v34, %v903_v10  ;;  %v915_v27 = vshrl.u32 %v1577_v37, %v903_v10 }
 0x28c   :  { %v918_v29 = vshrl.u32 %v1578_v40, %v903_v10  ;;  %vm923_vm12 = vcmp.lt.s32.totalorder %v901_v45, 4  ;;  %vm921_vm13 = vcmp.lt.s32.totalorder %v901_v45, 2  ;;  %vm922_vm14 = vcmp.lt.s32.totalorder %v901_v45, 3 }
 0x28d   :  { %v907_v21 = vor.u32 %v906_v59, %v905_v9  ;;  %v910_v11 = vor.u32 %v909_v41, %v908_v6  ;;  %v913_v17 = vor.u32 %v912_v23, %v911_v20  ;;  %v916_v46 = vor.u32 %v915_v27, %v914_v25  ;;  %v1459_v20 = vld [vmem:[#allocation5 + $0x10] sm:$0xff] }
 0x28e   :  { %v919_v39 = vor.u32 %v918_v29, %v917_v62  ;;  %v1051_v52 = vor.u32 8388608, %v1050_v15  ;;  %v1053_v28 = vadd.s32 1, %v1406_v18  ;;  %v904_v16 = vshrl.u32 %v1573_v24, %v903_v10  ;;  %1272 = vmatpush.bf16.msra.mxu3 %v1459_v20 }
 0x28f   :  { %v925_v42 = vsel %vm923_vm12, %v913_v17, 2102212464  ;;  %v932_v19 = vsel %vm920_vm11, %v910_v11, %v913_v17  ;;  %v929_v13 = vsel %vm923_vm12, %v916_v46, 920167782  ;;  %v928_v49 = vsel %vm920_vm11, %v907_v21, %v910_v11 }
 0x290   :  { %v933_v38 = vsel %vm923_vm12, %v919_v39, 1326507024  ;;  %v930_v4 = vsel %vm922_vm14, %v913_v17, %v929_v13  ;;  %vm1054_vm15 = vcmp.gt.s32.totalorder %v1053_v28, 0  ;;  %v924_v1 = vsel %vm920_vm11, %v904_v16, %v907_v21 }
 0x291   :  { %v934_v51 = vsel %vm922_vm14, %v916_v46, %v933_v38  ;;  %v926_v12 = vsel %vm922_vm14, %v910_v11, %v925_v42  ;;  %v2063_v14 = vsel %vm921_vm13, %v928_v49, %v930_v4  ;;  %v1055_v22 = vsel %vm1054_vm15, %v1053_v28, 0  ;;  %v1458_v46 = vld [vmem:[#allocation5 + $0x8] sm:$0xff] }
 0x292   :  { %v935_v43 = vsel %vm921_vm13, %v932_v19, %v934_v51  ;;  %v2065_v63 = vshll.u32 %v1051_v52, 8  ;;  %v1057_v35 = vand.u32 31, %v1055_v22  ;;  %v2072_v7 = vsel %vm921_vm13, %v924_v1, %v926_v12  ;;  %1273 = vmatpush.bf16.msra.mxu3 %v1458_v46 }
 0x293   :  { %v940_v48 = vshrl.u32 %v935_v43, 16  ;;  %v939_v44 = vand.u32 65535, %v935_v43  ;;  %v961_v0 = vand.u32 65535, %v2063_v14  ;;  %v962_v8 = vshrl.u32 %v2063_v14, 16 }
 0x294   :  { %v2077_v50 = vsub.s32 32, %v1057_v35  ;;  %v2080_v10 = vand.u32 65535, %v2065_v63  ;;  %v2083_v9 = vshrl.u32 %v1055_v22, 5  ;;  %v1060_v45 = vshll.u32 %v1573_v24, %v1057_v35 }
 0x295   :  { %v2068_v5 = vmul.u32 %v940_v48, %v2060_v54  ;;  %v941_v47 = vmul.u32 %v939_v44, %v2060_v54  ;;  %v944_v3 = vmul.u32 %v940_v48, %v938_v33  ;;  %v1063_v6 = vshll.u32 %v1574_v26, %v1057_v35 }
 0x296   :  { %v1061_v15 = vshrl.u32 %v1574_v26, %v2077_v50  ;;  %v1064_v2 = vshrl.u32 %v1575_v31, %v2077_v50  ;;  %v1066_v59 = vshll.u32 %v1575_v31, %v1057_v35  ;;  %v1067_v41 = vshrl.u32 %v1576_v34, %v2077_v50  ;;  %1274 = vmatpush.bf16.msra.mxu3 %v1457_v53 }
 0x297   :  { %v945_v36 = vshll.u32 %v2068_v5, 16  ;;  %v1069_v23 = vshll.u32 %v1576_v34, %v1057_v35  ;;  %v1070_v25 = vshrl.u32 %v1577_v37, %v2077_v50  ;;  %v1072_v27 = vshll.u32 %v1577_v37, %v1057_v35 }
 0x298   :  { %v1073_v26 = vshrl.u32 %v1578_v40, %v2077_v50  ;;  %v2100_v62 = vor.u32 %v1061_v15, %v1060_v45  ;;  %v2102_v29 = vor.u32 %v1064_v2, %v1063_v6  ;;  %v2104_v31 = vor.u32 %v1067_v41, %v1066_v59 }
 0x299   :  { %v2106_v21 = vmul.u32 %v939_v44, %v938_v33  ;;  %vm2108_vm0 = vc.u32 %v941_v47, %v945_v36  ;;  %v1071_v34 = vor.u32 %v1070_v25, %v1069_v23  ;;  %vm1075_vm1 = vcmp.lt.s32.totalorder %v2083_v9, 1 }
 0x29a   :  { %v1074_v17 = vor.u32 %v1073_v26, %v1072_v27  ;;  %v2114_v37 = vmul.u32 %v962_v8, %v2060_v54  ;;  %vm1078_vm2 = vcmp.lt.s32.totalorder %v2083_v9, 4  ;;  %v1083_v40 = vsel %vm1075_vm1, %v2100_v62, %v2102_v29 }
 0x29b   :  { %v1087_v18 = vsel %vm1075_vm1, %v2102_v29, %v2104_v31  ;;  %v951_v39 = vadd.s32 %v945_v36, %v941_v47  ;;  %vm1077_vm3 = vcmp.lt.s32.totalorder %v2083_v9, 3  ;;  %v1084_v30 = vsel %vm1078_vm2, %v1071_v34, 920167782 }
 0x29c   :  { %v1088_v42 = vsel %vm1078_vm2, %v1074_v17, 1326507024  ;;  %vm1076_vm4 = vcmp.lt.s32.totalorder %v2083_v9, 2  ;;  %v1085_v19 = vsel %vm1077_vm3, %v2104_v31, %v1084_v30  ;;  %v950_v38 = vsel %vm2108_vm0, 1, %v1579_v56 }
 0x29d   :  { %v1089_v13 = vsel %vm1077_vm3, %v1071_v34, %v1088_v42  ;;  %v1086_v52 = vsel %vm1076_vm4, %v1083_v40, %v1085_v19  ;;  %v947_v16 = vshll.u32 %v2106_v21, 16  ;;  %v965_v49 = vmul.u32 %v961_v0, %v938_v33 }
 0x29e   :  { %v1090_v28 = vsel %vm1076_vm4, %v1087_v18, %v1089_v13  ;;  %v1093_v4 = vshrl.u32 %v2065_v63, 16  ;;  %v952_v1 = vadd.s32 %v950_v38, %v944_v3  ;;  %v1117_v12 = vshrl.u32 %v1086_v52, 16 }
 0x29f   :  { %v1094_v51 = vand.u32 65535, %v1090_v28  ;;  %v1095_v43 = vshrl.u32 %v1090_v28, 16  ;;  %vm953_vm5 = vc.u32 %v951_v39, %v947_v16  ;;  %v963_v48 = vmul.u32 %v961_v0, %v2060_v54 }
 0x2a0   :  { %v967_v14 = vshll.u32 %v2114_v37, 16  ;;  %v966_v44 = vmul.u32 %v962_v8, %v938_v33  ;;  %v1116_v35 = vand.u32 65535, %v1086_v52  ;;  %v946_v60 = vshrl.u32 %v2068_v5, 16 }
 0x2a1   :  { %v1097_v22 = vmul.u32 %v1095_v43, %v2080_v10  ;;  %v1096_v47 = vmul.u32 %v1094_v51, %v2080_v10  ;;  %v954_v36 = vsel %vm953_vm5, 1, %v1579_v56  ;;  %v969_v45 = vshll.u32 %v965_v49, 16 }
 0x2a2   :  { %vm971_vm6 = vc.u32 %v963_v48, %v967_v14  ;;  %v956_v3 = vadd.s32 %v954_v36, %v952_v1  ;;  %v973_v54 = vadd.s32 %v967_v14, %v963_v48  ;;  %v1119_v0 = vmul.u32 %v1117_v12, %v2080_v10 }
 0x2a3   :  { %v1100_v6 = vshll.u32 %v1097_v22, 16  ;;  %v972_v15 = vsel %vm971_vm6, 1, %v1579_v56  ;;  %v948_v33 = vshrl.u32 %v2106_v21, 16  ;;  %v1098_v2 = vmul.u32 %v1094_v51, %v1093_v4 }
 0x2a4   :  { %v974_v8 = vadd.s32 %v972_v15, %v966_v44  ;;  %v957_v59 = vadd.s32 %v956_v3, %v946_v60  ;;  %vm975_vm8 = vc.u32 %v973_v54, %v969_v45  ;;  %v1099_v41 = vmul.u32 %v1095_v43, %v1093_v4 }
 0x2a5   :  { %vm1104_vm7 = vc.u32 %v1096_v47, %v1100_v6  ;;  %v1106_v5 = vadd.s32 %v1100_v6, %v1096_v47  ;;  %v968_v20 = vshrl.u32 %v2114_v37, 16  ;;  %v976_v23 = vsel %vm975_vm8, 1, %v1579_v56 }
 0x2a6   :  { %v1102_v25 = vshll.u32 %v1098_v2, 16  ;;  %v978_v27 = vadd.s32 %v976_v23, %v974_v8  ;;  %v1105_v26 = vsel %vm1104_vm7, 1, %v1579_v56  ;;  %v1118_v11 = vmul.u32 %v1116_v35, %v2080_v10 }
 0x2a7   :  { %v1120_v34 = vmul.u32 %v1116_v35, %v1093_v4  ;;  %v958_v17 = vadd.s32 %v957_v59, %v948_v33  ;;  %v1107_v21 = vadd.s32 %v1105_v26, %v1099_v41  ;;  %v1122_v40 = vshll.u32 %v1119_v0, 16 }
 0x2a8   :  { %vm1108_vm9 = vc.u32 %v1106_v5, %v1102_v25  ;;  %v1121_v18 = vmul.u32 %v1117_v12, %v1093_v4  ;;  %v970_v46 = vshrl.u32 %v965_v49, 16  ;;  %v979_v39 = vadd.s32 %v978_v27, %v968_v20 }
 0x2a9   :  { %v1109_v30 = vsel %vm1108_vm9, 1, %v1579_v56  ;;  %v977_v42 = vadd.s32 %v973_v54, %v969_v45  ;;  %v1101_v37 = vshrl.u32 %v1097_v22, 16  ;;  %vm1126_vm10 = vc.u32 %v1118_v11, %v1122_v40 }
 0x2aa   :  { %v1111_v19 = vadd.s32 %v1109_v30, %v1107_v21  ;;  %v980_v13 = vadd.s32 %v979_v39, %v970_v46  ;;  %v1124_v38 = vshll.u32 %v1120_v34, 16  ;;  %v1127_v52 = vsel %vm1126_vm10, 1, %v1579_v56 }
 0x2ab   :  { %v1128_v28 = vadd.s32 %v1122_v40, %v1118_v11  ;;  %vm983_vm11 = vc.u32 %v958_v17, %v977_v42  ;;  %v1129_v16 = vadd.s32 %v1127_v52, %v1121_v18  ;;  %v1080_v4 = vsel %vm1078_vm2, %v2104_v31, 2102212464 }
 0x2ac   :  { %v1112_v10 = vadd.s32 %v1111_v19, %v1101_v37  ;;  %v984_v49 = vadd.s32 1, %v980_v13  ;;  %v981_v51 = vmul.u32 %v2037_v61, %v2072_v7  ;;  %v1059_v43 = vshrl.u32 %v1573_v24, %v2077_v50 }
 0x2ad   :  { %vm1130_vm12 = vc.u32 %v1128_v28, %v1124_v38  ;;  %v1103_v53 = vshrl.u32 %v1098_v2, 16  ;;  %v1123_v48 = vshrl.u32 %v1119_v0, 16  ;;  %v1081_v31 = vsel %vm1077_vm3, %v2102_v29, %v1080_v4 }
 0x2ae   :  { %v1131_v1 = vsel %vm1130_vm12, 1, %v1579_v56  ;;  %v985_v12 = vsel %vm983_vm11, %v984_v49, %v980_v13  ;;  %v1079_v44 = vsel %vm1075_vm1, %v1059_v43, %v2100_v62  ;;  %v1125_v61 = vshrl.u32 %v1120_v34, 16  ;;  %v1482_v49 = vld [vmem:[%s2229_s6] ss:$0 sm:$0xff]  ;;  %s1580_s6 = smov [#allocation7]  }
 0x2af   :  { %v1133_v14 = vadd.s32 %v1131_v1, %v1129_v16  ;;  %v986_v22 = vadd.s32 %v985_v12, %v981_v51  ;;  %v1113_v35 = vadd.s32 %v1112_v10, %v1103_v53  ;;  %v1132_v24 = vadd.s32 %v1128_v28, %v1124_v38  ;;  %s1307_s21 = sshll.u32 %s1580_s6, 4  ;;  %s1308_s21 = int_to_ptr.vmem [resolvable:$true] %s1307_s21 }
 0x2b0   :  { %v1082_v56 = vsel %vm1076_vm4, %v1079_v44, %v1081_v31  ;;  %v982_v41 = vadd.s32 %v977_v42, %v958_v17  ;;  %vm890_vm2 = vcmp.lt.s32.totalorder %v2027_v55, 0  ;;  %vm2186_vm3 = vcmp.le.f32.partialorder %v888_v32, 0.7853982 }
 0x2b1   :  { %v1134_v7 = vadd.s32 %v1133_v14, %v1123_v48  ;;  %v987_v60 = vadd.s32 536870912, %v986_v22  ;;  %vm1138_vm13 = vc.u32 %v1113_v35, %v1132_v24  ;;  %v1136_v62 = vmul.u32 %v2065_v63, %v1082_v56 }
 0x2b2   :  { %v1137_v39 = vadd.s32 %v1132_v24, %v1113_v35  ;;  %vm1045_vm4 = vcmp.lt.s32.totalorder %v2033_v57, 0  ;;  %vm2199_vm5 = vcmp.le.f32.partialorder %v1043_v58, 0.7853982  ;;  %vm1031_vm12 = vweird.f32 %v2027_v55 }
 0x2b3   :  { %v1135_v50 = vadd.s32 %v1134_v7, %v1125_v61  ;;  %v2176_v47 = vshrl.u32 %v987_v60, 30 }
 0x2b5   :  { %v1139_v36 = vadd.s32 1, %v1135_v50  ;;  %v989_v45 = vshll.u32 %v2176_v47, 30 }
 0x2b7   :  { %v1140_v6 = vsel %vm1138_vm13, %v1139_v36, %v1135_v50  ;;  %v990_v29 = vsub.s32 %v986_v22, %v989_v45  ;;  %v1012_v22 = vsub.s32 4, %v2176_v47  ;;  %vm1186_vm13 = vweird.f32 %v2033_v57 }
 0x2b8   :  { %v1141_v3 = vadd.s32 %v1140_v6, %v1136_v62 }
 0x2b9   :  { %vm991_vm14 = vcmp.lt.s32.totalorder %v990_v29, 0  ;;  %v992_v15 = vsub.s32 0, %v990_v29  ;;  %v1013_v50 = vsel %vm890_vm2, %v1012_v22, %v2176_v47 }
 0x2ba   :  { %v1142_v54 = vadd.s32 536870912, %v1141_v3  ;;  %v1015_v58 = vsel %vm2186_vm3, 0, %v1013_v50 }
 0x2bb   :  { %v993_v0 = vsel %vm991_vm14, %v992_v15, %v990_v29 }
 0x2bc   :  { %v2180_v33 = vshrl.u32 %v1142_v54, 30  ;;  %v994_v9 = vclz %v993_v0 }
 0x2be   :  { %v1144_v8 = vshll.u32 %v2180_v33, 30  ;;  %v1404_v2 = vadd.s32 4294967294, %v994_v9  ;;  %v1167_v36 = vsub.s32 4, %v2180_v33 }
 0x2c0   :  { %v1145_v5 = vsub.s32 %v1141_v3, %v1144_v8  ;;  %vm1405_vm15 = vcmp.lt.s32.totalorder %v1404_v2, 0  ;;  %v1168_v0 = vsel %vm1045_vm4, %v1167_v36, %v2180_v33 }
 0x2c1   :  { %v997_v59 = vsel %vm1405_vm15, 0, %v1404_v2 }
 0x2c2   :  { %vm1146_vm0 = vcmp.lt.s32.totalorder %v1145_v5, 0  ;;  %v1147_v63 = vsub.s32 0, %v1145_v5  ;;  %v998_v20 = vsub.s32 32, %v997_v59  ;;  %v1002_v23 = vsub.s32 4294967266, %v997_v59 }
 0x2c3   :  { %v999_v27 = vshll.u32 %v990_v29, %v997_v59 }
 0x2c4   :  { %v1148_v25 = vsel %vm1146_vm0, %v1147_v63, %v1145_v5  ;;  %v1000_v26 = vshrl.u32 %v982_v41, %v998_v20  ;;  %v1003_v11 = vadd.s32 127, %v1002_v23  ;;  %v1170_v63 = vsel %vm2199_vm5, 0, %v1168_v0 }
 0x2c5   :  { %v1149_v34 = vclz %v1148_v25 }
 0x2c6   :  { %v1001_v21 = vor.u32 %v1000_v26, %v999_v27  ;;  %v1004_v40 = vshll.u32 %v1003_v11, 23  ;;  %v1187_v11 = vadd.s32 3, %v1170_v63 }
 0x2c7   :  { %v1407_v18 = vadd.s32 4294967294, %v1149_v34 }
 0x2c8   :  { %v1005_v46 = vor.u32 4788187, %v1004_v40  ;;  %v1008_v19 = vcvt.s32.f32 %v1001_v21 }
 0x2c9   :  { %vm1408_vm1 = vcmp.lt.s32.totalorder %v1407_v18, 0 }
 0x2ca   :  { %v1152_v30 = vsel %vm1408_vm1, 0, %v1407_v18  ;;  %v1006_v37 = vand.u32 2147483647, %v1005_v46 }
 0x2cb   :  { %v1153_v13 = vsub.s32 32, %v1152_v30  ;;  %v1157_v38 = vsub.s32 4294967266, %v1152_v30  ;;  %v1154_v17 = vshll.u32 %v1145_v5, %v1152_v30  ;;  %v1032_v5 = vadd.s32 3, %v1015_v58 }
 0x2cc   :  { %v1009_v52 = vmul.f32 %v1008_v19, %v1006_v37 }
 0x2cd   :  { %v1155_v42 = vshrl.u32 %v1137_v39, %v1153_v13  ;;  %v1158_v28 = vadd.s32 127, %v1157_v38  ;;  %v1033_v26 = vand.u32 3, %v1032_v5  ;;  %v1188_v39 = vand.u32 3, %v1187_v11 }
 0x2ce   :  { %v1010_v10 = vxor.u32 2147483648, %v1009_v52 }
 0x2cf   :  { %v1156_v16 = vor.u32 %v1155_v42, %v1154_v17  ;;  %v1159_v4 = vshll.u32 %v1158_v28, 23  ;;  %vm1035_vm6 = vcmp.eq.s32.totalorder %v1033_v26, 0  ;;  %vm1038_vm7 = vcmp.eq.s32.totalorder %v1033_v26, 2 }
 0x2d0   :  { %v1011_v51 = vsel %vm890_vm2, %v1010_v10, %v1009_v52  ;;  %vm1034_vm8 = vcmp.lt.s32.totalorder %v1033_v26, 2  ;;  %vm1190_vm9 = vcmp.eq.s32.totalorder %v1188_v39, 0  ;;  %vm1193_vm10 = vcmp.eq.s32.totalorder %v1188_v39, 2 }
 0x2d1   :  { %v1160_v43 = vor.u32 4788187, %v1159_v4  ;;  %v1014_v53 = vsel %vm2186_vm3, %v2027_v55, %v1011_v51  ;;  %v1163_v48 = vcvt.s32.f32 %v1156_v16  ;;  %vm1189_vm11 = vcmp.lt.s32.totalorder %v1188_v39, 2 }
 0x2d2   :  { %v1016_v1 = vmul.f32 %v1014_v53, %v1014_v53 }
 0x2d3   :  { %v1161_v12 = vand.u32 2147483647, %v1160_v43 }
 0x2d4   :  { %v1017_v14 = vmul.f32 -0.001358992, %v1016_v1  ;;  %v1024_v44 = vmul.f32 -0.00019511016, %v1016_v1 }
 0x2d5   :  { %v1164_v31 = vmul.f32 %v1163_v48, %v1161_v12 }
 0x2d6   :  { %v1018_v32 = vadd.f32 0.041655596, %v1017_v14  ;;  %v1025_v35 = vadd.f32 0.008332121, %v1024_v44 }
 0x2d7   :  { %v1165_v61 = vxor.u32 2147483648, %v1164_v31 }
 0x2d8   :  { %v1019_v7 = vmul.f32 %v1018_v32, %v1016_v1  ;;  %v1026_v60 = vmul.f32 %v1025_v35, %v1016_v1 }
 0x2d9   :  { %v1166_v56 = vsel %vm1045_vm4, %v1165_v61, %v1164_v31 }
 0x2da   :  { %v1169_v62 = vsel %vm2199_vm5, %v2033_v57, %v1166_v56  ;;  %v1020_v45 = vadd.f32 -0.4999988, %v1019_v7  ;;  %v1027_v6 = vadd.f32 -0.16666654, %v1026_v60 }
 0x2db   :  { %v1171_v29 = vmul.f32 %v1169_v62, %v1169_v62 }
 0x2dc   :  { %v1028_v3 = vmul.f32 %v1027_v6, %v1016_v1  ;;  %v1021_v9 = vmul.f32 %v1020_v45, %v1016_v1 }
 0x2dd   :  { %v1172_v15 = vmul.f32 -0.001358992, %v1171_v29  ;;  %v1179_v54 = vmul.f32 -0.00019511016, %v1171_v29 }
 0x2de   :  { %v1029_v8 = vadd.f32 1.0, %v1028_v3  ;;  %v1022_v23 = vadd.f32 1.0, %v1021_v9 }
 0x2df   :  { %v1173_v47 = vadd.f32 0.041655596, %v1172_v15  ;;  %v1180_v2 = vadd.f32 0.008332121, %v1179_v54 }
 0x2e0   :  { %v1030_v59 = vmul.f32 %v1029_v8, %v1014_v53  ;;  %v1039_v33 = vxor.u32 2147483648, %v1022_v23 }
 0x2e1   :  { %v1174_v41 = vmul.f32 %v1173_v47, %v1171_v29  ;;  %v1181_v20 = vmul.f32 %v1180_v2, %v1171_v29 }
 0x2e2   :  { %v1036_v34 = vxor.u32 2147483648, %v1030_v59  ;;  %v1040_v13 = vsel %vm1038_vm7, %v1039_v33, %v1030_v59 }
 0x2e3   :  { %v1175_v25 = vadd.f32 -0.4999988, %v1174_v41  ;;  %v1182_v27 = vadd.f32 -0.16666654, %v1181_v20 }
 0x2e4   :  { %v1037_v30 = vsel %vm1035_vm6, %v1022_v23, %v1036_v34 }
 0x2e5   :  { %v1176_v21 = vmul.f32 %v1175_v25, %v1171_v29  ;;  %v1183_v40 = vmul.f32 %v1182_v27, %v1171_v29  ;;  %v1041_v52 = vsel %vm1034_vm8, %v1037_v30, %v1040_v13 }
 0x2e6   :  { %v1042_v10 = vsel %vm1031_vm12, nan, %v1041_v52 }
 0x2e7   :  { %v1177_v18 = vadd.f32 1.0, %v1176_v21  ;;  %v1184_v46 = vadd.f32 1.0, %v1183_v40 }
 0x2e9   :  { %v1185_v37 = vmul.f32 %v1184_v46, %v1169_v62  ;;  %v1194_v19 = vxor.u32 2147483648, %v1177_v18 }
 0x2eb   :  { %v1191_v38 = vxor.u32 2147483648, %v1185_v37  ;;  %v1195_v42 = vsel %vm1193_vm10, %v1194_v19, %v1185_v37 }
 0x2ed   :  { %v1192_v17 = vsel %vm1190_vm9, %v1177_v18, %v1191_v38 }
 0x2ee   :  { %v1196_v28 = vsel %vm1189_vm11, %v1192_v17, %v1195_v42 }
 0x2ef   :  { %v1197_v16 = vsel %vm1186_vm13, nan, %v1196_v28 }
 0x2f0   :  { %v1198_v4 = vpack.c.bf16 %v1197_v16, %v1042_v10 }
 0x2f2   :  { %1275 = vmatmul.bf16.vlgmr.msra.gmra.mxu3 %v1198_v4 }
 0x375   :  { %v1276_v51 = vpop.f32.mrf.mxu3 }
 0x376   :  { %v1277_v43 = vadd.f32 %v1482_v49, %v1276_v51 }
 0x378   :  { %1281 = vmax.xlane.f32.xlu0 %v1277_v43 }
 0x37d   :  { %v1278_v53 = vpop.f32.mrf.mxu3 }
 0x37e   :  { %v1279_v1 = vadd.f32 %v1482_v49, %v1278_v53 }
 0x380   :  { %1283 = vmax.xlane.f32.xlu0 %v1279_v1 }
 0x3eb   :  { %v1282_v12 = vpop.xlane.xlu0 %1281 }
 0x3ec   :  { %v1285_v48 = vsub.f32 %v1277_v43, %v1282_v12 }
 0x3ee   :  { %v1287_v55 = vmul.f32 1.442695, %v1285_v48 }
 0x3f0   :  { %1483 = vpow2.f32 %v1287_v55 }
 0x3f3   :  { %v1284_v57 = vpop.xlane.xlu0 %1283 }
 0x3f4   :  { %v1286_v14 = vsub.f32 %v1279_v1, %v1284_v57 }
 0x3f6   :  { %v1484_v44 = vpop.eup %1483  ;;  %v1289_v31 = vmul.f32 1.442695, %v1286_v14 }
 0x3f7   :  { %1291 = vadd.xlane.f32.xlu1 %v1484_v44 }
 0x3f8   :  { %1485 = vpow2.f32 %v1289_v31 }
 0x3fe   :  { %v1486_v22 = vpop.eup %1485 }
 0x3ff   :  { %1293 = vadd.xlane.f32.xlu1 %v1486_v22 }
 0x46a   :  { %v1292_v32 = vpop.xlane.xlu1 %1291 }
 0x46b   :  { %1487 = vrcp.f32 %v1292_v32 }
 0x471   :  { %v1488_v35 = vpop.eup %1487 }
 0x472   :  { %v1297_v61 = vmul.f32 0.5, %v1488_v35  ;;  %v1294_v7 = vpop.xlane.xlu1 %1293 }
 0x473   :  { %1489 = vrcp.f32 %v1294_v7 }
 0x474   :  { %v1299_v60 = vmul.f32 %v1484_v44, %v1297_v61 }
 0x476   :  { %1301 = vst [vmem:[#allocation7] sm:$0xff] %v1299_v60 }
 0x479   :  { %v1490_v24 = vpop.eup %1489 }
 0x47a   :  { %v1298_v56 = vmul.f32 0.5, %v1490_v24 }
 0x47c   :  { %v1300_v50 = vmul.f32 %v1486_v22, %v1298_v56 }
 0x47e   :  { %1302 = vst [vmem:[#allocation7 + $0x8] sm:$0xff] %v1300_v50 }
 0x47f   :  { %1315 = dma.vmem_to_hbm [thread:$0]  %s1308_s21, 256, %s1310_s24, [#allocation4], %s1581_s25, %s1581_s25, %s1582_s26  }
 0x480   :  { %1567 = dma.done.wait [#allocation4], 256  }
 0x481   :  { %1568 = vsyncadd [#allocation4], 4294967040 }
 0x482   :  { %1320 = vsyncpa [#allocation3], 1 }
 0x483   :  { %1321 = vsyncpa [#allocation6], 1 }
 0x484   :  { %1322 = vsyncpa [#allocation4], 1 }

</bundles_post_ra>
